<compile_context>
chip_gen: v7x
topology: tpu7x:2x2x1
jax: 0.10.0
libtpu: 0.0.40
codegen_flags: <defaults>
</compile_context>

<pallas_src>
import jax
import jax.numpy as jnp
from jax import lax
from jax.experimental import pallas as pl
from jax.experimental.pallas import tpu as pltpu


# ------------------------------- small helpers -------------------------------

def _round_up(x, m):
    return (x + m - 1) // m * m


def _pad_last(x, c):
    return jnp.pad(x, [(0, 0)] * (x.ndim - 1) + [(0, c - x.shape[-1])])


def _upsample_matrix(hs, ws):
    """(4*hs*ws, hs*ws) 0/1 matrix: row i selects src pixel (i//Wd//2, (i%Wd)//2)."""
    hd, wd = 2 * hs, 2 * ws
    i = jnp.arange(hd * wd)
    src = (i // wd // 2) * ws + (i % wd) // 2
    return (src[:, None] == jnp.arange(hs * ws)[None, :]).astype(jnp.float32)


def upsample2x_nearest(x_nhwc):
    # Matches F.interpolate(scale_factor=2, mode='nearest').
    return jnp.repeat(jnp.repeat(x_nhwc, 2, axis=1), 2, axis=2)


# --------------------------- fused FPN Pallas kernel ---------------------------

def fpn_forward(backbone_feats, fpn_params):
    """Exact op ordering of DetectorBackboneWithFPN.forward, fused in one kernel.

    Inputs/outputs are NHWC; internally each level is a (rows=H*W, lanes=C) tile.
    """
    c3, c4, c5 = backbone_feats["c3"], backbone_feats["c4"], backbone_feats["c5"]
    B, H3, W3, C3 = c3.shape
    _, H4, W4, C4 = c4.shape
    _, H5, W5, C5 = c5.shape
    assert (H3, W3) == (2 * H4, 2 * W4) and (H4, W4) == (2 * H5, 2 * W5)
    Cout = fpn_params["p30_w"].shape[0]

    Cp = _round_up(max(Cout, 128), 128)                 # lane-dense output channels
    C3p, C4p, C5p = (_round_up(c, 128) for c in (C3, C4, C5))
    HW3, HW4, HW5 = H3 * W3, H4 * W4, H5 * W5

    # ---- plain-JAX prep glue (padding / transposes / bf16 casts, done once) ----
    def feat(x, cpad, hw):
        return _pad_last(x, cpad).astype(jnp.bfloat16).reshape(B, hw, cpad)

    c3f, c4f, c5f = feat(c3, C3p, HW3), feat(c4, C4p, HW4), feat(c5, C5p, HW5)

    def lat_w(w_oihw, cin, cin_p):
        w = jnp.transpose(w_oihw.reshape(w_oihw.shape[0], cin), (1, 0))  # (Cin, Cout)
        return jnp.pad(w, ((0, cin_p - cin), (0, Cp - Cout))).astype(jnp.bfloat16)

    w30 = lat_w(fpn_params["p30_w"], C3, C3p)
    w40 = lat_w(fpn_params["p40_w"], C4, C4p)
    w50 = lat_w(fpn_params["p50_w"], C5, C5p)

    def out_w(w_oihw):
        # (Cout,Cin,kh,kw) -> (kh,kw,Cin,Cout) -> (9,Cin,Cout); tap t = kh*3+kw.
        w = jnp.transpose(w_oihw, (2, 3, 1, 0)).reshape(9, Cout, Cout)
        return jnp.pad(w, ((0, 0), (0, Cp - Cout), (0, Cp - Cout)))

    w3x3 = jnp.stack([out_w(fpn_params["p3_w"]),
                      out_w(fpn_params["p4_w"]),
                      out_w(fpn_params["p5_w"])]).astype(jnp.bfloat16)   # (3,9,Cp,Cp)

    def bias(b):
        return jnp.pad(b.astype(jnp.float32), (0, Cp - Cout))

    b_lat = jnp.stack([bias(fpn_params["p30_b"]), bias(fpn_params["p40_b"]),
                       bias(fpn_params["p50_b"])])                        # (3, Cp)
    b_out = jnp.stack([bias(fpn_params["p3_b"]), bias(fpn_params["p4_b"]),
                       bias(fpn_params["p5_b"])])                         # (3, Cp)

    u43 = _upsample_matrix(H4, W4)    # (HW3, HW4) exact 0/1 selection, f32
    u54 = _upsample_matrix(H5, W5)    # (HW4, HW5)

    pad_rows = HW3 + 2 * W3 + 2       # shared 3x3 zero-padded scratch (largest level)

    def kernel(c3_ref, c4_ref, c5_ref, w30_ref, w40_ref, w50_ref,
               w3x3_ref, b_lat_ref, b_out_ref, u43_ref, u54_ref,
               p3_ref, p4_ref, p5_ref, pad_ref):

        def conv3x3(lat, H, W, lvl):
            """3x3 / stride 1 / pad 1 conv on a VMEM-resident (H*W, Cp) lateral."""
            HW, Wp = H * W, W + 1
            # Zero-pad once in VMEM: flat tap offset dh*W+dw reads row Wp+p+off.
            pad_ref[...] = jnp.zeros_like(pad_ref)
            pad_ref[Wp:Wp + HW, :] = lat
            w_col = lax.broadcasted_iota(jnp.int32, (HW, Cp), 0) % W
            acc = jnp.zeros((HW, Cp), jnp.float32)
            for t in range(9):                         # unrolled: 9 MXU matmuls
                dh, dw = t // 3 - 1, t % 3 - 1
                start = Wp + dh * W + dw
                tap = pad_ref[start:start + HW, :]
                if dw == -1:                           # mask column wrap-around
                    tap = jnp.where(w_col >= 1, tap, 0.0)
                elif dw == 1:
                    tap = jnp.where(w_col <= W - 2, tap, 0.0)
                acc = acc + jnp.dot(tap.astype(jnp.bfloat16), w3x3_ref[lvl, t],
                                    preferred_element_type=jnp.float32)
            return acc + b_out_ref[lvl:lvl + 1, :]

        # ---- p5: lateral (no residual), upsample for p4, 3x3 output conv ----
        p5_lat = (jnp.dot(c5_ref[0], w50_ref[...], preferred_element_type=jnp.float32)
                  + b_lat_ref[2:3, :])
        p5_up = jnp.dot(u54_ref[...], p5_lat, preferred_element_type=jnp.float32)
        p5_ref[0] = conv3x3(p5_lat, H5, W5, 2)

        # ---- p4 ----
        p4_lat = (jnp.dot(c4_ref[0], w40_ref[...], preferred_element_type=jnp.float32)
                  + b_lat_ref[1:2, :] + p5_up)
        p4_up = jnp.dot(u43_ref[...], p4_lat, preferred_element_type=jnp.float32)
        p4_ref[0] = conv3x3(p4_lat, H4, W4, 1)

        # ---- p3 ----
        p3_lat = (jnp.dot(c3_ref[0], w30_ref[...], preferred_element_type=jnp.float32)
                  + b_lat_ref[0:1, :] + p4_up)
        p3_ref[0] = conv3x3(p3_lat, H3, W3, 0)

    p3f, p4f, p5f = pl.pallas_call(
        kernel,
        out_shape=(jax.ShapeDtypeStruct((B, HW3, Cp), jnp.float32),
                   jax.ShapeDtypeStruct((B, HW4, Cp), jnp.float32),
                   jax.ShapeDtypeStruct((B, HW5, Cp), jnp.float32)),
        grid=(B,),
        in_specs=[
            pl.BlockSpec((1, HW3, C3p), lambda b: (b, 0, 0)),
            pl.BlockSpec((1, HW4, C4p), lambda b: (b, 0, 0)),
            pl.BlockSpec((1, HW5, C5p), lambda b: (b, 0, 0)),
            pl.BlockSpec((C3p, Cp), lambda b: (0, 0)),
            pl.BlockSpec((C4p, Cp), lambda b: (0, 0)),
            pl.BlockSpec((C5p, Cp), lambda b: (0, 0)),
            pl.BlockSpec((3, 9, Cp, Cp), lambda b: (0, 0, 0, 0)),
            pl.BlockSpec((3, Cp), lambda b: (0, 0)),
            pl.BlockSpec((3, Cp), lambda b: (0, 0)),
            pl.BlockSpec((HW3, HW4), lambda b: (0, 0)),
            pl.BlockSpec((HW4, HW5), lambda b: (0, 0)),
        ],
        out_specs=(pl.BlockSpec((1, HW3, Cp), lambda b: (b, 0, 0)),
                   pl.BlockSpec((1, HW4, Cp), lambda b: (b, 0, 0)),
                   pl.BlockSpec((1, HW5, Cp), lambda b: (b, 0, 0))),
        scratch_shapes=[pltpu.VMEM((pad_rows, Cp), jnp.float32)],
        compiler_params=pltpu.CompilerParams(dimension_semantics=("parallel",)),
    )(c3f, c4f, c5f, w30, w40, w50, w3x3, b_lat, b_out, u43, u54)

    p3 = p3f[:, :, :Cout].reshape(B, H3, W3, Cout)
    p4 = p4f[:, :, :Cout].reshape(B, H4, W4, Cout)
    p5 = p5f[:, :, :Cout].reshape(B, H5, W5, Cout)
    return {"p3": p3, "p4": p4, "p5": p5}


# ------------------------------- backbone (glue) -------------------------------

# TODO(synk): the pretrained torchvision regnet_x_400mf trunk cannot be loaded here;
# it is replaced by a deterministic synthetic downsampling CNN with the same output
# strides (8/16/32) and channel counts (c3=64, c4=160, c5=400), kept as plain-JAX glue.
def synthetic_backbone(images_nhwc, backbone_params):
    feats = []
    y = images_nhwc
    for (w_hwio, b) in backbone_params:
        y = lax.conv_general_dilated(
            y, w_hwio, window_strides=(2, 2), padding="SAME",
            dimension_numbers=("NHWC", "HWIO", "NHWC"))
        y = jax.nn.relu(y + b)
        feats.append(y)
    # stages: stem(s2), block1(s4), block2(s8)=c3, block3(s16)=c4, block4(s32)=c5
    return {"c3": feats[2], "c4": feats[3], "c5": feats[4]}


def detector_backbone_with_fpn(images_nchw, backbone_params, fpn_params):
    x = jnp.transpose(images_nchw, (0, 2, 3, 1))  # NCHW -> NHWC
    feats = synthetic_backbone(x, backbone_params)
    fpn = fpn_forward(feats, fpn_params)
    return {k: jnp.transpose(v, (0, 3, 1, 2)) for k, v in fpn.items()}  # -> NCHW


# -------------------- reference (bf16 MXU precision matched) --------------------

def _ref_conv_bf16(x_nhwc, w_oihw, b, padding):
    w = jnp.transpose(w_oihw, (2, 3, 1, 0)).astype(jnp.bfloat16)  # OIHW -> HWIO
    y = lax.conv_general_dilated(x_nhwc.astype(jnp.bfloat16), w, (1, 1), padding,
                                 dimension_numbers=("NHWC", "HWIO", "NHWC"),
                                 preferred_element_type=jnp.float32)
    return y + b


def fpn_forward_reference(backbone_feats, p):
    c3, c4, c5 = backbone_feats["c3"], backbone_feats["c4"], backbone_feats["c5"]
    p5_lat = _ref_conv_bf16(c5, p["p50_w"], p["p50_b"], "VALID")
    p5_up = upsample2x_nearest(p5_lat)
    p5 = _ref_conv_bf16(p5_lat, p["p5_w"], p["p5_b"], [(1, 1), (1, 1)])
    p4_lat = _ref_conv_bf16(c4, p["p40_w"], p["p40_b"], "VALID") + p5_up
    p4_up = upsample2x_nearest(p4_lat)
    p4 = _ref_conv_bf16(p4_lat, p["p4_w"], p["p4_b"], [(1, 1), (1, 1)])
    p3_lat = _ref_conv_bf16(c3, p["p30_w"], p["p30_b"], "VALID") + p4_up
    p3 = _ref_conv_bf16(p3_lat, p["p3_w"], p["p3_b"], [(1, 1), (1, 1)])
    return {"p3": p3, "p4": p4, "p5": p5}


# ------------------------------- parameter init -------------------------------

def _conv_w_b(key, cin, cout, k, hwio=False):
    kw, kb = jax.random.split(key)
    fan_in = cin * k * k
    if hwio:
        w = jax.random.normal(kw, (k, k, cin, cout), jnp.float32) / jnp.sqrt(fan_in)
    else:
        w = jax.random.normal(kw, (cout, cin, k, k), jnp.float32) / jnp.sqrt(fan_in)
    b = 0.01 * jax.random.normal(kb, (cout,), jnp.float32)
    return w, b


def init_params(key, out_channels):
    ks = jax.random.split(key, 16)
    # synthetic backbone: 3->32->32->64(c3)->160(c4)->400(c5), stride 2 each
    chans = [3, 32, 32, 64, 160, 400]
    backbone_params = []
    for i in range(5):
        w, b = _conv_w_b(ks[i], chans[i], chans[i + 1], 3, hwio=True)
        backbone_params.append((w, b))
    # FPN params (same shapes as the nn.Conv2d modules in __init__)
    c3c, c4c, c5c = 64, 160, 400
    fpn = {}
    fpn["p30_w"], fpn["p30_b"] = _conv_w_b(ks[5], c3c, out_channels, 1)
    fpn["p40_w"], fpn["p40_b"] = _conv_w_b(ks[6], c4c, out_channels, 1)
    fpn["p50_w"], fpn["p50_b"] = _conv_w_b(ks[7], c5c, out_channels, 1)
    fpn["p3_w"], fpn["p3_b"] = _conv_w_b(ks[8], out_channels, out_channels, 3)
    fpn["p4_w"], fpn["p4_b"] = _conv_w_b(ks[9], out_channels, out_channels, 3)
    fpn["p5_w"], fpn["p5_b"] = _conv_w_b(ks[10], out_channels, out_channels, 3)
    return backbone_params, fpn


# ------------------------------------ main ------------------------------------

if __name__ == "__main__":
    key = jax.random.PRNGKey(0)
    k_param, k_img = jax.random.split(key)

    out_channels = 64
    backbone_params, fpn_params = init_params(k_param, out_channels)

    # Small input consistent with the module: (B, 3, H, W); strides 8/16/32 divide 64.
    images = jax.random.normal(k_img, (2, 3, 64, 64), jnp.float32)

    fwd = jax.jit(detector_backbone_with_fpn)
    outs = fwd(images, backbone_params, fpn_params)
    outs = {k: jax.block_until_ready(v) for k, v in outs.items()}

    # Cross-check the fused Pallas FPN against a plain-JAX conv reference that uses
    # the same bf16-input / f32-accumulate precision as the kernel's MXU path.
    feats = synthetic_backbone(jnp.transpose(images, (0, 2, 3, 1)), backbone_params)
    ref = fpn_forward_reference(feats, fpn_params)
    ref = {k: jnp.transpose(v, (0, 3, 1, 2)) for k, v in ref.items()}

    expected_shapes = {"p3": (2, out_channels, 8, 8),
                       "p4": (2, out_channels, 4, 4),
                       "p5": (2, out_channels, 2, 2)}
    for lvl in ("p3", "p4", "p5"):
        assert outs[lvl].shape == expected_shapes[lvl], (lvl, outs[lvl].shape)
        err = float(jnp.max(jnp.abs(outs[lvl] - ref[lvl])))
        assert err < 2e-2, (lvl, err)

    print("KERNEL_OK")
</pallas_src>

<mosaic_0001>
module attributes {stable_mosaic.version = 11 : i64} {
  func.func @kernel(%arg0: i32, %arg1: memref<1x64x128xbf16, #tpu.memory_space<vmem>>, %arg2: memref<1x16x256xbf16, #tpu.memory_space<vmem>>, %arg3: memref<1x4x512xbf16, #tpu.memory_space<vmem>>, %arg4: memref<128x128xbf16, #tpu.memory_space<vmem>>, %arg5: memref<256x128xbf16, #tpu.memory_space<vmem>>, %arg6: memref<512x128xbf16, #tpu.memory_space<vmem>>, %arg7: memref<3x9x128x128xbf16, #tpu.memory_space<vmem>>, %arg8: memref<3x128xf32, #tpu.memory_space<vmem>>, %arg9: memref<3x128xf32, #tpu.memory_space<vmem>>, %arg10: memref<64x16xf32, #tpu.memory_space<vmem>>, %arg11: memref<16x4xf32, #tpu.memory_space<vmem>>, %arg12: memref<1x64x128xf32, #tpu.memory_space<vmem>>, %arg13: memref<1x16x128xf32, #tpu.memory_space<vmem>>, %arg14: memref<1x4x128xf32, #tpu.memory_space<vmem>>, %arg15: memref<82x128xf32, #tpu.memory_space<vmem>>) attributes {dimension_semantics = [#tpu.dimension_semantics<parallel>], iteration_bounds = array<i64: 2>, scalar_prefetch = 0 : i64, scratch_operands = 1 : i64, tpu.core_type = #tpu.core_type<tc>, window_params = [{transform_indices = @transform_0, window_bounds = array<i64: 1, 64, 128>}, {transform_indices = @transform_1, window_bounds = array<i64: 1, 16, 256>}, {transform_indices = @transform_2, window_bounds = array<i64: 1, 4, 512>}, {pipeline_mode = #tpu.pipeline_mode<synchronous>, transform_indices = @transform_3, window_bounds = array<i64: 128, 128>}, {pipeline_mode = #tpu.pipeline_mode<synchronous>, transform_indices = @transform_4, window_bounds = array<i64: 256, 128>}, {pipeline_mode = #tpu.pipeline_mode<synchronous>, transform_indices = @transform_5, window_bounds = array<i64: 512, 128>}, {pipeline_mode = #tpu.pipeline_mode<synchronous>, transform_indices = @transform_6, window_bounds = array<i64: 3, 9, 128, 128>}, {pipeline_mode = #tpu.pipeline_mode<synchronous>, transform_indices = @transform_7, window_bounds = array<i64: 3, 128>}, {pipeline_mode = #tpu.pipeline_mode<synchronous>, transform_indices = @transform_8, window_bounds = array<i64: 3, 128>}, {pipeline_mode = #tpu.pipeline_mode<synchronous>, transform_indices = @transform_9, window_bounds = array<i64: 64, 16>}, {pipeline_mode = #tpu.pipeline_mode<synchronous>, transform_indices = @transform_10, window_bounds = array<i64: 16, 4>}, {transform_indices = @transform_11, window_bounds = array<i64: 1, 64, 128>}, {transform_indices = @transform_12, window_bounds = array<i64: 1, 16, 128>}, {transform_indices = @transform_13, window_bounds = array<i64: 1, 4, 128>}]} {
    %c0 = arith.constant 0 : index
    %c0_0 = arith.constant 0 : index
    %c0_1 = arith.constant 0 : index
    %0 = vector.load %arg3[%c0, %c0_0, %c0_1] : memref<1x4x512xbf16, #tpu.memory_space<vmem>>, vector<1x4x512xbf16>
    %1 = vector.shape_cast %0 : vector<1x4x512xbf16> to vector<4x512xbf16>
    %c0_2 = arith.constant 0 : index
    %c0_3 = arith.constant 0 : index
    %2 = vector.load %arg6[%c0_2, %c0_3] : memref<512x128xbf16, #tpu.memory_space<vmem>>, vector<512x128xbf16>
    %cst = arith.constant dense<0.000000e+00> : vector<4x128xf32>
    %3 = tpu.matmul %1, %2, %cst {dimension_numbers = #tpu.dot_dimension_numbers<[1], [0], [0], [1], [0, 0, 1, 1], [], []>} : vector<4x512xbf16>, vector<512x128xbf16>, vector<4x128xf32> -> vector<4x128xf32>
    %c2 = arith.constant 2 : index
    %c0_4 = arith.constant 0 : index
    %4 = vector.load %arg8[%c2, %c0_4] : memref<3x128xf32, #tpu.memory_space<vmem>>, vector<1x128xf32>
    %5 = vector.broadcast %4 : vector<1x128xf32> to vector<4x128xf32>
    %6 = arith.addf %3, %5 : vector<4x128xf32>
    %c0_5 = arith.constant 0 : index
    %c0_6 = arith.constant 0 : index
    %7 = vector.load %arg11[%c0_5, %c0_6] : memref<16x4xf32, #tpu.memory_space<vmem>>, vector<16x4xf32>
    %cst_7 = arith.constant dense<0.000000e+00> : vector<16x128xf32>
    %8 = tpu.matmul %7, %6, %cst_7 {dimension_numbers = #tpu.dot_dimension_numbers<[1], [0], [0], [1], [0, 0, 1, 1], [], []>} : vector<16x4xf32>, vector<4x128xf32>, vector<16x128xf32> -> vector<16x128xf32>
    %cst_8 = arith.constant 0.000000e+00 : f32
    %9 = vector.broadcast %cst_8 : f32 to vector<82x128xf32>
    %c0_9 = arith.constant 0 : index
    %c0_10 = arith.constant 0 : index
    %10 = vector.load %arg15[%c0_9, %c0_10] : memref<82x128xf32, #tpu.memory_space<vmem>>, vector<82x128xf32>
    tpu.vector_store %arg15[%c0_9, %c0_10], %9 {strides = array<i32>} : memref<82x128xf32, #tpu.memory_space<vmem>>, vector<82x128xf32>,
    %c3 = arith.constant 3 : index
    %c0_11 = arith.constant 0 : index
    %11 = vector.load %arg15[%c3, %c0_11] : memref<82x128xf32, #tpu.memory_space<vmem>>, vector<4x128xf32>
    tpu.vector_store %arg15[%c3, %c0_11], %6 {strides = array<i32>} : memref<82x128xf32, #tpu.memory_space<vmem>>, vector<4x128xf32>,
    %12 = tpu.iota {dimensions = array<i32: 0>} : vector<4x128xi32>
    %c2_i32 = arith.constant 2 : i32
    %c0_i32 = arith.constant 0 : i32
    %13 = arith.cmpi eq, %c2_i32, %c0_i32 : i32
    %c1_i32 = arith.constant 1 : i32
    %14 = arith.select %13, %c1_i32, %c2_i32 : i32
    %15 = vector.broadcast %14 : i32 to vector<4x128xi32>
    %16 = arith.remsi %12, %15 : vector<4x128xi32>
    %c0_i32_12 = arith.constant 0 : i32
    %17 = vector.broadcast %c0_i32_12 : i32 to vector<4x128xi32>
    %18 = arith.cmpi ne, %16, %17 : vector<4x128xi32>
    %c0_i32_13 = arith.constant 0 : i32
    %19 = vector.broadcast %c0_i32_13 : i32 to vector<4x128xi32>
    %20 = arith.cmpi slt, %16, %19 : vector<4x128xi32>
    %c0_i32_14 = arith.constant 0 : i32
    %21 = arith.cmpi slt, %14, %c0_i32_14 : i32
    %22 = vector.broadcast %21 : i1 to vector<4x128xi1>
    %23 = vector.broadcast %22 : vector<4x128xi1> to vector<4x128xi1>
    %24 = arith.xori %20, %23 : vector<4x128xi1>
    %25 = arith.andi %24, %18 : vector<4x128xi1>
    %26 = vector.broadcast %14 : i32 to vector<4x128xi32>
    %27 = arith.addi %16, %26 : vector<4x128xi32>
    %28 = arith.select %25, %27, %16 : vector<4x128xi1>, vector<4x128xi32>
    %cst_15 = arith.constant 0.000000e+00 : f32
    %29 = vector.broadcast %cst_15 : f32 to vector<4x128xf32>
    %c0_16 = arith.constant 0 : index
    %c0_17 = arith.constant 0 : index
    %30 = vector.load %arg15[%c0_16, %c0_17] : memref<82x128xf32, #tpu.memory_space<vmem>>, vector<4x128xf32>
    %c1_i32_18 = arith.constant 1 : i32
    %31 = vector.broadcast %c1_i32_18 : i32 to vector<4x128xi32>
    %32 = arith.cmpi sge, %28, %31 : vector<4x128xi32>
    %cst_19 = arith.constant 0.000000e+00 : f32
    %33 = vector.broadcast %cst_19 : f32 to vector<4x128xf32>
    %34 = arith.select %32, %30, %33 : vector<4x128xi1>, vector<4x128xf32>
    %35 = arith.truncf %34 : vector<4x128xf32> to vector<4x128xbf16>
    %c2_20 = arith.constant 2 : index
    %c0_21 = arith.constant 0 : index
    %c0_22 = arith.constant 0 : index
    %c0_23 = arith.constant 0 : index
    %36 = vector.load %arg7[%c2_20, %c0_21, %c0_22, %c0_23] : memref<3x9x128x128xbf16, #tpu.memory_space<vmem>>, vector<1x1x128x128xbf16>
    %37 = vector.shape_cast %36 : vector<1x1x128x128xbf16> to vector<128x128xbf16>
    %cst_24 = arith.constant dense<0.000000e+00> : vector<4x128xf32>
    %38 = tpu.matmul %35, %37, %cst_24 {dimension_numbers = #tpu.dot_dimension_numbers<[1], [0], [0], [1], [0, 0, 1, 1], [], []>} : vector<4x128xbf16>, vector<128x128xbf16>, vector<4x128xf32> -> vector<4x128xf32>
    %39 = arith.addf %29, %38 : vector<4x128xf32>
    %c1 = arith.constant 1 : index
    %c0_25 = arith.constant 0 : index
    %40 = vector.load %arg15[%c1, %c0_25] : memref<82x128xf32, #tpu.memory_space<vmem>>, vector<4x128xf32>
    %41 = arith.truncf %40 : vector<4x128xf32> to vector<4x128xbf16>
    %c2_26 = arith.constant 2 : index
    %c1_27 = arith.constant 1 : index
    %c0_28 = arith.constant 0 : index
    %c0_29 = arith.constant 0 : index
    %42 = vector.load %arg7[%c2_26, %c1_27, %c0_28, %c0_29] : memref<3x9x128x128xbf16, #tpu.memory_space<vmem>>, vector<1x1x128x128xbf16>
    %43 = vector.shape_cast %42 : vector<1x1x128x128xbf16> to vector<128x128xbf16>
    %cst_30 = arith.constant dense<0.000000e+00> : vector<4x128xf32>
    %44 = tpu.matmul %41, %43, %cst_30 {dimension_numbers = #tpu.dot_dimension_numbers<[1], [0], [0], [1], [0, 0, 1, 1], [], []>} : vector<4x128xbf16>, vector<128x128xbf16>, vector<4x128xf32> -> vector<4x128xf32>
    %45 = arith.addf %39, %44 : vector<4x128xf32>
    %c2_31 = arith.constant 2 : index
    %c0_32 = arith.constant 0 : index
    %46 = vector.load %arg15[%c2_31, %c0_32] : memref<82x128xf32, #tpu.memory_space<vmem>>, vector<4x128xf32>
    %c0_i32_33 = arith.constant 0 : i32
    %47 = vector.broadcast %c0_i32_33 : i32 to vector<4x128xi32>
    %48 = arith.cmpi sle, %28, %47 : vector<4x128xi32>
    %cst_34 = arith.constant 0.000000e+00 : f32
    %49 = vector.broadcast %cst_34 : f32 to vector<4x128xf32>
    %50 = arith.select %48, %46, %49 : vector<4x128xi1>, vector<4x128xf32>
    %51 = arith.truncf %50 : vector<4x128xf32> to vector<4x128xbf16>
    %c2_35 = arith.constant 2 : index
    %c2_36 = arith.constant 2 : index
    %c0_37 = arith.constant 0 : index
    %c0_38 = arith.constant 0 : index
    %52 = vector.load %arg7[%c2_35, %c2_36, %c0_37, %c0_38] : memref<3x9x128x128xbf16, #tpu.memory_space<vmem>>, vector<1x1x128x128xbf16>
    %53 = vector.shape_cast %52 : vector<1x1x128x128xbf16> to vector<128x128xbf16>
    %cst_39 = arith.constant dense<0.000000e+00> : vector<4x128xf32>
    %54 = tpu.matmul %51, %53, %cst_39 {dimension_numbers = #tpu.dot_dimension_numbers<[1], [0], [0], [1], [0, 0, 1, 1], [], []>} : vector<4x128xbf16>, vector<128x128xbf16>, vector<4x128xf32> -> vector<4x128xf32>
    %55 = arith.addf %45, %54 : vector<4x128xf32>
    %c2_40 = arith.constant 2 : index
    %c0_41 = arith.constant 0 : index
    %56 = vector.load %arg15[%c2_40, %c0_41] : memref<82x128xf32, #tpu.memory_space<vmem>>, vector<4x128xf32>
    %c1_i32_42 = arith.constant 1 : i32
    %57 = vector.broadcast %c1_i32_42 : i32 to vector<4x128xi32>
    %58 = arith.cmpi sge, %28, %57 : vector<4x128xi32>
    %cst_43 = arith.constant 0.000000e+00 : f32
    %59 = vector.broadcast %cst_43 : f32 to vector<4x128xf32>
    %60 = arith.select %58, %56, %59 : vector<4x128xi1>, vector<4x128xf32>
    %61 = arith.truncf %60 : vector<4x128xf32> to vector<4x128xbf16>
    %c2_44 = arith.constant 2 : index
    %c3_45 = arith.constant 3 : index
    %c0_46 = arith.constant 0 : index
    %c0_47 = arith.constant 0 : index
    %62 = vector.load %arg7[%c2_44, %c3_45, %c0_46, %c0_47] : memref<3x9x128x128xbf16, #tpu.memory_space<vmem>>, vector<1x1x128x128xbf16>
    %63 = vector.shape_cast %62 : vector<1x1x128x128xbf16> to vector<128x128xbf16>
    %cst_48 = arith.constant dense<0.000000e+00> : vector<4x128xf32>
    %64 = tpu.matmul %61, %63, %cst_48 {dimension_numbers = #tpu.dot_dimension_numbers<[1], [0], [0], [1], [0, 0, 1, 1], [], []>} : vector<4x128xbf16>, vector<128x128xbf16>, vector<4x128xf32> -> vector<4x128xf32>
    %65 = arith.addf %55, %64 : vector<4x128xf32>
    %c3_49 = arith.constant 3 : index
    %c0_50 = arith.constant 0 : index
    %66 = vector.load %arg15[%c3_49, %c0_50] : memref<82x128xf32, #tpu.memory_space<vmem>>, vector<4x128xf32>
    %67 = arith.truncf %66 : vector<4x128xf32> to vector<4x128xbf16>
    %c2_51 = arith.constant 2 : index
    %c4 = arith.constant 4 : index
    %c0_52 = arith.constant 0 : index
    %c0_53 = arith.constant 0 : index
    %68 = vector.load %arg7[%c2_51, %c4, %c0_52, %c0_53] : memref<3x9x128x128xbf16, #tpu.memory_space<vmem>>, vector<1x1x128x128xbf16>
    %69 = vector.shape_cast %68 : vector<1x1x128x128xbf16> to vector<128x128xbf16>
    %cst_54 = arith.constant dense<0.000000e+00> : vector<4x128xf32>
    %70 = tpu.matmul %67, %69, %cst_54 {dimension_numbers = #tpu.dot_dimension_numbers<[1], [0], [0], [1], [0, 0, 1, 1], [], []>} : vector<4x128xbf16>, vector<128x128xbf16>, vector<4x128xf32> -> vector<4x128xf32>
    %71 = arith.addf %65, %70 : vector<4x128xf32>
    %c4_55 = arith.constant 4 : index
    %c0_56 = arith.constant 0 : index
    %72 = vector.load %arg15[%c4_55, %c0_56] : memref<82x128xf32, #tpu.memory_space<vmem>>, vector<4x128xf32>
    %c0_i32_57 = arith.constant 0 : i32
    %73 = vector.broadcast %c0_i32_57 : i32 to vector<4x128xi32>
    %74 = arith.cmpi sle, %28, %73 : vector<4x128xi32>
    %cst_58 = arith.constant 0.000000e+00 : f32
    %75 = vector.broadcast %cst_58 : f32 to vector<4x128xf32>
    %76 = arith.select %74, %72, %75 : vector<4x128xi1>, vector<4x128xf32>
    %77 = arith.truncf %76 : vector<4x128xf32> to vector<4x128xbf16>
    %c2_59 = arith.constant 2 : index
    %c5 = arith.constant 5 : index
    %c0_60 = arith.constant 0 : index
    %c0_61 = arith.constant 0 : index
    %78 = vector.load %arg7[%c2_59, %c5, %c0_60, %c0_61] : memref<3x9x128x128xbf16, #tpu.memory_space<vmem>>, vector<1x1x128x128xbf16>
    %79 = vector.shape_cast %78 : vector<1x1x128x128xbf16> to vector<128x128xbf16>
    %cst_62 = arith.constant dense<0.000000e+00> : vector<4x128xf32>
    %80 = tpu.matmul %77, %79, %cst_62 {dimension_numbers = #tpu.dot_dimension_numbers<[1], [0], [0], [1], [0, 0, 1, 1], [], []>} : vector<4x128xbf16>, vector<128x128xbf16>, vector<4x128xf32> -> vector<4x128xf32>
    %81 = arith.addf %71, %80 : vector<4x128xf32>
    %c4_63 = arith.constant 4 : index
    %c0_64 = arith.constant 0 : index
    %82 = vector.load %arg15[%c4_63, %c0_64] : memref<82x128xf32, #tpu.memory_space<vmem>>, vector<4x128xf32>
    %c1_i32_65 = arith.constant 1 : i32
    %83 = vector.broadcast %c1_i32_65 : i32 to vector<4x128xi32>
    %84 = arith.cmpi sge, %28, %83 : vector<4x128xi32>
    %cst_66 = arith.constant 0.000000e+00 : f32
    %85 = vector.broadcast %cst_66 : f32 to vector<4x128xf32>
    %86 = arith.select %84, %82, %85 : vector<4x128xi1>, vector<4x128xf32>
    %87 = arith.truncf %86 : vector<4x128xf32> to vector<4x128xbf16>
    %c2_67 = arith.constant 2 : index
    %c6 = arith.constant 6 : index
    %c0_68 = arith.constant 0 : index
    %c0_69 = arith.constant 0 : index
    %88 = vector.load %arg7[%c2_67, %c6, %c0_68, %c0_69] : memref<3x9x128x128xbf16, #tpu.memory_space<vmem>>, vector<1x1x128x128xbf16>
    %89 = vector.shape_cast %88 : vector<1x1x128x128xbf16> to vector<128x128xbf16>
    %cst_70 = arith.constant dense<0.000000e+00> : vector<4x128xf32>
    %90 = tpu.matmul %87, %89, %cst_70 {dimension_numbers = #tpu.dot_dimension_numbers<[1], [0], [0], [1], [0, 0, 1, 1], [], []>} : vector<4x128xbf16>, vector<128x128xbf16>, vector<4x128xf32> -> vector<4x128xf32>
    %91 = arith.addf %81, %90 : vector<4x128xf32>
    %c5_71 = arith.constant 5 : index
    %c0_72 = arith.constant 0 : index
    %92 = vector.load %arg15[%c5_71, %c0_72] : memref<82x128xf32, #tpu.memory_space<vmem>>, vector<4x128xf32>
    %93 = arith.truncf %92 : vector<4x128xf32> to vector<4x128xbf16>
    %c2_73 = arith.constant 2 : index
    %c7 = arith.constant 7 : index
    %c0_74 = arith.constant 0 : index
    %c0_75 = arith.constant 0 : index
    %94 = vector.load %arg7[%c2_73, %c7, %c0_74, %c0_75] : memref<3x9x128x128xbf16, #tpu.memory_space<vmem>>, vector<1x1x128x128xbf16>
    %95 = vector.shape_cast %94 : vector<1x1x128x128xbf16> to vector<128x128xbf16>
    %cst_76 = arith.constant dense<0.000000e+00> : vector<4x128xf32>
    %96 = tpu.matmul %93, %95, %cst_76 {dimension_numbers = #tpu.dot_dimension_numbers<[1], [0], [0], [1], [0, 0, 1, 1], [], []>} : vector<4x128xbf16>, vector<128x128xbf16>, vector<4x128xf32> -> vector<4x128xf32>
    %97 = arith.addf %91, %96 : vector<4x128xf32>
    %c6_77 = arith.constant 6 : index
    %c0_78 = arith.constant 0 : index
    %98 = vector.load %arg15[%c6_77, %c0_78] : memref<82x128xf32, #tpu.memory_space<vmem>>, vector<4x128xf32>
    %c0_i32_79 = arith.constant 0 : i32
    %99 = vector.broadcast %c0_i32_79 : i32 to vector<4x128xi32>
    %100 = arith.cmpi sle, %28, %99 : vector<4x128xi32>
    %cst_80 = arith.constant 0.000000e+00 : f32
    %101 = vector.broadcast %cst_80 : f32 to vector<4x128xf32>
    %102 = arith.select %100, %98, %101 : vector<4x128xi1>, vector<4x128xf32>
    %103 = arith.truncf %102 : vector<4x128xf32> to vector<4x128xbf16>
    %c2_81 = arith.constant 2 : index
    %c8 = arith.constant 8 : index
    %c0_82 = arith.constant 0 : index
    %c0_83 = arith.constant 0 : index
    %104 = vector.load %arg7[%c2_81, %c8, %c0_82, %c0_83] : memref<3x9x128x128xbf16, #tpu.memory_space<vmem>>, vector<1x1x128x128xbf16>
    %105 = vector.shape_cast %104 : vector<1x1x128x128xbf16> to vector<128x128xbf16>
    %cst_84 = arith.constant dense<0.000000e+00> : vector<4x128xf32>
    %106 = tpu.matmul %103, %105, %cst_84 {dimension_numbers = #tpu.dot_dimension_numbers<[1], [0], [0], [1], [0, 0, 1, 1], [], []>} : vector<4x128xbf16>, vector<128x128xbf16>, vector<4x128xf32> -> vector<4x128xf32>
    %107 = arith.addf %97, %106 : vector<4x128xf32>
    %c2_85 = arith.constant 2 : index
    %c0_86 = arith.constant 0 : index
    %108 = vector.load %arg9[%c2_85, %c0_86] : memref<3x128xf32, #tpu.memory_space<vmem>>, vector<1x128xf32>
    %109 = vector.broadcast %108 : vector<1x128xf32> to vector<4x128xf32>
    %110 = arith.addf %107, %109 : vector<4x128xf32>
    %c0_87 = arith.constant 0 : index
    %c0_88 = arith.constant 0 : index
    %c0_89 = arith.constant 0 : index
    %111 = vector.load %arg14[%c0_87, %c0_88, %c0_89] : memref<1x4x128xf32, #tpu.memory_space<vmem>>, vector<1x4x128xf32>
    %112 = vector.shape_cast %111 : vector<1x4x128xf32> to vector<4x128xf32>
    %113 = vector.shape_cast %110 : vector<4x128xf32> to vector<1x4x128xf32>
    tpu.vector_store %arg14[%c0_87, %c0_88, %c0_89], %113 {strides = array<i32>} : memref<1x4x128xf32, #tpu.memory_space<vmem>>, vector<1x4x128xf32>,
    %c0_90 = arith.constant 0 : index
    %c0_91 = arith.constant 0 : index
    %c0_92 = arith.constant 0 : index
    %114 = vector.load %arg2[%c0_90, %c0_91, %c0_92] : memref<1x16x256xbf16, #tpu.memory_space<vmem>>, vector<1x16x256xbf16>
    %115 = vector.shape_cast %114 : vector<1x16x256xbf16> to vector<16x256xbf16>
    %c0_93 = arith.constant 0 : index
    %c0_94 = arith.constant 0 : index
    %116 = vector.load %arg5[%c0_93, %c0_94] : memref<256x128xbf16, #tpu.memory_space<vmem>>, vector<256x128xbf16>
    %cst_95 = arith.constant dense<0.000000e+00> : vector<16x128xf32>
    %117 = tpu.matmul %115, %116, %cst_95 {dimension_numbers = #tpu.dot_dimension_numbers<[1], [0], [0], [1], [0, 0, 1, 1], [], []>} : vector<16x256xbf16>, vector<256x128xbf16>, vector<16x128xf32> -> vector<16x128xf32>
    %c1_96 = arith.constant 1 : index
    %c0_97 = arith.constant 0 : index
    %118 = vector.load %arg8[%c1_96, %c0_97] : memref<3x128xf32, #tpu.memory_space<vmem>>, vector<1x128xf32>
    %119 = vector.broadcast %118 : vector<1x128xf32> to vector<16x128xf32>
    %120 = arith.addf %117, %119 : vector<16x128xf32>
    %121 = arith.addf %120, %8 : vector<16x128xf32>
    %c0_98 = arith.constant 0 : index
    %c0_99 = arith.constant 0 : index
    %122 = vector.load %arg10[%c0_98, %c0_99] : memref<64x16xf32, #tpu.memory_space<vmem>>, vector<64x16xf32>
    %cst_100 = arith.constant dense<0.000000e+00> : vector<64x128xf32>
    %123 = tpu.matmul %122, %121, %cst_100 {dimension_numbers = #tpu.dot_dimension_numbers<[1], [0], [0], [1], [0, 0, 1, 1], [], []>} : vector<64x16xf32>, vector<16x128xf32>, vector<64x128xf32> -> vector<64x128xf32>
    %cst_101 = arith.constant 0.000000e+00 : f32
    %124 = vector.broadcast %cst_101 : f32 to vector<82x128xf32>
    %c0_102 = arith.constant 0 : index
    %c0_103 = arith.constant 0 : index
    %125 = vector.load %arg15[%c0_102, %c0_103] : memref<82x128xf32, #tpu.memory_space<vmem>>, vector<82x128xf32>
    tpu.vector_store %arg15[%c0_102, %c0_103], %124 {strides = array<i32>} : memref<82x128xf32, #tpu.memory_space<vmem>>, vector<82x128xf32>,
    %c5_104 = arith.constant 5 : index
    %c0_105 = arith.constant 0 : index
    %126 = vector.load %arg15[%c5_104, %c0_105] : memref<82x128xf32, #tpu.memory_space<vmem>>, vector<16x128xf32>
    tpu.vector_store %arg15[%c5_104, %c0_105], %121 {strides = array<i32>} : memref<82x128xf32, #tpu.memory_space<vmem>>, vector<16x128xf32>,
    %127 = tpu.iota {dimensions = array<i32: 0>} : vector<16x128xi32>
    %c4_i32 = arith.constant 4 : i32
    %c0_i32_106 = arith.constant 0 : i32
    %128 = arith.cmpi eq, %c4_i32, %c0_i32_106 : i32
    %c1_i32_107 = arith.constant 1 : i32
    %129 = arith.select %128, %c1_i32_107, %c4_i32 : i32
    %130 = vector.broadcast %129 : i32 to vector<16x128xi32>
    %131 = arith.remsi %127, %130 : vector<16x128xi32>
    %c0_i32_108 = arith.constant 0 : i32
    %132 = vector.broadcast %c0_i32_108 : i32 to vector<16x128xi32>
    %133 = arith.cmpi ne, %131, %132 : vector<16x128xi32>
    %c0_i32_109 = arith.constant 0 : i32
    %134 = vector.broadcast %c0_i32_109 : i32 to vector<16x128xi32>
    %135 = arith.cmpi slt, %131, %134 : vector<16x128xi32>
    %c0_i32_110 = arith.constant 0 : i32
    %136 = arith.cmpi slt, %129, %c0_i32_110 : i32
    %137 = vector.broadcast %136 : i1 to vector<16x128xi1>
    %138 = vector.broadcast %137 : vector<16x128xi1> to vector<16x128xi1>
    %139 = arith.xori %135, %138 : vector<16x128xi1>
    %140 = arith.andi %139, %133 : vector<16x128xi1>
    %141 = vector.broadcast %129 : i32 to vector<16x128xi32>
    %142 = arith.addi %131, %141 : vector<16x128xi32>
    %143 = arith.select %140, %142, %131 : vector<16x128xi1>, vector<16x128xi32>
    %cst_111 = arith.constant 0.000000e+00 : f32
    %144 = vector.broadcast %cst_111 : f32 to vector<16x128xf32>
    %c0_112 = arith.constant 0 : index
    %c0_113 = arith.constant 0 : index
    %145 = vector.load %arg15[%c0_112, %c0_113] : memref<82x128xf32, #tpu.memory_space<vmem>>, vector<16x128xf32>
    %c1_i32_114 = arith.constant 1 : i32
    %146 = vector.broadcast %c1_i32_114 : i32 to vector<16x128xi32>
    %147 = arith.cmpi sge, %143, %146 : vector<16x128xi32>
    %cst_115 = arith.constant 0.000000e+00 : f32
    %148 = vector.broadcast %cst_115 : f32 to vector<16x128xf32>
    %149 = arith.select %147, %145, %148 : vector<16x128xi1>, vector<16x128xf32>
    %150 = arith.truncf %149 : vector<16x128xf32> to vector<16x128xbf16>
    %c1_116 = arith.constant 1 : index
    %c0_117 = arith.constant 0 : index
    %c0_118 = arith.constant 0 : index
    %c0_119 = arith.constant 0 : index
    %151 = vector.load %arg7[%c1_116, %c0_117, %c0_118, %c0_119] : memref<3x9x128x128xbf16, #tpu.memory_space<vmem>>, vector<1x1x128x128xbf16>
    %152 = vector.shape_cast %151 : vector<1x1x128x128xbf16> to vector<128x128xbf16>
    %cst_120 = arith.constant dense<0.000000e+00> : vector<16x128xf32>
    %153 = tpu.matmul %150, %152, %cst_120 {dimension_numbers = #tpu.dot_dimension_numbers<[1], [0], [0], [1], [0, 0, 1, 1], [], []>} : vector<16x128xbf16>, vector<128x128xbf16>, vector<16x128xf32> -> vector<16x128xf32>
    %154 = arith.addf %144, %153 : vector<16x128xf32>
    %c1_121 = arith.constant 1 : index
    %c0_122 = arith.constant 0 : index
    %155 = vector.load %arg15[%c1_121, %c0_122] : memref<82x128xf32, #tpu.memory_space<vmem>>, vector<16x128xf32>
    %156 = arith.truncf %155 : vector<16x128xf32> to vector<16x128xbf16>
    %c1_123 = arith.constant 1 : index
    %c1_124 = arith.constant 1 : index
    %c0_125 = arith.constant 0 : index
    %c0_126 = arith.constant 0 : index
    %157 = vector.load %arg7[%c1_123, %c1_124, %c0_125, %c0_126] : memref<3x9x128x128xbf16, #tpu.memory_space<vmem>>, vector<1x1x128x128xbf16>
    %158 = vector.shape_cast %157 : vector<1x1x128x128xbf16> to vector<128x128xbf16>
    %cst_127 = arith.constant dense<0.000000e+00> : vector<16x128xf32>
    %159 = tpu.matmul %156, %158, %cst_127 {dimension_numbers = #tpu.dot_dimension_numbers<[1], [0], [0], [1], [0, 0, 1, 1], [], []>} : vector<16x128xbf16>, vector<128x128xbf16>, vector<16x128xf32> -> vector<16x128xf32>
    %160 = arith.addf %154, %159 : vector<16x128xf32>
    %c2_128 = arith.constant 2 : index
    %c0_129 = arith.constant 0 : index
    %161 = vector.load %arg15[%c2_128, %c0_129] : memref<82x128xf32, #tpu.memory_space<vmem>>, vector<16x128xf32>
    %c2_i32_130 = arith.constant 2 : i32
    %162 = vector.broadcast %c2_i32_130 : i32 to vector<16x128xi32>
    %163 = arith.cmpi sle, %143, %162 : vector<16x128xi32>
    %cst_131 = arith.constant 0.000000e+00 : f32
    %164 = vector.broadcast %cst_131 : f32 to vector<16x128xf32>
    %165 = arith.select %163, %161, %164 : vector<16x128xi1>, vector<16x128xf32>
    %166 = arith.truncf %165 : vector<16x128xf32> to vector<16x128xbf16>
    %c1_132 = arith.constant 1 : index
    %c2_133 = arith.constant 2 : index
    %c0_134 = arith.constant 0 : index
    %c0_135 = arith.constant 0 : index
    %167 = vector.load %arg7[%c1_132, %c2_133, %c0_134, %c0_135] : memref<3x9x128x128xbf16, #tpu.memory_space<vmem>>, vector<1x1x128x128xbf16>
    %168 = vector.shape_cast %167 : vector<1x1x128x128xbf16> to vector<128x128xbf16>
    %cst_136 = arith.constant dense<0.000000e+00> : vector<16x128xf32>
    %169 = tpu.matmul %166, %168, %cst_136 {dimension_numbers = #tpu.dot_dimension_numbers<[1], [0], [0], [1], [0, 0, 1, 1], [], []>} : vector<16x128xbf16>, vector<128x128xbf16>, vector<16x128xf32> -> vector<16x128xf32>
    %170 = arith.addf %160, %169 : vector<16x128xf32>
    %c4_137 = arith.constant 4 : index
    %c0_138 = arith.constant 0 : index
    %171 = vector.load %arg15[%c4_137, %c0_138] : memref<82x128xf32, #tpu.memory_space<vmem>>, vector<16x128xf32>
    %c1_i32_139 = arith.constant 1 : i32
    %172 = vector.broadcast %c1_i32_139 : i32 to vector<16x128xi32>
    %173 = arith.cmpi sge, %143, %172 : vector<16x128xi32>
    %cst_140 = arith.constant 0.000000e+00 : f32
    %174 = vector.broadcast %cst_140 : f32 to vector<16x128xf32>
    %175 = arith.select %173, %171, %174 : vector<16x128xi1>, vector<16x128xf32>
    %176 = arith.truncf %175 : vector<16x128xf32> to vector<16x128xbf16>
    %c1_141 = arith.constant 1 : index
    %c3_142 = arith.constant 3 : index
    %c0_143 = arith.constant 0 : index
    %c0_144 = arith.constant 0 : index
    %177 = vector.load %arg7[%c1_141, %c3_142, %c0_143, %c0_144] : memref<3x9x128x128xbf16, #tpu.memory_space<vmem>>, vector<1x1x128x128xbf16>
    %178 = vector.shape_cast %177 : vector<1x1x128x128xbf16> to vector<128x128xbf16>
    %cst_145 = arith.constant dense<0.000000e+00> : vector<16x128xf32>
    %179 = tpu.matmul %176, %178, %cst_145 {dimension_numbers = #tpu.dot_dimension_numbers<[1], [0], [0], [1], [0, 0, 1, 1], [], []>} : vector<16x128xbf16>, vector<128x128xbf16>, vector<16x128xf32> -> vector<16x128xf32>
    %180 = arith.addf %170, %179 : vector<16x128xf32>
    %c5_146 = arith.constant 5 : index
    %c0_147 = arith.constant 0 : index
    %181 = vector.load %arg15[%c5_146, %c0_147] : memref<82x128xf32, #tpu.memory_space<vmem>>, vector<16x128xf32>
    %182 = arith.truncf %181 : vector<16x128xf32> to vector<16x128xbf16>
    %c1_148 = arith.constant 1 : index
    %c4_149 = arith.constant 4 : index
    %c0_150 = arith.constant 0 : index
    %c0_151 = arith.constant 0 : index
    %183 = vector.load %arg7[%c1_148, %c4_149, %c0_150, %c0_151] : memref<3x9x128x128xbf16, #tpu.memory_space<vmem>>, vector<1x1x128x128xbf16>
    %184 = vector.shape_cast %183 : vector<1x1x128x128xbf16> to vector<128x128xbf16>
    %cst_152 = arith.constant dense<0.000000e+00> : vector<16x128xf32>
    %185 = tpu.matmul %182, %184, %cst_152 {dimension_numbers = #tpu.dot_dimension_numbers<[1], [0], [0], [1], [0, 0, 1, 1], [], []>} : vector<16x128xbf16>, vector<128x128xbf16>, vector<16x128xf32> -> vector<16x128xf32>
    %186 = arith.addf %180, %185 : vector<16x128xf32>
    %c6_153 = arith.constant 6 : index
    %c0_154 = arith.constant 0 : index
    %187 = vector.load %arg15[%c6_153, %c0_154] : memref<82x128xf32, #tpu.memory_space<vmem>>, vector<16x128xf32>
    %c2_i32_155 = arith.constant 2 : i32
    %188 = vector.broadcast %c2_i32_155 : i32 to vector<16x128xi32>
    %189 = arith.cmpi sle, %143, %188 : vector<16x128xi32>
    %cst_156 = arith.constant 0.000000e+00 : f32
    %190 = vector.broadcast %cst_156 : f32 to vector<16x128xf32>
    %191 = arith.select %189, %187, %190 : vector<16x128xi1>, vector<16x128xf32>
    %192 = arith.truncf %191 : vector<16x128xf32> to vector<16x128xbf16>
    %c1_157 = arith.constant 1 : index
    %c5_158 = arith.constant 5 : index
    %c0_159 = arith.constant 0 : index
    %c0_160 = arith.constant 0 : index
    %193 = vector.load %arg7[%c1_157, %c5_158, %c0_159, %c0_160] : memref<3x9x128x128xbf16, #tpu.memory_space<vmem>>, vector<1x1x128x128xbf16>
    %194 = vector.shape_cast %193 : vector<1x1x128x128xbf16> to vector<128x128xbf16>
    %cst_161 = arith.constant dense<0.000000e+00> : vector<16x128xf32>
    %195 = tpu.matmul %192, %194, %cst_161 {dimension_numbers = #tpu.dot_dimension_numbers<[1], [0], [0], [1], [0, 0, 1, 1], [], []>} : vector<16x128xbf16>, vector<128x128xbf16>, vector<16x128xf32> -> vector<16x128xf32>
    %196 = arith.addf %186, %195 : vector<16x128xf32>
    %c8_162 = arith.constant 8 : index
    %c0_163 = arith.constant 0 : index
    %197 = vector.load %arg15[%c8_162, %c0_163] : memref<82x128xf32, #tpu.memory_space<vmem>>, vector<16x128xf32>
    %c1_i32_164 = arith.constant 1 : i32
    %198 = vector.broadcast %c1_i32_164 : i32 to vector<16x128xi32>
    %199 = arith.cmpi sge, %143, %198 : vector<16x128xi32>
    %cst_165 = arith.constant 0.000000e+00 : f32
    %200 = vector.broadcast %cst_165 : f32 to vector<16x128xf32>
    %201 = arith.select %199, %197, %200 : vector<16x128xi1>, vector<16x128xf32>
    %202 = arith.truncf %201 : vector<16x128xf32> to vector<16x128xbf16>
    %c1_166 = arith.constant 1 : index
    %c6_167 = arith.constant 6 : index
    %c0_168 = arith.constant 0 : index
    %c0_169 = arith.constant 0 : index
    %203 = vector.load %arg7[%c1_166, %c6_167, %c0_168, %c0_169] : memref<3x9x128x128xbf16, #tpu.memory_space<vmem>>, vector<1x1x128x128xbf16>
    %204 = vector.shape_cast %203 : vector<1x1x128x128xbf16> to vector<128x128xbf16>
    %cst_170 = arith.constant dense<0.000000e+00> : vector<16x128xf32>
    %205 = tpu.matmul %202, %204, %cst_170 {dimension_numbers = #tpu.dot_dimension_numbers<[1], [0], [0], [1], [0, 0, 1, 1], [], []>} : vector<16x128xbf16>, vector<128x128xbf16>, vector<16x128xf32> -> vector<16x128xf32>
    %206 = arith.addf %196, %205 : vector<16x128xf32>
    %c9 = arith.constant 9 : index
    %c0_171 = arith.constant 0 : index
    %207 = vector.load %arg15[%c9, %c0_171] : memref<82x128xf32, #tpu.memory_space<vmem>>, vector<16x128xf32>
    %208 = arith.truncf %207 : vector<16x128xf32> to vector<16x128xbf16>
    %c1_172 = arith.constant 1 : index
    %c7_173 = arith.constant 7 : index
    %c0_174 = arith.constant 0 : index
    %c0_175 = arith.constant 0 : index
    %209 = vector.load %arg7[%c1_172, %c7_173, %c0_174, %c0_175] : memref<3x9x128x128xbf16, #tpu.memory_space<vmem>>, vector<1x1x128x128xbf16>
    %210 = vector.shape_cast %209 : vector<1x1x128x128xbf16> to vector<128x128xbf16>
    %cst_176 = arith.constant dense<0.000000e+00> : vector<16x128xf32>
    %211 = tpu.matmul %208, %210, %cst_176 {dimension_numbers = #tpu.dot_dimension_numbers<[1], [0], [0], [1], [0, 0, 1, 1], [], []>} : vector<16x128xbf16>, vector<128x128xbf16>, vector<16x128xf32> -> vector<16x128xf32>
    %212 = arith.addf %206, %211 : vector<16x128xf32>
    %c10 = arith.constant 10 : index
    %c0_177 = arith.constant 0 : index
    %213 = vector.load %arg15[%c10, %c0_177] : memref<82x128xf32, #tpu.memory_space<vmem>>, vector<16x128xf32>
    %c2_i32_178 = arith.constant 2 : i32
    %214 = vector.broadcast %c2_i32_178 : i32 to vector<16x128xi32>
    %215 = arith.cmpi sle, %143, %214 : vector<16x128xi32>
    %cst_179 = arith.constant 0.000000e+00 : f32
    %216 = vector.broadcast %cst_179 : f32 to vector<16x128xf32>
    %217 = arith.select %215, %213, %216 : vector<16x128xi1>, vector<16x128xf32>
    %218 = arith.truncf %217 : vector<16x128xf32> to vector<16x128xbf16>
    %c1_180 = arith.constant 1 : index
    %c8_181 = arith.constant 8 : index
    %c0_182 = arith.constant 0 : index
    %c0_183 = arith.constant 0 : index
    %219 = vector.load %arg7[%c1_180, %c8_181, %c0_182, %c0_183] : memref<3x9x128x128xbf16, #tpu.memory_space<vmem>>, vector<1x1x128x128xbf16>
    %220 = vector.shape_cast %219 : vector<1x1x128x128xbf16> to vector<128x128xbf16>
    %cst_184 = arith.constant dense<0.000000e+00> : vector<16x128xf32>
    %221 = tpu.matmul %218, %220, %cst_184 {dimension_numbers = #tpu.dot_dimension_numbers<[1], [0], [0], [1], [0, 0, 1, 1], [], []>} : vector<16x128xbf16>, vector<128x128xbf16>, vector<16x128xf32> -> vector<16x128xf32>
    %222 = arith.addf %212, %221 : vector<16x128xf32>
    %c1_185 = arith.constant 1 : index
    %c0_186 = arith.constant 0 : index
    %223 = vector.load %arg9[%c1_185, %c0_186] : memref<3x128xf32, #tpu.memory_space<vmem>>, vector<1x128xf32>
    %224 = vector.broadcast %223 : vector<1x128xf32> to vector<16x128xf32>
    %225 = arith.addf %222, %224 : vector<16x128xf32>
    %c0_187 = arith.constant 0 : index
    %c0_188 = arith.constant 0 : index
    %c0_189 = arith.constant 0 : index
    %226 = vector.load %arg13[%c0_187, %c0_188, %c0_189] : memref<1x16x128xf32, #tpu.memory_space<vmem>>, vector<1x16x128xf32>
    %227 = vector.shape_cast %226 : vector<1x16x128xf32> to vector<16x128xf32>
    %228 = vector.shape_cast %225 : vector<16x128xf32> to vector<1x16x128xf32>
    tpu.vector_store %arg13[%c0_187, %c0_188, %c0_189], %228 {strides = array<i32>} : memref<1x16x128xf32, #tpu.memory_space<vmem>>, vector<1x16x128xf32>,
    %c0_190 = arith.constant 0 : index
    %c0_191 = arith.constant 0 : index
    %c0_192 = arith.constant 0 : index
    %229 = vector.load %arg1[%c0_190, %c0_191, %c0_192] : memref<1x64x128xbf16, #tpu.memory_space<vmem>>, vector<1x64x128xbf16>
    %230 = vector.shape_cast %229 : vector<1x64x128xbf16> to vector<64x128xbf16>
    %c0_193 = arith.constant 0 : index
    %c0_194 = arith.constant 0 : index
    %231 = vector.load %arg4[%c0_193, %c0_194] : memref<128x128xbf16, #tpu.memory_space<vmem>>, vector<128x128xbf16>
    %cst_195 = arith.constant dense<0.000000e+00> : vector<64x128xf32>
    %232 = tpu.matmul %230, %231, %cst_195 {dimension_numbers = #tpu.dot_dimension_numbers<[1], [0], [0], [1], [0, 0, 1, 1], [], []>} : vector<64x128xbf16>, vector<128x128xbf16>, vector<64x128xf32> -> vector<64x128xf32>
    %c0_196 = arith.constant 0 : index
    %c0_197 = arith.constant 0 : index
    %233 = vector.load %arg8[%c0_196, %c0_197] : memref<3x128xf32, #tpu.memory_space<vmem>>, vector<1x128xf32>
    %234 = vector.broadcast %233 : vector<1x128xf32> to vector<64x128xf32>
    %235 = arith.addf %232, %234 : vector<64x128xf32>
    %236 = arith.addf %235, %123 : vector<64x128xf32>
    %cst_198 = arith.constant 0.000000e+00 : f32
    %237 = vector.broadcast %cst_198 : f32 to vector<82x128xf32>
    %c0_199 = arith.constant 0 : index
    %c0_200 = arith.constant 0 : index
    %238 = vector.load %arg15[%c0_199, %c0_200] : memref<82x128xf32, #tpu.memory_space<vmem>>, vector<82x128xf32>
    tpu.vector_store %arg15[%c0_199, %c0_200], %237 {strides = array<i32>} : memref<82x128xf32, #tpu.memory_space<vmem>>, vector<82x128xf32>,
    %c9_201 = arith.constant 9 : index
    %c0_202 = arith.constant 0 : index
    %239 = vector.load %arg15[%c9_201, %c0_202] : memref<82x128xf32, #tpu.memory_space<vmem>>, vector<64x128xf32>
    tpu.vector_store %arg15[%c9_201, %c0_202], %236 {strides = array<i32>} : memref<82x128xf32, #tpu.memory_space<vmem>>, vector<64x128xf32>,
    %240 = tpu.iota {dimensions = array<i32: 0>} : vector<64x128xi32>
    %c8_i32 = arith.constant 8 : i32
    %c0_i32_203 = arith.constant 0 : i32
    %241 = arith.cmpi eq, %c8_i32, %c0_i32_203 : i32
    %c1_i32_204 = arith.constant 1 : i32
    %242 = arith.select %241, %c1_i32_204, %c8_i32 : i32
    %243 = vector.broadcast %242 : i32 to vector<64x128xi32>
    %244 = arith.remsi %240, %243 : vector<64x128xi32>
    %c0_i32_205 = arith.constant 0 : i32
    %245 = vector.broadcast %c0_i32_205 : i32 to vector<64x128xi32>
    %246 = arith.cmpi ne, %244, %245 : vector<64x128xi32>
    %c0_i32_206 = arith.constant 0 : i32
    %247 = vector.broadcast %c0_i32_206 : i32 to vector<64x128xi32>
    %248 = arith.cmpi slt, %244, %247 : vector<64x128xi32>
    %c0_i32_207 = arith.constant 0 : i32
    %249 = arith.cmpi slt, %242, %c0_i32_207 : i32
    %250 = vector.broadcast %249 : i1 to vector<64x128xi1>
    %251 = vector.broadcast %250 : vector<64x128xi1> to vector<64x128xi1>
    %252 = arith.xori %248, %251 : vector<64x128xi1>
    %253 = arith.andi %252, %246 : vector<64x128xi1>
    %254 = vector.broadcast %242 : i32 to vector<64x128xi32>
    %255 = arith.addi %244, %254 : vector<64x128xi32>
    %256 = arith.select %253, %255, %244 : vector<64x128xi1>, vector<64x128xi32>
    %cst_208 = arith.constant 0.000000e+00 : f32
    %257 = vector.broadcast %cst_208 : f32 to vector<64x128xf32>
    %c0_209 = arith.constant 0 : index
    %c0_210 = arith.constant 0 : index
    %258 = vector.load %arg15[%c0_209, %c0_210] : memref<82x128xf32, #tpu.memory_space<vmem>>, vector<64x128xf32>
    %c1_i32_211 = arith.constant 1 : i32
    %259 = vector.broadcast %c1_i32_211 : i32 to vector<64x128xi32>
    %260 = arith.cmpi sge, %256, %259 : vector<64x128xi32>
    %cst_212 = arith.constant 0.000000e+00 : f32
    %261 = vector.broadcast %cst_212 : f32 to vector<64x128xf32>
    %262 = arith.select %260, %258, %261 : vector<64x128xi1>, vector<64x128xf32>
    %263 = arith.truncf %262 : vector<64x128xf32> to vector<64x128xbf16>
    %c0_213 = arith.constant 0 : index
    %c0_214 = arith.constant 0 : index
    %c0_215 = arith.constant 0 : index
    %c0_216 = arith.constant 0 : index
    %264 = vector.load %arg7[%c0_213, %c0_214, %c0_215, %c0_216] : memref<3x9x128x128xbf16, #tpu.memory_space<vmem>>, vector<1x1x128x128xbf16>
    %265 = vector.shape_cast %264 : vector<1x1x128x128xbf16> to vector<128x128xbf16>
    %cst_217 = arith.constant dense<0.000000e+00> : vector<64x128xf32>
    %266 = tpu.matmul %263, %265, %cst_217 {dimension_numbers = #tpu.dot_dimension_numbers<[1], [0], [0], [1], [0, 0, 1, 1], [], []>} : vector<64x128xbf16>, vector<128x128xbf16>, vector<64x128xf32> -> vector<64x128xf32>
    %267 = arith.addf %257, %266 : vector<64x128xf32>
    %c1_218 = arith.constant 1 : index
    %c0_219 = arith.constant 0 : index
    %268 = vector.load %arg15[%c1_218, %c0_219] : memref<82x128xf32, #tpu.memory_space<vmem>>, vector<64x128xf32>
    %269 = arith.truncf %268 : vector<64x128xf32> to vector<64x128xbf16>
    %c0_220 = arith.constant 0 : index
    %c1_221 = arith.constant 1 : index
    %c0_222 = arith.constant 0 : index
    %c0_223 = arith.constant 0 : index
    %270 = vector.load %arg7[%c0_220, %c1_221, %c0_222, %c0_223] : memref<3x9x128x128xbf16, #tpu.memory_space<vmem>>, vector<1x1x128x128xbf16>
    %271 = vector.shape_cast %270 : vector<1x1x128x128xbf16> to vector<128x128xbf16>
    %cst_224 = arith.constant dense<0.000000e+00> : vector<64x128xf32>
    %272 = tpu.matmul %269, %271, %cst_224 {dimension_numbers = #tpu.dot_dimension_numbers<[1], [0], [0], [1], [0, 0, 1, 1], [], []>} : vector<64x128xbf16>, vector<128x128xbf16>, vector<64x128xf32> -> vector<64x128xf32>
    %273 = arith.addf %267, %272 : vector<64x128xf32>
    %c2_225 = arith.constant 2 : index
    %c0_226 = arith.constant 0 : index
    %274 = vector.load %arg15[%c2_225, %c0_226] : memref<82x128xf32, #tpu.memory_space<vmem>>, vector<64x128xf32>
    %c6_i32 = arith.constant 6 : i32
    %275 = vector.broadcast %c6_i32 : i32 to vector<64x128xi32>
    %276 = arith.cmpi sle, %256, %275 : vector<64x128xi32>
    %cst_227 = arith.constant 0.000000e+00 : f32
    %277 = vector.broadcast %cst_227 : f32 to vector<64x128xf32>
    %278 = arith.select %276, %274, %277 : vector<64x128xi1>, vector<64x128xf32>
    %279 = arith.truncf %278 : vector<64x128xf32> to vector<64x128xbf16>
    %c0_228 = arith.constant 0 : index
    %c2_229 = arith.constant 2 : index
    %c0_230 = arith.constant 0 : index
    %c0_231 = arith.constant 0 : index
    %280 = vector.load %arg7[%c0_228, %c2_229, %c0_230, %c0_231] : memref<3x9x128x128xbf16, #tpu.memory_space<vmem>>, vector<1x1x128x128xbf16>
    %281 = vector.shape_cast %280 : vector<1x1x128x128xbf16> to vector<128x128xbf16>
    %cst_232 = arith.constant dense<0.000000e+00> : vector<64x128xf32>
    %282 = tpu.matmul %279, %281, %cst_232 {dimension_numbers = #tpu.dot_dimension_numbers<[1], [0], [0], [1], [0, 0, 1, 1], [], []>} : vector<64x128xbf16>, vector<128x128xbf16>, vector<64x128xf32> -> vector<64x128xf32>
    %283 = arith.addf %273, %282 : vector<64x128xf32>
    %c8_233 = arith.constant 8 : index
    %c0_234 = arith.constant 0 : index
    %284 = vector.load %arg15[%c8_233, %c0_234] : memref<82x128xf32, #tpu.memory_space<vmem>>, vector<64x128xf32>
    %c1_i32_235 = arith.constant 1 : i32
    %285 = vector.broadcast %c1_i32_235 : i32 to vector<64x128xi32>
    %286 = arith.cmpi sge, %256, %285 : vector<64x128xi32>
    %cst_236 = arith.constant 0.000000e+00 : f32
    %287 = vector.broadcast %cst_236 : f32 to vector<64x128xf32>
    %288 = arith.select %286, %284, %287 : vector<64x128xi1>, vector<64x128xf32>
    %289 = arith.truncf %288 : vector<64x128xf32> to vector<64x128xbf16>
    %c0_237 = arith.constant 0 : index
    %c3_238 = arith.constant 3 : index
    %c0_239 = arith.constant 0 : index
    %c0_240 = arith.constant 0 : index
    %290 = vector.load %arg7[%c0_237, %c3_238, %c0_239, %c0_240] : memref<3x9x128x128xbf16, #tpu.memory_space<vmem>>, vector<1x1x128x128xbf16>
    %291 = vector.shape_cast %290 : vector<1x1x128x128xbf16> to vector<128x128xbf16>
    %cst_241 = arith.constant dense<0.000000e+00> : vector<64x128xf32>
    %292 = tpu.matmul %289, %291, %cst_241 {dimension_numbers = #tpu.dot_dimension_numbers<[1], [0], [0], [1], [0, 0, 1, 1], [], []>} : vector<64x128xbf16>, vector<128x128xbf16>, vector<64x128xf32> -> vector<64x128xf32>
    %293 = arith.addf %283, %292 : vector<64x128xf32>
    %c9_242 = arith.constant 9 : index
    %c0_243 = arith.constant 0 : index
    %294 = vector.load %arg15[%c9_242, %c0_243] : memref<82x128xf32, #tpu.memory_space<vmem>>, vector<64x128xf32>
    %295 = arith.truncf %294 : vector<64x128xf32> to vector<64x128xbf16>
    %c0_244 = arith.constant 0 : index
    %c4_245 = arith.constant 4 : index
    %c0_246 = arith.constant 0 : index
    %c0_247 = arith.constant 0 : index
    %296 = vector.load %arg7[%c0_244, %c4_245, %c0_246, %c0_247] : memref<3x9x128x128xbf16, #tpu.memory_space<vmem>>, vector<1x1x128x128xbf16>
    %297 = vector.shape_cast %296 : vector<1x1x128x128xbf16> to vector<128x128xbf16>
    %cst_248 = arith.constant dense<0.000000e+00> : vector<64x128xf32>
    %298 = tpu.matmul %295, %297, %cst_248 {dimension_numbers = #tpu.dot_dimension_numbers<[1], [0], [0], [1], [0, 0, 1, 1], [], []>} : vector<64x128xbf16>, vector<128x128xbf16>, vector<64x128xf32> -> vector<64x128xf32>
    %299 = arith.addf %293, %298 : vector<64x128xf32>
    %c10_249 = arith.constant 10 : index
    %c0_250 = arith.constant 0 : index
    %300 = vector.load %arg15[%c10_249, %c0_250] : memref<82x128xf32, #tpu.memory_space<vmem>>, vector<64x128xf32>
    %c6_i32_251 = arith.constant 6 : i32
    %301 = vector.broadcast %c6_i32_251 : i32 to vector<64x128xi32>
    %302 = arith.cmpi sle, %256, %301 : vector<64x128xi32>
    %cst_252 = arith.constant 0.000000e+00 : f32
    %303 = vector.broadcast %cst_252 : f32 to vector<64x128xf32>
    %304 = arith.select %302, %300, %303 : vector<64x128xi1>, vector<64x128xf32>
    %305 = arith.truncf %304 : vector<64x128xf32> to vector<64x128xbf16>
    %c0_253 = arith.constant 0 : index
    %c5_254 = arith.constant 5 : index
    %c0_255 = arith.constant 0 : index
    %c0_256 = arith.constant 0 : index
    %306 = vector.load %arg7[%c0_253, %c5_254, %c0_255, %c0_256] : memref<3x9x128x128xbf16, #tpu.memory_space<vmem>>, vector<1x1x128x128xbf16>
    %307 = vector.shape_cast %306 : vector<1x1x128x128xbf16> to vector<128x128xbf16>
    %cst_257 = arith.constant dense<0.000000e+00> : vector<64x128xf32>
    %308 = tpu.matmul %305, %307, %cst_257 {dimension_numbers = #tpu.dot_dimension_numbers<[1], [0], [0], [1], [0, 0, 1, 1], [], []>} : vector<64x128xbf16>, vector<128x128xbf16>, vector<64x128xf32> -> vector<64x128xf32>
    %309 = arith.addf %299, %308 : vector<64x128xf32>
    %c16 = arith.constant 16 : index
    %c0_258 = arith.constant 0 : index
    %310 = vector.load %arg15[%c16, %c0_258] : memref<82x128xf32, #tpu.memory_space<vmem>>, vector<64x128xf32>
    %c1_i32_259 = arith.constant 1 : i32
    %311 = vector.broadcast %c1_i32_259 : i32 to vector<64x128xi32>
    %312 = arith.cmpi sge, %256, %311 : vector<64x128xi32>
    %cst_260 = arith.constant 0.000000e+00 : f32
    %313 = vector.broadcast %cst_260 : f32 to vector<64x128xf32>
    %314 = arith.select %312, %310, %313 : vector<64x128xi1>, vector<64x128xf32>
    %315 = arith.truncf %314 : vector<64x128xf32> to vector<64x128xbf16>
    %c0_261 = arith.constant 0 : index
    %c6_262 = arith.constant 6 : index
    %c0_263 = arith.constant 0 : index
    %c0_264 = arith.constant 0 : index
    %316 = vector.load %arg7[%c0_261, %c6_262, %c0_263, %c0_264] : memref<3x9x128x128xbf16, #tpu.memory_space<vmem>>, vector<1x1x128x128xbf16>
    %317 = vector.shape_cast %316 : vector<1x1x128x128xbf16> to vector<128x128xbf16>
    %cst_265 = arith.constant dense<0.000000e+00> : vector<64x128xf32>
    %318 = tpu.matmul %315, %317, %cst_265 {dimension_numbers = #tpu.dot_dimension_numbers<[1], [0], [0], [1], [0, 0, 1, 1], [], []>} : vector<64x128xbf16>, vector<128x128xbf16>, vector<64x128xf32> -> vector<64x128xf32>
    %319 = arith.addf %309, %318 : vector<64x128xf32>
    %c17 = arith.constant 17 : index
    %c0_266 = arith.constant 0 : index
    %320 = vector.load %arg15[%c17, %c0_266] : memref<82x128xf32, #tpu.memory_space<vmem>>, vector<64x128xf32>
    %321 = arith.truncf %320 : vector<64x128xf32> to vector<64x128xbf16>
    %c0_267 = arith.constant 0 : index
    %c7_268 = arith.constant 7 : index
    %c0_269 = arith.constant 0 : index
    %c0_270 = arith.constant 0 : index
    %322 = vector.load %arg7[%c0_267, %c7_268, %c0_269, %c0_270] : memref<3x9x128x128xbf16, #tpu.memory_space<vmem>>, vector<1x1x128x128xbf16>
    %323 = vector.shape_cast %322 : vector<1x1x128x128xbf16> to vector<128x128xbf16>
    %cst_271 = arith.constant dense<0.000000e+00> : vector<64x128xf32>
    %324 = tpu.matmul %321, %323, %cst_271 {dimension_numbers = #tpu.dot_dimension_numbers<[1], [0], [0], [1], [0, 0, 1, 1], [], []>} : vector<64x128xbf16>, vector<128x128xbf16>, vector<64x128xf32> -> vector<64x128xf32>
    %325 = arith.addf %319, %324 : vector<64x128xf32>
    %c18 = arith.constant 18 : index
    %c0_272 = arith.constant 0 : index
    %326 = vector.load %arg15[%c18, %c0_272] : memref<82x128xf32, #tpu.memory_space<vmem>>, vector<64x128xf32>
    %c6_i32_273 = arith.constant 6 : i32
    %327 = vector.broadcast %c6_i32_273 : i32 to vector<64x128xi32>
    %328 = arith.cmpi sle, %256, %327 : vector<64x128xi32>
    %cst_274 = arith.constant 0.000000e+00 : f32
    %329 = vector.broadcast %cst_274 : f32 to vector<64x128xf32>
    %330 = arith.select %328, %326, %329 : vector<64x128xi1>, vector<64x128xf32>
    %331 = arith.truncf %330 : vector<64x128xf32> to vector<64x128xbf16>
    %c0_275 = arith.constant 0 : index
    %c8_276 = arith.constant 8 : index
    %c0_277 = arith.constant 0 : index
    %c0_278 = arith.constant 0 : index
    %332 = vector.load %arg7[%c0_275, %c8_276, %c0_277, %c0_278] : memref<3x9x128x128xbf16, #tpu.memory_space<vmem>>, vector<1x1x128x128xbf16>
    %333 = vector.shape_cast %332 : vector<1x1x128x128xbf16> to vector<128x128xbf16>
    %cst_279 = arith.constant dense<0.000000e+00> : vector<64x128xf32>
    %334 = tpu.matmul %331, %333, %cst_279 {dimension_numbers = #tpu.dot_dimension_numbers<[1], [0], [0], [1], [0, 0, 1, 1], [], []>} : vector<64x128xbf16>, vector<128x128xbf16>, vector<64x128xf32> -> vector<64x128xf32>
    %335 = arith.addf %325, %334 : vector<64x128xf32>
    %c0_280 = arith.constant 0 : index
    %c0_281 = arith.constant 0 : index
    %336 = vector.load %arg9[%c0_280, %c0_281] : memref<3x128xf32, #tpu.memory_space<vmem>>, vector<1x128xf32>
    %337 = vector.broadcast %336 : vector<1x128xf32> to vector<64x128xf32>
    %338 = arith.addf %335, %337 : vector<64x128xf32>
    %c0_282 = arith.constant 0 : index
    %c0_283 = arith.constant 0 : index
    %c0_284 = arith.constant 0 : index
    %339 = vector.load %arg12[%c0_282, %c0_283, %c0_284] : memref<1x64x128xf32, #tpu.memory_space<vmem>>, vector<1x64x128xf32>
    %340 = vector.shape_cast %339 : vector<1x64x128xf32> to vector<64x128xf32>
    %341 = vector.shape_cast %338 : vector<64x128xf32> to vector<1x64x128xf32>
    tpu.vector_store %arg12[%c0_282, %c0_283, %c0_284], %341 {strides = array<i32>} : memref<1x64x128xf32, #tpu.memory_space<vmem>>, vector<1x64x128xf32>,
    return
  }
  func.func @transform_0(%arg0: i32) -> (i32, i32, i32) {
    %c0_i32 = arith.constant 0 : i32
    %c0_i32_0 = arith.constant 0 : i32
    %c0_i32_1 = arith.constant 0 : i32
    return %arg0, %c0_i32, %c0_i32_0 : i32, i32, i32
  }
  func.func @transform_1(%arg0: i32) -> (i32, i32, i32) {
    %c0_i32 = arith.constant 0 : i32
    %c0_i32_0 = arith.constant 0 : i32
    %c0_i32_1 = arith.constant 0 : i32
    return %arg0, %c0_i32, %c0_i32_0 : i32, i32, i32
  }
  func.func @transform_2(%arg0: i32) -> (i32, i32, i32) {
    %c0_i32 = arith.constant 0 : i32
    %c0_i32_0 = arith.constant 0 : i32
    %c0_i32_1 = arith.constant 0 : i32
    return %arg0, %c0_i32, %c0_i32_0 : i32, i32, i32
  }
  func.func @transform_3(%arg0: i32) -> (i32, i32) {
    %c0_i32 = arith.constant 0 : i32
    %c0_i32_0 = arith.constant 0 : i32
    %c0_i32_1 = arith.constant 0 : i32
    return %c0_i32, %c0_i32_0 : i32, i32
  }
  func.func @transform_4(%arg0: i32) -> (i32, i32) {
    %c0_i32 = arith.constant 0 : i32
    %c0_i32_0 = arith.constant 0 : i32
    %c0_i32_1 = arith.constant 0 : i32
    return %c0_i32, %c0_i32_0 : i32, i32
  }
  func.func @transform_5(%arg0: i32) -> (i32, i32) {
    %c0_i32 = arith.constant 0 : i32
    %c0_i32_0 = arith.constant 0 : i32
    %c0_i32_1 = arith.constant 0 : i32
    return %c0_i32, %c0_i32_0 : i32, i32
  }
  func.func @transform_6(%arg0: i32) -> (i32, i32, i32, i32) {
    %c0_i32 = arith.constant 0 : i32
    %c0_i32_0 = arith.constant 0 : i32
    %c0_i32_1 = arith.constant 0 : i32
    %c0_i32_2 = arith.constant 0 : i32
    %c0_i32_3 = arith.constant 0 : i32
    return %c0_i32, %c0_i32_0, %c0_i32_1, %c0_i32_2 : i32, i32, i32, i32
  }
  func.func @transform_7(%arg0: i32) -> (i32, i32) {
    %c0_i32 = arith.constant 0 : i32
    %c0_i32_0 = arith.constant 0 : i32
    %c0_i32_1 = arith.constant 0 : i32
    return %c0_i32, %c0_i32_0 : i32, i32
  }
  func.func @transform_8(%arg0: i32) -> (i32, i32) {
    %c0_i32 = arith.constant 0 : i32
    %c0_i32_0 = arith.constant 0 : i32
    %c0_i32_1 = arith.constant 0 : i32
    return %c0_i32, %c0_i32_0 : i32, i32
  }
  func.func @transform_9(%arg0: i32) -> (i32, i32) {
    %c0_i32 = arith.constant 0 : i32
    %c0_i32_0 = arith.constant 0 : i32
    %c0_i32_1 = arith.constant 0 : i32
    return %c0_i32, %c0_i32_0 : i32, i32
  }
  func.func @transform_10(%arg0: i32) -> (i32, i32) {
    %c0_i32 = arith.constant 0 : i32
    %c0_i32_0 = arith.constant 0 : i32
    %c0_i32_1 = arith.constant 0 : i32
    return %c0_i32, %c0_i32_0 : i32, i32
  }
  func.func @transform_11(%arg0: i32) -> (i32, i32, i32) {
    %c0_i32 = arith.constant 0 : i32
    %c0_i32_0 = arith.constant 0 : i32
    %c0_i32_1 = arith.constant 0 : i32
    return %arg0, %c0_i32, %c0_i32_0 : i32, i32, i32
  }
  func.func @transform_12(%arg0: i32) -> (i32, i32, i32) {
    %c0_i32 = arith.constant 0 : i32
    %c0_i32_0 = arith.constant 0 : i32
    %c0_i32_1 = arith.constant 0 : i32
    return %arg0, %c0_i32, %c0_i32_0 : i32, i32, i32
  }
  func.func @transform_13(%arg0: i32) -> (i32, i32, i32) {
    %c0_i32 = arith.constant 0 : i32
    %c0_i32_0 = arith.constant 0 : i32
    %c0_i32_1 = arith.constant 0 : i32
    return %arg0, %c0_i32, %c0_i32_0 : i32, i32, i32
  }
}

</mosaic_0001>

<bundles_post_ra>
// kernel: detector_backbone_with_fpn.1
= control target key start
LH: loop header
LB: loop body
LE: loop exit
PB: predicated region body
PF: predicated region fallthrough
CT: control target
= control target key end

     0   :  { %s9313_s0 = inlined_call_operand.vmem [shape: bf16[2,64,128], index: 0, kind: input, shape index: {}]   ;;  %s9314_s1 = inlined_call_operand.vmem [shape: bf16[2,16,256], index: 1, kind: input, shape index: {}]   ;;  %s9315_s2 = inlined_call_operand.vmem [shape: bf16[2,4,512], index: 2, kind: input, shape index: {}]   ;;  %s9316_s3 = inlined_call_operand.vmem [shape: bf16[128,128], index: 3, kind: input, shape index: {}]   ;;  %s9317_s4 = inlined_call_operand.vmem [shape: bf16[256,128], index: 4, kind: input, shape index: {}]   ;;  %s9318_s5 = inlined_call_operand.vmem [shape: bf16[512,128], index: 5, kind: input, shape index: {}]   ;;  %s9319_s6 = inlined_call_operand.vmem [shape: bf16[3,9,128,128], index: 6, kind: input, shape index: {}]   ;;  %s9320_s7 = inlined_call_operand.vmem [shape: f32[3,128], index: 7, kind: input, shape index: {}]   ;;  %s9321_s8 = inlined_call_operand.vmem [shape: f32[3,128], index: 8, kind: input, shape index: {}]   ;;  %s9322_s9 = inlined_call_operand.vmem [shape: f32[64,16], index: 9, kind: input, shape index: {}]   ;;  %s9323_s10 = inlined_call_operand.vmem [shape: f32[16,4], index: 10, kind: input, shape index: {}]   ;;  %s9324_s11 = inlined_call_operand.vmem [shape: f32[2,64,128], index: 11, kind: output, shape index: {0}]   ;;  %s9325_s12 = inlined_call_operand.hbm [shape: f32[2,16,128], index: 12, kind: output, shape index: {1}]   ;;  %s9326_s13 = inlined_call_operand.hbm [shape: f32[2,4,128], index: 13, kind: output, shape index: {2}]  }
   0x1   :  { %9330 = sst [smem:[#allocation12_spill]] %s9313_s0 }
   0x2   :  { %9331 = sst [smem:[#allocation13_spill]] %s9314_s1 }
   0x3   :  { %9332 = sst [smem:[#allocation14_spill]] %s9315_s2 }
   0x4   :  { %9333 = sst [smem:[#allocation15_spill]] %s9316_s3 }
   0x5   :  { %9334 = sst [smem:[#allocation16_spill]] %s9317_s4 }
   0x6   :  { %9335 = sst [smem:[#allocation17_spill]] %s9318_s5 }
   0x7   :  { %9336 = sst [smem:[#allocation18_spill]] %s9319_s6 }
   0x8   :  { %19 = vsyncpa [#allocation4], 0 }
   0x9   :  { %21 = vsyncpa [#allocation4 + $0x1], 0 }
   0xa   :  { %22 = vsyncpa [#allocation6], 0 }
   0xb   :  { %24 = vsyncpa [#allocation6 + $0x1], 0  ;;  %s7642_s25 = smov 0   ;;  %s7644_s26 = smov 0  }
   0xc   :  { %s7646_s27 = smov 0   ;;  %s7648_s28 = smov 0  }
   0xd LB: > { %9337 = sst [smem:[#allocation9_spill]] %s7559_s27  ;;  %s7663_s29 = sadd.s32 4294967295, %s7563_s28   ;;  %s7563_s28 = sphi %s7648_s28, %s9374_s28   ;;  %s7559_s27 = sphi %s7646_s27, %s9379_s27   ;;  %s7555_s26 = sphi %s7644_s26, %s9378_s26   ;;  %s7551_s25 = sphi %s7642_s25, %s9377_s25  }
   0xe   : > { %s5244_s30 = sadd.s32 4294967294, %s7563_s28   ;;  %s7667_s14 = sadd.s32 1, %s7563_s28  }
   0xf   : > { %9338 = sst [smem:[#allocation10_spill]] %s7667_s14  ;;  %s309_s15 = sadd.s32 1, %s7559_s27 }
  0x10   : > { %s306_s16 = ssub.s32 %s7563_s28, %s7667_s14  ;;  %p319_p0 = scmp.ne.s32.totalorder %s7559_s27, %s7555_s26 }
  0x11   : > { %p307_p1 = scmp.eq.s32.totalorder %s306_s16, 0  ;;  %p320_p2 = scmp.eq.s32.totalorder %s7663_s29, 1 }
  0x12   : > { %p325_p3 = scmp.ne.s32.totalorder %s7555_s26, %s7551_s25  ;;  %p326_p4 = scmp.eq.s32.totalorder %s5244_s30, 1 }
  0x13   : > { %s7678_s17 = scalar_select %p307_p1, %s7559_s27, %s309_s15  }
  0x14   : > { %p7680_p5 = por %p320_p2, %p319_p0  ;;  %p7684_p6 = por %p326_p4, %p325_p3 }
  0x15   : > { %9339 = sst [smem:[#allocation11_spill]] %s7678_s17  ;;  %p5247_p7 = scmp.ge.s32.totalorder %s7563_s28, 1 }
  0x16   : > { %p418_p8 = scmp.lt.s32.totalorder %s7563_s28, 3 }
  0x18   : > { %p419_p9 = pnand %p5247_p7, %p418_p8 }
  0x19   : > { %s9342_s5 = sld [smem:[#allocation17_spill]] (!%p419_p9)  ;;  %p482_p10 = scmp.lt.s32.totalorder (!%p419_p9), %s7663_s29, 1  ;;  %v578_v9 = vlaneseq (!%p419_p9)  ;;  %v7565_v13 = vmov (!%p419_p9), 1983009808   ;;  %v7566_v45 = vmov (!%p419_p9), 0.0   ;;  %v867_v52 = vld [vmem:[%s9323_s10] sm:$0xff] (!%p419_p9) }
  0x1a   : > { %422 = sbr.rel (%p419_p9) target bundleno = 1445 (0x5a5), region = 64  ;;  %s9343_s2 = sld [smem:[#allocation14_spill]] (!%p419_p9)  ;;  %v576_v14 = vunpack.c.l.s4 (!%p419_p9), %v7565_v13  ;;  %6595 = vmatprep.subr.bf16.mxu0 (!%p419_p9), %v7566_v45  ;;  %955 = vst [vmem:[#allocation2] sm:$0xff] (!%p419_p9), %v7566_v45  ;;  %956 = vst [vmem:[#allocation2 + $0x8] sm:$0xff] (!%p419_p9), %v7566_v45  ;;  %vm869_vm0 = vcmask (!%p419_p9), 31744   ;;  %vm7567_vm1 = vmmov (!%p419_p9), 0  }
  0x1b   : > { %v7728_v12 = vshrl.u32 (!%p419_p9), %v578_v9, 7  ;;  %s9344_s6 = sld [smem:[#allocation18_spill]] (!%p419_p9)  ;;  %965 = vst [vmem:[#allocation2 + $0x50] sm:$0x3] (!%p419_p9), %v7566_v45  ;;  %2292 = vst [vmem:[#allocation2 + $0x10] sm:$0xff] (!%p419_p9), %v7566_v45  ;;  %s9345_s0 = sld [smem:[#allocation12_spill]] (!%p419_p9)  ;;  %6611 = vmatprep.mubr.msk.bf16.mxu0 (!%p419_p9), %vm7567_vm1, %v7566_v45 }
  0x1c   : > { %v577_v17 = vunpack.c.0.s8 (!%p419_p9), %v576_v14  ;;  %2293 = vst [vmem:[#allocation2 + $0x18] sm:$0xff] (!%p419_p9), %v7566_v45  ;;  %3526 = vst [vmem:[#allocation2 + $0x20] sm:$0xff] (!%p419_p9), %v7566_v45  ;;  %s9346_s4 = sld [smem:[#allocation16_spill]] (!%p419_p9)  ;;  %s9347_s1 = sld [smem:[#allocation13_spill]] (!%p419_p9)  ;;  %v5258_v60 = vld [vmem:[%s9320_s7 + $0x2] ss:$0 sm:$0xff] (!%p419_p9) }
  0x1d   : > { %3527 = vst [vmem:[#allocation2 + $0x28] sm:$0xff] (!%p419_p9), %v7566_v45  ;;  %3528 = vst [vmem:[#allocation2 + $0x30] sm:$0xff] (!%p419_p9), %v7566_v45  ;;  %vm876_vm2 = vcmask (!%p419_p9), 1043456   ;;  %vm2160_vm7 = vcmask (!%p419_p9), 130048   ;;  %s9356_s3 = sld [smem:[#allocation15_spill]] (!%p419_p9)  ;;  %s6088_s17 = sshll.u32 (!%p419_p9), %s7663_s29, 8 }
  0x1e   : > { %v580_v19 = vsub.s32 (!%p419_p9), %v577_v17, %v7728_v12  ;;  %3529 = vst [vmem:[#allocation2 + $0x38] sm:$0xff] (!%p419_p9), %v7566_v45  ;;  %3530 = vst [vmem:[#allocation2 + $0x40] sm:$0xff] (!%p419_p9), %v7566_v45 }
  0x1f   : > { %v7188_v0 = vld [vmem:[%s9342_s5 + $0x40] sm:$0xff] (!%p419_p9)   ;;  %v7190_v2 = vld [vmem:[%s9342_s5 + $0x48] sm:$0xff] (!%p419_p9)   ;;  %v7192_v4 = vld [vmem:[%s9342_s5 + $0x50] sm:$0xff] (!%p419_p9)   ;;  %3531 = vst [vmem:[#allocation2 + $0x48] sm:$0xff] (!%p419_p9), %v7566_v45 }
  0x20   : > { %v7189_v1 = vld [vmem:[%s9342_s5] sm:$0xff] (!%p419_p9)   ;;  %6089 = vmatprep.subr.bf16.mxu1 (!%p419_p9), %v7188_v0  ;;  %v7191_v3 = vld [vmem:[%s9342_s5 + $0x8] sm:$0xff] (!%p419_p9)   ;;  %v7193_v5 = vld [vmem:[%s9342_s5 + $0x10] sm:$0xff] (!%p419_p9)   ;;  %2300 = vst [vmem:[#allocation2 + $0x50] sm:$0x3] (!%p419_p9), %v7566_v45 }
  0x21   : > { %6090 = vmatpush3.bf16.msra.mxu1 %v7189_v1  ;;  %v7194_v6 = vld [vmem:[%s9342_s5 + $0x58] sm:$0xff]   ;;  %s7713_s30 = scalar_select %p482_p10, %s7663_s29, 1  ;;  %v7196_v8 = vld [vmem:[%s9342_s5 + $0x60] sm:$0xff]   ;;  %v7198_v11 = vld [vmem:[%s9342_s5 + $0x68] sm:$0xff]   ;;  %3532 = vst [vmem:[#allocation2 + $0x50] sm:$0x3] %v7566_v45 }
  0x22   : > { %6091 = vmatprep.subr.bf16.mxu1 %v7190_v2  ;;  %v7195_v7 = vld [vmem:[%s9342_s5 + $0x18] sm:$0xff]   ;;  %v7197_v10 = vld [vmem:[%s9342_s5 + $0x20] sm:$0xff]   ;;  %v7199_v15 = vld [vmem:[%s9342_s5 + $0x28] sm:$0xff]  }
  0x23   : > { %s6086_s21 = sshll.u32 %s7713_s30, 3  ;;  %v7200_v16 = vld [vmem:[%s9342_s5 + $0x70] sm:$0xff]   ;;  %v7202_v23 = vld [vmem:[%s9342_s5 + $0x78] sm:$0xff]   ;;  %v7205_v27 = vld [vmem:[%s9342_s5 + $0xc0] sm:$0xff]   ;;  %s6084_s23 = sshll.u32 %s7713_s30, 5 }
  0x24   : > { %s496_s14 = scalar_lea.vmem %s9343_s2, %s6086_s21  ;;  %v7201_v20 = vld [vmem:[%s9342_s5 + $0x30] sm:$0xff]   ;;  %v7203_v25 = vld [vmem:[%s9342_s5 + $0x38] sm:$0xff]   ;;  %v7206_v28 = vld [vmem:[%s9342_s5 + $0x80] sm:$0xff]   ;;  %s7831_s22 = scalar_lea.vmem %s9345_s0, %s6084_s23 }
  0x25   : > { %6092 = vmatpush3.bf16.msra.mxu1 %v7191_v3  ;;  %v503_v18 = vld [vmem:[%s496_s14] sm:$0xff]  ;;  %v7207_v30 = vld [vmem:[%s9342_s5 + $0xc8] sm:$0xff]   ;;  %v7209_v32 = vld [vmem:[%s9342_s5 + $0xd0] sm:$0xff]   ;;  %s6085_s16 = sshll.u32 %s7713_s30, 4  ;;  %s8689_s14 = sand.u32 1, %s7555_s26  }
  0x26   : > { %6093 = vmatprep.subr.bf16.mxu1 %v7192_v4  ;;  %v574_v21 = vcombine.high %v503_v18, %v503_v18  ;;  %v581_v22 = vrot.slane %v503_v18, %v580_v19  ;;  %v7208_v31 = vld [vmem:[%s9342_s5 + $0x88] sm:$0xff]   ;;  %v7210_v33 = vld [vmem:[%s9342_s5 + $0x90] sm:$0xff]   ;;  %v7211_v34 = vld [vmem:[%s9342_s5 + $0xd8] sm:$0xff]   ;;  %s7861_s23 = scalar_lea.vmem %s9347_s1, %s6085_s16  ;;  %s5249_s20 = sshll.u32 %s8689_s14, 2 }
  0x27   : > { %v7212_v35 = vld [vmem:[%s9342_s5 + $0x98] sm:$0xff]   ;;  %v7213_v36 = vld [vmem:[%s9342_s5 + $0xe0] sm:$0xff]   ;;  %v7215_v38 = vld [vmem:[%s9342_s5 + $0xe8] sm:$0xff]   ;;  %s5248_s0 = sshll.u32 %s8689_s14, 4  ;;  %s5067_s21 = scalar_lea.sflag [#allocation4], %s8689_s14 }
  0x28   : > { %v589_v24 = vcombine.high %v581_v22, %v581_v22  ;;  %v588_v26 = vrot.slane %v574_v21, %v580_v19  ;;  %v7214_v37 = vld [vmem:[%s9342_s5 + $0xa0] sm:$0xff]   ;;  %v7216_v39 = vld [vmem:[%s9342_s5 + $0xa8] sm:$0xff]   ;;  %v7217_v40 = vld [vmem:[%s9342_s5 + $0xf0] sm:$0xff]   ;;  %s8748_s16 = scalar_lea.vmem [#allocation3], %s5248_s0  ;;  %s9237_s0 = scalar_lea.hbm %s9325_s12, %s6088_s17 }
  0x29   : > { %6094 = vmatpush3.bf16.msra.mxu1 %v7193_v5  ;;  %v7218_v41 = vld [vmem:[%s9342_s5 + $0xb0] sm:$0xff]   ;;  %v7219_v42 = vld [vmem:[%s9342_s5 + $0xf8] sm:$0xff]   ;;  %v7221_v44 = vld [vmem:[%s9344_s6 + $0x640] sm:$0xff]   ;;  %s7568_s1 = smov [#allocation3]  }
  0x2a   : > { %6095 = vmatprep.subr.bf16.mxu1 %v7194_v6  ;;  %819 = vmatprep.mubr.bf16.mxu1 %v589_v24  ;;  %v590_v29 = vcombine.high %v588_v26, %v588_v26  ;;  %v7220_v43 = vld [vmem:[%s9342_s5 + $0xb8] sm:$0xff]   ;;  %v7222_v46 = vld [vmem:[%s9344_s6 + $0x648] sm:$0xff]   ;;  %v7223_v47 = vld [vmem:[%s9344_s6 + $0x650] sm:$0xff]  }
  0x2b   : > { %6596 = vmatpush3.bf16.msra.mxu0 %v7221_v44  ;;  %v7224_v48 = vld [vmem:[%s9344_s6 + $0x658] sm:$0xff]   ;;  %v7225_v49 = vld [vmem:[%s9344_s6 + $0x660] sm:$0xff]   ;;  %v7226_v50 = vld [vmem:[%s9344_s6 + $0x668] sm:$0xff]  }
  0x2c   : > { %6597 = vmatprep.subr.bf16.mxu0 %v7566_v45  ;;  %v7227_v51 = vld [vmem:[%s9344_s6 + $0x670] sm:$0xff]   ;;  %v7229_v53 = vld [vmem:[%s9344_s6 + $0x678] sm:$0xff]   ;;  %v7231_v54 = vld [vmem:[%s9346_s4 + $0x40] sm:$0xff]  }
  0x2d   : > { %6096 = vmatpush3.bf16.msra.mxu1 %v7195_v7  ;;  %v868_v4 = vld [vmem:[%s9323_s10 + $0x8] sm:$0xff]  ;;  %v7228_v5 = vld [vmem:[%s9344_s6 + $0x4c0] sm:$0xff]   ;;  %v7236_v21 = vld [vmem:[%s9344_s6 + $0x4d8] sm:$0xff]  }
  0x2e   : > { %6097 = vmatprep.subr.bf16.mxu1 %v7196_v8  ;;  %v7230_v6 = vld [vmem:[%s9344_s6 + $0x4c8] sm:$0xff]   ;;  %v7232_v7 = vld [vmem:[%s9346_s4] sm:$0xff]   ;;  %v7233_v8 = vld [vmem:[%s9344_s6 + $0x4d0] sm:$0xff]  }
  0x2f   : > { %6598 = vmatpush3.bf16.msra.mxu0 %v7222_v46  ;;  %v7239_v24 = vld [vmem:[%s9344_s6 + $0x4e0] sm:$0xff]   ;;  %v7261_v46 = vld [vmem:[%s9344_s6 + $0x4a8] sm:$0xff]  }
  0x30   : > { %6599 = vmatprep.subr.bf16.mxu0 %v7566_v45  ;;  %v7260_v44 = vld [vmem:[%s9344_s6 + $0x4a0] sm:$0xff]  }
  0x31   : > { %6098 = vmatpush3.bf16.msra.mxu1 %v7197_v10  ;;  %v7234_v10 = vld [vmem:[%s9346_s4 + $0x48] sm:$0xff]  }
  0x32   : > { %6099 = vmatprep.subr.bf16.mxu1 %v7198_v11  ;;  %v7257_v11 = vld [vmem:[%s7861_s23 + $0x4] ss:$8 sps:$4 sm:$0xff]  }
  0x33   : > { %6600 = vmatpush3.bf16.msra.mxu0 %v7223_v47  ;;  %v7262_v47 = vld [vmem:[%s9344_s6 + $0x4b0] sm:$0xff]  }
  0x34   : > { %6601 = vmatprep.subr.bf16.mxu0 %v7566_v45 }
  0x35   : > { %6100 = vmatpush3.bf16.msra.mxu1 %v7199_v15 }
  0x36   : > { %6101 = vmatprep.subr.bf16.mxu1 %v7200_v16 }
  0x37   : > { %6602 = vmatpush3.bf16.msra.mxu0 %v7224_v48  ;;  %v973_v48 = vand.u32 1, %v7728_v12 }
  0x38   : > { %6603 = vmatprep.subr.bf16.mxu0 %v7566_v45 }
  0x39   : > { %6102 = vmatpush3.bf16.msra.mxu1 %v7201_v20  ;;  %v7235_v20 = vld [vmem:[%s9346_s4 + $0x8] sm:$0xff]   ;;  %vm982_vm3 = vcmp.ge.s32.totalorder %v973_v48, 1  ;;  %vm1198_vm5 = vcmp.le.s32.totalorder %v973_v48, 0  ;;  %v7304_v48 = vld [vmem:[%s9344_s6 + $0x680] sm:$0xff]  }
  0x3a   : > { %6103 = vmatprep.subr.bf16.mxu1 %v7202_v23  ;;  %v7238_v23 = vld [vmem:[%s9346_s4 + $0x10] sm:$0xff]   ;;  %vm8001_vm4 = vmpackc.low %vm982_vm3, %vm982_vm3 }
  0x3b   : > { %6604 = vmatpush3.bf16.msra.mxu0 %v7225_v49  ;;  %v7263_v49 = vld [vmem:[%s9344_s6 + $0x4b8] sm:$0xff]   ;;  %vm8043_vm6 = vmpackc.low %vm1198_vm5, %vm1198_vm5 }
  0x3c   : > { %6605 = vmatprep.subr.bf16.mxu0 %v7566_v45 }
  0x3d   : > { %6104 = vmatpush3.bf16.msra.mxu1 %v7203_v25  ;;  %v7240_v25 = vld [vmem:[%s9346_s4 + $0x58] sm:$0xff]  }
  0x3e   : > { %6111 = vmatprep.subr.bf16.mxu1 %v7205_v27  ;;  %v7242_v27 = vld [vmem:[%s9344_s6 + $0x4e8] sm:$0xff]  }
  0x3f   : > { %6606 = vmatpush3.bf16.msra.mxu0 %v7226_v50  ;;  %v7307_v50 = vld [vmem:[%s9344_s6 + $0x698] sm:$0xff]  }
  0x40   : > { %820 = vmatmul.mubr.bf16.vlgmr.msra.gmra.mrb[0].mxu1 %v581_v22  ;;  %6607 = vmatprep.subr.bf16.mxu0 %v7566_v45  ;;  %v7237_v22 = vld [vmem:[%s9346_s4 + $0x50] sm:$0xff]  }
  0x41   : > { %6112 = vmatpush3.bf16.msra.mxu1 %v7206_v28  ;;  %859 = vmatprep.mubr.bf16.mxu1 %v590_v29  ;;  %v7243_v28 = vld [vmem:[%s9346_s4 + $0x60] sm:$0xff]  }
  0x42   : > { %6113 = vmatprep.subr.bf16.mxu1 %v7207_v30  ;;  %v7244_v29 = vld [vmem:[%s9346_s4 + $0x20] sm:$0xff]   ;;  %v7245_v30 = vld [vmem:[%s9344_s6 + $0x4f0] sm:$0xff]  }
  0x43   : > { %6608 = vmatpush3.bf16.msra.mxu0 %v7227_v51  ;;  %v7264_v51 = vld [vmem:[%s9344_s6 + $0x500] sm:$0xff]  }
  0x44   : > { %6609 = vmatprep.subr.bf16.mxu0 %v7566_v45 }
  0x45   : > { %6114 = vmatpush3.bf16.msra.mxu1 %v7208_v31  ;;  %v7246_v31 = vld [vmem:[%s9346_s4 + $0x68] sm:$0xff]  }
  0x46   : > { %6115 = vmatprep.subr.bf16.mxu1 %v7209_v32  ;;  %v7247_v32 = vld [vmem:[%s9346_s4 + $0x28] sm:$0xff]  }
  0x47   : > { %6610 = vmatpush3.bf16.msra.mxu0 %v7229_v53  ;;  %v7265_v53 = vld [vmem:[%s9344_s6 + $0x508] sm:$0xff]  }
  0x48   : > { %6217 = vmatprep.subr.bf16.mxu0 %v7231_v54  ;;  %v7266_v54 = vld [vmem:[%s9344_s6 + $0x510] sm:$0xff]  }
  0x49   : > { %6116 = vmatpush3.bf16.msra.mxu1 %v7210_v33  ;;  %v7248_v33 = vld [vmem:[%s9344_s6 + $0x4f8] sm:$0xff]  }
  0x4a   : > { %6117 = vmatprep.subr.bf16.mxu1 %v7211_v34  ;;  %v7249_v34 = vld [vmem:[%s9346_s4 + $0x70] sm:$0xff]  }
  0x4d   : > { %6118 = vmatpush3.bf16.msra.mxu1 %v7212_v35  ;;  %v7250_v35 = vld [vmem:[%s9346_s4 + $0x30] sm:$0xff]  }
  0x4e   : > { %6119 = vmatprep.subr.bf16.mxu1 %v7213_v36  ;;  %v7251_v36 = vld [vmem:[%s9344_s6 + $0x480] sm:$0xff]  }
  0x51   : > { %6120 = vmatpush3.bf16.msra.mxu1 %v7214_v37 }
  0x52   : > { %6121 = vmatprep.subr.bf16.mxu1 %v7215_v38  ;;  %v7252_v38 = vld [vmem:[%s9346_s4 + $0x78] sm:$0xff]  }
  0x55   : > { %6122 = vmatpush3.bf16.msra.mxu1 %v7216_v39  ;;  %v7253_v39 = vld [vmem:[%s9346_s4 + $0x38] sm:$0xff]  }
  0x56   : > { %6123 = vmatprep.subr.bf16.mxu1 %v7217_v40  ;;  %v7254_v40 = vld [vmem:[%s9344_s6 + $0x488] sm:$0xff]  }
  0x59   : > { %6124 = vmatpush3.bf16.msra.mxu1 %v7218_v41  ;;  %v7255_v41 = vld [vmem:[%s7861_s23] ss:$8 sps:$4 sm:$0xff]   ;;  %s5088_s23 = sshll.u32 %s8748_s16, 4  ;;  %s9230_s23 = int_to_ptr.vmem [resolvable:$true] %s5088_s23 }
  0x5a   : > { %6125 = vmatprep.subr.bf16.mxu1 %v7219_v42  ;;  %v7258_v42 = vld [vmem:[%s9344_s6 + $0x490] sm:$0xff]   ;;  %s7469_s15 = scalar_lea.vmem %s9230_s23, 256 }
  0x5b   : > { %p7470_p11 = scmp.ne.s32.totalorder %s9230_s23, %s7469_s15 }
  0x5d   : > { %6126 = vmatpush3.bf16.msra.mxu1 %v7220_v43  ;;  %v7259_v43 = vld [vmem:[%s9344_s6 + $0x498] sm:$0xff]   ;;  %p7471_p12 = pnand %p7470_p11, %p7680_p5 }
  0x5f   : > { %p7472_p13 = pneg %p7471_p12 }
  0x60   : > { %860 = vmatmul.mubr.bf16.vlgmr.msra.gmra.mrb[4].mxu1 %v588_v26  ;;  %v7241_v26 = vld [vmem:[%s9346_s4 + $0x18] sm:$0xff]  }
  0x61   : > { %6452 = vmatprep.mubr.msk.f32.mxu1 %vm869_vm0, %v867_v52 }
 0x113   : > { %v6105_v55 = vpop.f32.mrb[0].mxu1 }
 0x114   : > { %v6106_v56 = vpop.f32.mrb[1].mxu1 }
 0x115   : > { %v6107_v57 = vadd.f32 %v6106_v56, %v6105_v55  ;;  %v6108_v58 = vpop.f32.mrb[2].mxu1  ;;  %v7267_v55 = vld [vmem:[%s9344_s6 + $0x518] sm:$0xff]   ;;  %v7268_v56 = vld [vmem:[%s9344_s6 + $0x520] sm:$0xff]  }
 0x116   : > { %v6109_v59 = vpop.f32.mrb[3].mxu1  ;;  %v7270_v58 = vld [vmem:[%s9344_s6 + $0x530] sm:$0xff]  }
 0x117   : > { %v822_v63 = vadd.f32 %v6107_v57, %v5258_v60  ;;  %v7269_v57 = vld [vmem:[%s9344_s6 + $0x528] sm:$0xff]   ;;  %v7271_v59 = vld [vmem:[%s9344_s6 + $0x538] sm:$0xff]   ;;  %v7320_v60 = vld [vmem:[%s9344_s6 + $0x240] sm:$0xff]  }
 0x133   : > { %v6127_v61 = vpop.f32.mrb[4].mxu1 }
 0x134   : > { %v6128_v62 = vpop.f32.mrb[5].mxu1 }
 0x135   : > { %v6129_v0 = vadd.f32 %v6128_v62, %v6127_v61  ;;  %v6130_v1 = vpop.f32.mrb[6].mxu1  ;;  %v7272_v61 = vld [vmem:[%s9344_s6 + $0x540] sm:$0xff]  }
 0x136   : > { %v6131_v2 = vpop.f32.mrb[7].mxu1  ;;  %v7275_v1 = vld [vmem:[%s9344_s6 + $0x558] sm:$0xff]  }
 0x137   : > { %v862_v3 = vadd.f32 %v6129_v0, %v822_v63  ;;  %v7273_v63 = vld [vmem:[%s9344_s6 + $0x548] sm:$0xff]   ;;  %v7274_v0 = vld [vmem:[%s9344_s6 + $0x550] sm:$0xff]   ;;  %v7276_v2 = vld [vmem:[%s9344_s6 + $0x560] sm:$0xff]  }
 0x139   : > { %966 = vst [vmem:[#allocation2 + $0x3] sm:$0xf] %v862_v3  ;;  %6450 = vmatprep.subr.msk.mxu1 %vm876_vm2, %v862_v3 }
 0x13a   : > { %6451 = vmatpush3.msk.msra.mxu1 %vm876_vm2, %v862_v3  ;;  %v7308_v3 = vld [vmem:[%s9344_s6 + $0x280] sm:$0xff]  }
 0x13b   : > { %6455 = vmatprep.subr.bf16.mxu1 %v7566_v45  ;;  %6453 = vmatmul.mubr.msk.f32.vlgmr.msra.gmra.mrb[8].mxu1 %vm869_vm0, %v868_v4  ;;  %v7277_v4 = vld [vmem:[%s9344_s6 + $0x568] sm:$0xff]  }
 0x13c   : > { %6456 = vmatpush3.bf16.msra.mxu1 %v7228_v5  ;;  %6471 = vmatprep.mubr.msk.bf16.mxu1 %vm7567_vm1, %v7566_v45  ;;  %v7310_v5 = vld [vmem:[%s9344_s6 + $0x288] sm:$0xff]  }
 0x13d   : > { %6457 = vmatprep.subr.bf16.mxu1 %v7566_v45 }
 0x140   : > { %6458 = vmatpush3.bf16.msra.mxu1 %v7230_v6  ;;  %v1740_v9 = vld [vmem:[#allocation2 + $0x5] sm:$0xf]  ;;  %v1002_v14 = vld [vmem:[#allocation2 + $0x1] sm:$0xf]  ;;  %v7278_v6 = vld [vmem:[%s9344_s6 + $0x570] sm:$0xff]  }
 0x141   : > { %6459 = vmatprep.subr.bf16.mxu1 %v7566_v45  ;;  %v1741_v13 = vpack.c.bf16 %v1740_v9, %v1740_v9  ;;  %v7891_v15 = vld [vmem:[#allocation2] sm:$0xf]  ;;  %v7897_v18 = vld [vmem:[#allocation2 + $0x4] sm:$0xf]  ;;  %v1003_v37 = vpack.c.bf16 %v1002_v14, %v1002_v14  ;;  %v7314_v9 = vld [vmem:[%s9344_s6 + $0x298] sm:$0xff]  }
 0x142   : > { %v7893_v16 = vld [vmem:[#allocation2 + $0x2] sm:$0xf]  ;;  %v7899_v19 = vld [vmem:[#allocation2 + $0x6] sm:$0xf]  ;;  %v5343_v52 = vpack.c.bf16 %v7891_v15, %v7891_v15  ;;  %v7282_v15 = vld [vmem:[%s9344_s6 + $0x590] sm:$0xff]  }
 0x143   : > { %v7895_v17 = vld [vmem:[#allocation2 + $0x3] sm:$0xf]  ;;  %6612 = vmatmul.mubr.bf16.vlgmr.msra.gmra.mrb[0].mxu0 %v1741_v13  ;;  %2291 = vst [vmem:[#allocation2 + $0x8] sm:$0xff] %v7566_v45  ;;  %v5370_v62 = vpack.c.bf16 %v7893_v16, %v7893_v16  ;;  %v7281_v13 = vld [vmem:[%s9344_s6 + $0x588] sm:$0xff]   ;;  %v7318_v16 = vld [vmem:[%s9344_s6 + $0x2b0] sm:$0xff]  }
 0x144   : > { %2290 = vst [vmem:[#allocation2] sm:$0xff] %v7566_v45  ;;  %6218 = vmatpush3.bf16.msra.mxu0 %v7232_v7  ;;  %6460 = vmatpush3.bf16.msra.mxu1 %v7233_v8  ;;  %v7312_v7 = vld [vmem:[%s9344_s6 + $0x290] sm:$0xff]   ;;  %v7279_v8 = vld [vmem:[%s9344_s6 + $0x578] sm:$0xff]   ;;  %v7317_v14 = vld [vmem:[%s9344_s6 + $0x2a8] sm:$0xff]  }
 0x145   : > { %6219 = vmatprep.subr.bf16.mxu0 %v7234_v10  ;;  %6461 = vmatprep.subr.bf16.mxu1 %v7566_v45  ;;  %v7280_v10 = vld [vmem:[%s9344_s6 + $0x580] sm:$0xff]  }
 0x146   : > { %2141 = vmatprep.mubr.bf16.mxu0 %v7257_v11  ;;  %v7316_v11 = vld [vmem:[%s9344_s6 + $0x2a0] sm:$0xff]  }
 0x148   : > { %6220 = vmatpush3.bf16.msra.mxu0 %v7235_v20  ;;  %6462 = vmatpush3.bf16.msra.mxu1 %v7236_v21  ;;  %v7319_v20 = vld [vmem:[%s9344_s6 + $0x2b8] sm:$0xff]  }
 0x149   : > { %6221 = vmatprep.subr.bf16.mxu0 %v7237_v22  ;;  %6463 = vmatprep.subr.bf16.mxu1 %v7566_v45  ;;  %v7283_v21 = vld [vmem:[%s9344_s6 + $0x598] sm:$0xff]   ;;  %v7284_v22 = vld [vmem:[%s9344_s6 + $0x5a0] sm:$0xff]  }
 0x14c   : > { %6222 = vmatpush3.bf16.msra.mxu0 %v7238_v23  ;;  %6464 = vmatpush3.bf16.msra.mxu1 %v7239_v24  ;;  %v7285_v23 = vld [vmem:[%s9344_s6 + $0x5a8] sm:$0xff]   ;;  %v7286_v24 = vld [vmem:[%s9344_s6 + $0x5b0] sm:$0xff]  }
 0x14d   : > { %6223 = vmatprep.subr.bf16.mxu0 %v7240_v25  ;;  %6465 = vmatprep.subr.bf16.mxu1 %v7566_v45  ;;  %v7287_v25 = vld [vmem:[%s9344_s6 + $0x5b8] sm:$0xff]  }
 0x150   : > { %6224 = vmatpush3.bf16.msra.mxu0 %v7241_v26  ;;  %6466 = vmatpush3.bf16.msra.mxu1 %v7242_v27  ;;  %v7288_v26 = vld [vmem:[%s9344_s6 + $0x5c0] sm:$0xff]   ;;  %v1416_v27 = vpack.c.bf16 %v7895_v17, %v7895_v17  ;;  %v7291_v17 = vld [vmem:[%s9344_s6 + $0x5d8] sm:$0xff]  }
 0x151   : > { %6225 = vmatprep.subr.bf16.mxu0 %v7243_v28  ;;  %6467 = vmatprep.subr.bf16.mxu1 %v7566_v45  ;;  %v7289_v28 = vld [vmem:[%s9344_s6 + $0x5c8] sm:$0xff]  }
 0x154   : > { %6226 = vmatpush3.bf16.msra.mxu0 %v7244_v29  ;;  %6468 = vmatpush3.bf16.msra.mxu1 %v7245_v30  ;;  %v7290_v29 = vld [vmem:[%s9344_s6 + $0x5d0] sm:$0xff]   ;;  %v7292_v30 = vld [vmem:[%s9344_s6 + $0x5e0] sm:$0xff]  }
 0x155   : > { %6227 = vmatprep.subr.bf16.mxu0 %v7246_v31  ;;  %6469 = vmatprep.subr.bf16.mxu1 %v7566_v45  ;;  %v7293_v31 = vld [vmem:[%s9344_s6 + $0x5e8] sm:$0xff]  }
 0x158   : > { %6228 = vmatpush3.bf16.msra.mxu0 %v7247_v32  ;;  %6470 = vmatpush3.bf16.msra.mxu1 %v7248_v33  ;;  %v8180_v32 = vld [vmem:[#allocation2 + $0x10] sm:$0xff] }
 0x159   : > { %6229 = vmatprep.subr.bf16.mxu0 %v7249_v34  ;;  %6475 = vmatprep.subr.bf16.mxu1 %v7566_v45  ;;  %v7294_v33 = vld [vmem:[%s9344_s6 + $0x5f0] sm:$0xff]   ;;  %v7296_v34 = vld [vmem:[%s9344_s6 + $0x600] sm:$0xff]  }
 0x15b   : > { %6472 = vmatmul.mubr.bf16.vlgmr.msra.gmra.mrb[12].mxu1 %v1003_v37  ;;  %v7299_v37 = vld [vmem:[%s9344_s6 + $0x618] sm:$0xff]  }
 0x15c   : > { %6230 = vmatpush3.bf16.msra.mxu0 %v7250_v35  ;;  %6476 = vmatpush3.bf16.msra.mxu1 %v7251_v36  ;;  %v5448_v35 = vpack.c.bf16 %v7897_v18, %v7897_v18  ;;  %v7297_v36 = vld [vmem:[%s9344_s6 + $0x608] sm:$0xff]   ;;  %v7298_v18 = vld [vmem:[%s9344_s6 + $0x610] sm:$0xff]  }
 0x15d   : > { %6231 = vmatprep.subr.bf16.mxu0 %v7252_v38  ;;  %6477 = vmatprep.subr.bf16.mxu1 %v7566_v45  ;;  %v7300_v38 = vld [vmem:[%s9344_s6 + $0x620] sm:$0xff]  }
 0x15e   : > { %6491 = vmatprep.mubr.msk.bf16.mxu1 %vm7567_vm1, %v7566_v45 }
 0x160   : > { %6232 = vmatpush3.bf16.msra.mxu0 %v7253_v39  ;;  %6478 = vmatpush3.bf16.msra.mxu1 %v7254_v40  ;;  %v7301_v39 = vld [vmem:[%s9344_s6 + $0x628] sm:$0xff]  }
 0x161   : > { %6479 = vmatprep.subr.bf16.mxu1 %v7566_v45  ;;  %6651 = vmatprep.subr.bf16.mxu0 %v7566_v45 }
 0x163   : > { %2142 = vmatmul.mubr.bf16.vlgmr.msra.gmra.mrb[4].mxu0 %v7255_v41 }
 0x164   : > { %6480 = vmatpush3.bf16.msra.mxu1 %v7258_v42  ;;  %6667 = vmatprep.mubr.msk.bf16.mxu0 %vm7567_vm1, %v7566_v45  ;;  %v7302_v42 = vld [vmem:[%s9344_s6 + $0x630] sm:$0xff]  }
 0x165   : > { %6481 = vmatprep.subr.bf16.mxu1 %v7566_v45  ;;  %6652 = vmatpush3.bf16.msra.mxu0 %v7308_v3 }
 0x166   : > { %6653 = vmatprep.subr.bf16.mxu0 %v7566_v45 }
 0x168   : > { %6482 = vmatpush3.bf16.msra.mxu1 %v7259_v43  ;;  %v7303_v43 = vld [vmem:[%s9344_s6 + $0x638] sm:$0xff]  }
 0x169   : > { %6483 = vmatprep.subr.bf16.mxu1 %v7566_v45  ;;  %6654 = vmatpush3.bf16.msra.mxu0 %v7310_v5  ;;  %v2152_v5 = vld [vmem:[%s9322_s9] sm:$0xff] }
 0x16a   : > { %6655 = vmatprep.subr.bf16.mxu0 %v7566_v45 }
 0x16c   : > { %6484 = vmatpush3.bf16.msra.mxu1 %v7260_v44 }
 0x16d   : > { %6485 = vmatprep.subr.bf16.mxu1 %v7566_v45  ;;  %6656 = vmatpush3.bf16.msra.mxu0 %v7312_v7 }
 0x16e   : > { %6657 = vmatprep.subr.bf16.mxu0 %v7566_v45 }
 0x170   : > { %6486 = vmatpush3.bf16.msra.mxu1 %v7261_v46 }
 0x171   : > { %6487 = vmatprep.subr.bf16.mxu1 %v7566_v45  ;;  %6658 = vmatpush3.bf16.msra.mxu0 %v7314_v9 }
 0x172   : > { %6659 = vmatprep.subr.bf16.mxu0 %v7566_v45 }
 0x174   : > { %6488 = vmatpush3.bf16.msra.mxu1 %v7262_v47 }
 0x175   : > { %6489 = vmatprep.subr.bf16.mxu1 %v7566_v45  ;;  %6660 = vmatpush3.bf16.msra.mxu0 %v7316_v11 }
 0x176   : > { %6661 = vmatprep.subr.bf16.mxu0 %v7566_v45 }
 0x178   : > { %6490 = vmatpush3.bf16.msra.mxu1 %v7263_v49 }
 0x179   : > { %6495 = vmatprep.subr.bf16.mxu1 %v7566_v45  ;;  %6662 = vmatpush3.bf16.msra.mxu0 %v7317_v14 }
 0x17a   : > { %6663 = vmatprep.subr.bf16.mxu0 %v7566_v45 }
 0x17b   : > { %6492 = vmatmul.mubr.msk.bf16.vlgmr.msra.gmra.mrb[16].mxu1 %vm8001_vm4, %v5343_v52  ;;  %v7306_v52 = vld [vmem:[%s9344_s6 + $0x690] sm:$0xff]  }
 0x17c   : > { %6496 = vmatpush3.bf16.msra.mxu1 %v7264_v51  ;;  %6511 = vmatprep.mubr.msk.bf16.mxu1 %vm7567_vm1, %v7566_v45  ;;  %v7305_v51 = vld [vmem:[%s9344_s6 + $0x688] sm:$0xff]  }
 0x17d   : > { %6497 = vmatprep.subr.bf16.mxu1 %v7566_v45  ;;  %6664 = vmatpush3.bf16.msra.mxu0 %v7318_v16  ;;  %v7322_v16 = vld [vmem:[%s9344_s6 + $0x248] sm:$0xff]  }
 0x17e   : > { %6665 = vmatprep.subr.bf16.mxu0 %v7566_v45 }
 0x180   : > { %6498 = vmatpush3.bf16.msra.mxu1 %v7265_v53  ;;  %v7309_v53 = vld [vmem:[%s9344_s6 + $0x6a0] sm:$0xff]  }
 0x181   : > { %6499 = vmatprep.subr.bf16.mxu1 %v7566_v45  ;;  %6666 = vmatpush3.bf16.msra.mxu0 %v7319_v20  ;;  %v2155_v20 = vld [vmem:[%s9322_s9 + $0x18] sm:$0xff] }
 0x182   : > { %6691 = vmatprep.subr.bf16.mxu0 %v7566_v45 }
 0x184   : > { %6500 = vmatpush3.bf16.msra.mxu1 %v7266_v54  ;;  %v7311_v54 = vld [vmem:[%s9344_s6 + $0x6a8] sm:$0xff]  }
 0x185   : > { %6501 = vmatprep.subr.bf16.mxu1 %v7566_v45 }
 0x188   : > { %6502 = vmatpush3.bf16.msra.mxu1 %v7267_v55 }
 0x189   : > { %6503 = vmatprep.subr.bf16.mxu1 %v7566_v45 }
 0x18c   : > { %6504 = vmatpush3.bf16.msra.mxu1 %v7268_v56 }
 0x18d   : > { %6505 = vmatprep.subr.bf16.mxu1 %v7566_v45 }
 0x190   : > { %6506 = vmatpush3.bf16.msra.mxu1 %v7269_v57 }
 0x191   : > { %6507 = vmatprep.subr.bf16.mxu1 %v7566_v45 }
 0x194   : > { %6508 = vmatpush3.bf16.msra.mxu1 %v7270_v58  ;;  %v7313_v58 = vld [vmem:[%s9344_s6 + $0x6b0] sm:$0xff]  }
 0x195   : > { %6509 = vmatprep.subr.bf16.mxu1 %v7566_v45 }
 0x198   : > { %6510 = vmatpush3.bf16.msra.mxu1 %v7271_v59 }
 0x199   : > { %6515 = vmatprep.subr.bf16.mxu1 %v7566_v45 }
 0x19b   : > { %6512 = vmatmul.mubr.msk.bf16.vlgmr.msra.gmra.mrb[20].mxu1 %vm8043_vm6, %v5370_v62 }
 0x19c   : > { %6516 = vmatpush3.bf16.msra.mxu1 %v7272_v61  ;;  %6531 = vmatprep.mubr.msk.bf16.mxu1 %vm7567_vm1, %v7566_v45  ;;  %v7315_v61 = vld [vmem:[%s9344_s6 + $0x6b8] sm:$0xff]  }
 0x19d   : > { %6517 = vmatprep.subr.bf16.mxu1 %v7566_v45 }
 0x1a0   : > { %6518 = vmatpush3.bf16.msra.mxu1 %v7273_v63  ;;  %v5529_v63 = vld [vmem:[%s9320_s7 + $0x1] ss:$0 sm:$0xff] }
 0x1a1   : > { %6519 = vmatprep.subr.bf16.mxu1 %v7566_v45 }
 0x1a4   : > { %6520 = vmatpush3.bf16.msra.mxu1 %v7274_v0 }
 0x1a5   : > { %6521 = vmatprep.subr.bf16.mxu1 %v7566_v45 }
 0x1a8   : > { %6522 = vmatpush3.bf16.msra.mxu1 %v7275_v1 }
 0x1a9   : > { %6523 = vmatprep.subr.bf16.mxu1 %v7566_v45 }
 0x1ac   : > { %6524 = vmatpush3.bf16.msra.mxu1 %v7276_v2 }
 0x1ad   : > { %6525 = vmatprep.subr.bf16.mxu1 %v7566_v45 }
 0x1b0   : > { %6526 = vmatpush3.bf16.msra.mxu1 %v7277_v4  ;;  %v5526_v4 = vpack.c.bf16 %v7899_v19, %v7899_v19  ;;  %v2153_v19 = vld [vmem:[%s9322_s9 + $0x8] sm:$0xff] }
 0x1b1   : > { %6527 = vmatprep.subr.bf16.mxu1 %v7566_v45 }
 0x1b4   : > { %6528 = vmatpush3.bf16.msra.mxu1 %v7278_v6 }
 0x1b5   : > { %6529 = vmatprep.subr.bf16.mxu1 %v7566_v45 }
 0x1b8   : > { %6530 = vmatpush3.bf16.msra.mxu1 %v7279_v8 }
 0x1b9   : > { %6535 = vmatprep.subr.bf16.mxu1 %v7566_v45 }
 0x1bb   : > { %6532 = vmatmul.mubr.msk.bf16.vlgmr.msra.gmra.mrb[24].mxu1 %vm8001_vm4, %v5370_v62 }
 0x1bc   : > { %6536 = vmatpush3.bf16.msra.mxu1 %v7280_v10  ;;  %6551 = vmatprep.mubr.msk.bf16.mxu1 %vm7567_vm1, %v7566_v45 }
 0x1bd   : > { %6537 = vmatprep.subr.bf16.mxu1 %v7566_v45 }
 0x1c0   : > { %6538 = vmatpush3.bf16.msra.mxu1 %v7281_v13  ;;  %v2154_v13 = vld [vmem:[%s9322_s9 + $0x10] sm:$0xff] }
 0x1c1   : > { %6539 = vmatprep.subr.bf16.mxu1 %v7566_v45 }
 0x1c4   : > { %6540 = vmatpush3.bf16.msra.mxu1 %v7282_v15  ;;  %v7321_v15 = vld [vmem:[%s9344_s6 + $0x2c0] sm:$0xff]  }
 0x1c5   : > { %6541 = vmatprep.subr.bf16.mxu1 %v7566_v45 }
 0x1c8   : > { %6542 = vmatpush3.bf16.msra.mxu1 %v7283_v21 }
 0x1c9   : > { %6543 = vmatprep.subr.bf16.mxu1 %v7566_v45 }
 0x1cc   : > { %6544 = vmatpush3.bf16.msra.mxu1 %v7284_v22 }
 0x1cd   : > { %6545 = vmatprep.subr.bf16.mxu1 %v7566_v45 }
 0x1d0   : > { %6546 = vmatpush3.bf16.msra.mxu1 %v7285_v23 }
 0x1d1   : > { %6547 = vmatprep.subr.bf16.mxu1 %v7566_v45 }
 0x1d4   : > { %6548 = vmatpush3.bf16.msra.mxu1 %v7286_v24 }
 0x1d5   : > { %6549 = vmatprep.subr.bf16.mxu1 %v7566_v45 }
 0x1d8   : > { %6550 = vmatpush3.bf16.msra.mxu1 %v7287_v25 }
 0x1d9   : > { %6555 = vmatprep.subr.bf16.mxu1 %v7566_v45 }
 0x1db   : > { %6552 = vmatmul.mubr.bf16.vlgmr.msra.gmra.mrb[28].mxu1 %v1416_v27 }
 0x1dc   : > { %6556 = vmatpush3.bf16.msra.mxu1 %v7288_v26  ;;  %6571 = vmatprep.mubr.msk.bf16.mxu1 %vm7567_vm1, %v7566_v45 }
 0x1dd   : > { %6557 = vmatprep.subr.bf16.mxu1 %v7566_v45 }
 0x1e0   : > { %6558 = vmatpush3.bf16.msra.mxu1 %v7289_v28 }
 0x1e1   : > { %6559 = vmatprep.subr.bf16.mxu1 %v7566_v45 }
 0x1e4   : > { %6560 = vmatpush3.bf16.msra.mxu1 %v7290_v29 }
 0x1e5   : > { %6561 = vmatprep.subr.bf16.mxu1 %v7566_v45 }
 0x1e8   : > { %6562 = vmatpush3.bf16.msra.mxu1 %v7291_v17 }
 0x1e9   : > { %6563 = vmatprep.subr.bf16.mxu1 %v7566_v45  ;;  %v7295_v45 = vld [vmem:[%s9344_s6 + $0x5f8] sm:$0xff]  }
 0x1ec   : > { %6564 = vmatpush3.bf16.msra.mxu1 %v7292_v30 }
 0x1ed   : > { %6565 = vmatprep.subr.bf16.mxu1 %v8180_v32 }
 0x1f0   : > { %6566 = vmatpush3.bf16.msra.mxu1 %v7293_v31 }
 0x1f1   : > { %6567 = vmatprep.subr.bf16.mxu1 %v8180_v32 }
 0x1f4   : > { %6568 = vmatpush3.bf16.msra.mxu1 %v7294_v33 }
 0x1f5   : > { %6569 = vmatprep.subr.bf16.mxu1 %v8180_v32 }
 0x1f8   : > { %6570 = vmatpush3.bf16.msra.mxu1 %v7295_v45  ;;  %v2156_v45 = vld [vmem:[%s9322_s9 + $0x20] sm:$0xff] }
 0x1f9   : > { %6575 = vmatprep.subr.bf16.mxu1 %v8180_v32 }
 0x1fb   : > { %6572 = vmatmul.mubr.msk.bf16.vlgmr.msra.gmra.mrb[32].mxu1 %vm8043_vm6, %v5448_v35 }
 0x1fc   : > { %6576 = vmatpush3.bf16.msra.mxu1 %v7296_v34  ;;  %6591 = vmatprep.mubr.msk.bf16.mxu1 %vm7567_vm1, %v8180_v32 }
 0x1fd   : > { %6577 = vmatprep.subr.bf16.mxu1 %v8180_v32 }
 0x200   : > { %6578 = vmatpush3.bf16.msra.mxu1 %v7297_v36  ;;  %v7324_v36 = vld [vmem:[%s9344_s6 + $0x250] sm:$0xff]  }
 0x201   : > { %6579 = vmatprep.subr.bf16.mxu1 %v8180_v32 }
 0x204   : > { %6580 = vmatpush3.bf16.msra.mxu1 %v7298_v18  ;;  %v2157_v18 = vld [vmem:[%s9322_s9 + $0x28] sm:$0xff] }
 0x205   : > { %6581 = vmatprep.subr.bf16.mxu1 %v8180_v32 }
 0x208   : > { %6582 = vmatpush3.bf16.msra.mxu1 %v7299_v37 }
 0x209   : > { %6583 = vmatprep.subr.bf16.mxu1 %v8180_v32 }
 0x20c   : > { %6584 = vmatpush3.bf16.msra.mxu1 %v7300_v38  ;;  %v2158_v38 = vld [vmem:[%s9322_s9 + $0x30] sm:$0xff] }
 0x20d   : > { %6585 = vmatprep.subr.bf16.mxu1 %v8180_v32 }
 0x20e   : > { %v6454_v40 = vpop.f32.mrb[8].mxu1 }
 0x20f   : > { %v946_v41 = vpop.f32.mrb[9].mxu1 }
 0x210   : > { %6586 = vmatpush3.bf16.msra.mxu1 %v7301_v39 }
 0x211   : > { %6587 = vmatprep.subr.bf16.mxu1 %v8180_v32 }
 0x214   : > { %6588 = vmatpush3.bf16.msra.mxu1 %v7302_v42  ;;  %v7326_v42 = vld [vmem:[%s9344_s6 + $0x258] sm:$0xff]  }
 0x215   : > { %6589 = vmatprep.subr.bf16.mxu1 %v8180_v32 }
 0x216   : > { %v8229_v44 = vpop.f32.mrb[0].mxu0 }
 0x217   : > { %v6613_v46 = vpop.f32.mrb[1].mxu0 }
 0x218   : > { %6590 = vmatpush3.bf16.msra.mxu1 %v7303_v43  ;;  %v1844_v47 = vpop.f32.mrb[2].mxu0  ;;  %v2159_v43 = vld [vmem:[%s9322_s9 + $0x38] sm:$0xff] }
 0x219   : > { %v6614_v49 = vpop.f32.mrb[3].mxu0  ;;  %6615 = vmatprep.subr.bf16.mxu1 %v8180_v32 }
 0x21a   : > { %v7328_v49 = vld [vmem:[%s9344_s6 + $0x260] sm:$0xff]  }
 0x21b   : > { %6592 = vmatmul.mubr.msk.bf16.vlgmr.msra.gmra.mrb[36].mxu1 %vm8001_vm4, %v5448_v35  ;;  %v7323_v35 = vld [vmem:[%s9344_s6 + $0x2c8] sm:$0xff]  }
 0x21c   : > { %6616 = vmatpush3.bf16.msra.mxu1 %v7304_v48  ;;  %6631 = vmatprep.mubr.msk.bf16.mxu1 %vm7567_vm1, %v8180_v32  ;;  %v7327_v48 = vld [vmem:[%s9344_s6 + $0x2d8] sm:$0xff]  }
 0x21d   : > { %6617 = vmatprep.subr.bf16.mxu1 %v8180_v32 }
 0x220   : > { %6618 = vmatpush3.bf16.msra.mxu1 %v7305_v51  ;;  %v7329_v51 = vld [vmem:[%s9344_s6 + $0x2e0] sm:$0xff]  }
 0x221   : > { %6619 = vmatprep.subr.bf16.mxu1 %v8180_v32 }
 0x224   : > { %6620 = vmatpush3.bf16.msra.mxu1 %v7306_v52  ;;  %v7330_v52 = vld [vmem:[%s9344_s6 + $0x268] sm:$0xff]  }
 0x225   : > { %6621 = vmatprep.subr.bf16.mxu1 %v8180_v32 }
 0x228   : > { %6622 = vmatpush3.bf16.msra.mxu1 %v7307_v50  ;;  %v8394_v50 = vadd.s32 8, %v7728_v12 }
 0x229   : > { %6623 = vmatprep.subr.bf16.mxu1 %v8180_v32 }
 0x22c   : > { %6624 = vmatpush3.bf16.msra.mxu1 %v7309_v53  ;;  %v7331_v53 = vld [vmem:[%s9344_s6 + $0x2e8] sm:$0xff]  }
 0x22d   : > { %6625 = vmatprep.subr.bf16.mxu1 %v8180_v32 }
 0x22e   : > { %v8259_v55 = vpop.f32.mrb[12].mxu1 }
 0x22f   : > { %v6473_v56 = vpop.f32.mrb[13].mxu1 }
 0x230   : > { %v1106_v57 = vpop.f32.mrb[14].mxu1  ;;  %6626 = vmatpush3.bf16.msra.mxu1 %v7311_v54  ;;  %v7332_v54 = vld [vmem:[%s9344_s6 + $0x270] sm:$0xff]   ;;  %v2315_v56 = vand.u32 3, %v8394_v50 }
 0x231   : > { %v6474_v59 = vpop.f32.mrb[15].mxu1  ;;  %6627 = vmatprep.subr.bf16.mxu1 %v8180_v32  ;;  %v7333_v57 = vld [vmem:[%s9344_s6 + $0x2f0] sm:$0xff]  }
 0x232   : > { %vm2331_vm9 = vcmp.ge.s32.totalorder %v2315_v56, 1  ;;  %vm2553_vm12 = vcmp.le.s32.totalorder %v2315_v56, 2  ;;  %v7368_v56 = vld [vmem:[%s9344_s6 + $0x400] sm:$0xff]   ;;  %v7373_v59 = vld [vmem:[%s9344_s6 + $0x450] sm:$0xff]  }
 0x234   : > { %6628 = vmatpush3.bf16.msra.mxu1 %v7313_v58  ;;  %v7334_v58 = vld [vmem:[%s9344_s6 + $0x278] sm:$0xff]  }
 0x235   : > { %6629 = vmatprep.subr.bf16.mxu1 %v8180_v32 }
 0x236   : > { %v6233_v62 = vpop.f32.mrb[4].mxu0 }
 0x237   : > { %v6234_v0 = vpop.f32.mrb[5].mxu0 }
 0x238   : > { %v6235_v1 = vadd.f32 %v6234_v0, %v6233_v62  ;;  %v6236_v2 = vpop.f32.mrb[6].mxu0  ;;  %6630 = vmatpush3.bf16.msra.mxu1 %v7315_v61  ;;  %v7335_v61 = vld [vmem:[%s9344_s6 + $0x2f8] sm:$0xff]   ;;  %v7336_v62 = vld [vmem:[%s9344_s6 + $0x300] sm:$0xff]  }
 0x239   : > { %v6237_v3 = vpop.f32.mrb[7].mxu0 }
 0x23a   : > { %v2144_v6 = vadd.f32 %v6235_v1, %v5529_v63  ;;  %v6238_v7 = vadd.f32 %v6237_v3, %v6236_v2  ;;  %v7337_v1 = vld [vmem:[%s9344_s6 + $0x340] sm:$0xff]   ;;  %v7338_v2 = vld [vmem:[%s9344_s6 + $0x308] sm:$0xff]  }
 0x23b   : > { %6632 = vmatmul.mubr.msk.bf16.vlgmr.msra.gmra.mrb[40].mxu1 %vm8043_vm6, %v5526_v4  ;;  %v7339_v4 = vld [vmem:[%s9344_s6 + $0x348] sm:$0xff]  }
 0x23c   : > { %v2150_v8 = vadd.f32 %v2144_v6, %v946_v41  ;;  %v2147_v9 = vadd.f32 %v6238_v7, %v5529_v63  ;;  %6639 = vmatprep.mubr.msk.f32.mxu1 %vm2160_vm7, %v2152_v5  ;;  %v7325_v41 = vld [vmem:[%s9344_s6 + $0x2d0] sm:$0xff]  }
 0x23d   : > { %v7340_v5 = vld [vmem:[%s9344_s6 + $0x310] sm:$0xff]  }
 0x23e   : > { %v2151_v10 = vadd.f32 %v6454_v40, %v2147_v9  ;;  %2301 = vst [vmem:[#allocation2 + $0x5] sm:$0xff] %v2150_v8  ;;  %v7341_v9 = vld [vmem:[%s9344_s6 + $0x350] sm:$0xff]  }
 0x240   : > { %2302 = vst [vmem:[#allocation2 + $0xd] sm:$0xff] %v2151_v10  ;;  %v8280_v11 = vpack.c.bf16 %v2151_v10, %v2150_v8  ;;  %v7342_v10 = vld [vmem:[%s9344_s6 + $0x318] sm:$0xff]  }
 0x242   : > { %7072 = vmatprep.subr.bf16.mxu1 %v8280_v11 }
 0x243   : > { %7074 = vmatpush3.bf16.msra.mxu1 %v8280_v11 }
 0x244   : > { %6671 = vmatprep.subr.bf16.mxu1 %v8180_v32 }
 0x245   : > { %v2352_v14 = vld [vmem:[#allocation2 + $0x1] sm:$0xff] }
 0x246   : > { %6640 = vmatmul.mubr.msk.f32.vlgmr.msra.gmra.mrb[10].mxu1 %vm2160_vm7, %v2153_v19  ;;  %v8304_v21 = vld [vmem:[#allocation2] sm:$0xff] }
 0x247   : > { %v8306_v22 = vld [vmem:[#allocation2 + $0x2] sm:$0xff]  ;;  %6672 = vmatpush3.bf16.msra.mxu1 %v7320_v60  ;;  %6642 = vmatprep.mubr.msk.f32.mxu1 %vm2160_vm7, %v2154_v13  ;;  %v8315_v26 = vld [vmem:[#allocation2 + $0xa] sm:$0xff]  ;;  %v8330_v33 = vld [vmem:[#allocation2 + $0x12] sm:$0xff] }
 0x248   : > { %v8308_v23 = vld [vmem:[#allocation2 + $0x4] sm:$0xff]  ;;  %6673 = vmatprep.subr.bf16.mxu1 %v8180_v32  ;;  %v8319_v28 = vld [vmem:[#allocation2 + $0xc] sm:$0xff]  ;;  %v5632_v3 = vpack.c.bf16 %v8315_v26, %v8306_v22  ;;  %v7343_v13 = vld [vmem:[%s9344_s6 + $0x358] sm:$0xff]  }
 0x249   : > { %v8310_v24 = vld [vmem:[#allocation2 + $0x9] sm:$0xff]  ;;  %v8328_v31 = vld [vmem:[#allocation2 + $0x11] sm:$0xff] }
 0x24a   : > { %v8313_v25 = vld [vmem:[#allocation2 + $0x8] sm:$0xff]  ;;  %v2354_v27 = vpack.c.bf16 %v8310_v24, %v2352_v14  ;;  %v8326_v30 = vld [vmem:[#allocation2 + $0x10] sm:$0xff]  ;;  %6643 = vmatmul.mubr.msk.f32.gmra.mrb[44].mxu1 %vm2160_vm7, %v2155_v20  ;;  %3525 = vst [vmem:[#allocation2 + $0x18] sm:$0xff] %v8180_v32  ;;  %v7344_v14 = vld [vmem:[%s9344_s6 + $0x320] sm:$0xff]  }
 0x24b   : > { %v8321_v29 = vld [vmem:[#allocation2 + $0x6] sm:$0xff]  ;;  %v8323_v17 = vld [vmem:[#allocation2 + $0xe] sm:$0xff]  ;;  %v5737_v34 = vpack.c.bf16 %v8326_v30, %v8313_v25  ;;  %6674 = vmatpush3.bf16.msra.mxu1 %v7322_v16  ;;  %6645 = vmatprep.mubr.msk.f32.mxu1 %vm2160_vm7, %v2156_v45  ;;  %v5605_v63 = vpack.c.bf16 %v8313_v25, %v8304_v21  ;;  %v7351_v45 = vld [vmem:[%s9344_s6 + $0x378] sm:$0xff]  }
 0x24c   : > { %3522 = vst [vmem:[#allocation2] sm:$0xff] %v8180_v32  ;;  %3523 = vst [vmem:[#allocation2 + $0x8] sm:$0xff] %v8180_v32  ;;  %6668 = vmatmul.mubr.bf16.vlgmr.msra.gmra.mrb[8].mxu0 %v2354_v27  ;;  %6675 = vmatprep.subr.bf16.mxu1 %v8180_v32  ;;  %v7346_v16 = vld [vmem:[%s9344_s6 + $0x328] sm:$0xff]   ;;  %v7348_v21 = vld [vmem:[%s9344_s6 + $0x330] sm:$0xff]  }
 0x24d   : > { %3524 = vst [vmem:[#allocation2 + $0x10] sm:$0xff] %v8180_v32  ;;  %6692 = vmatpush3.bf16.msra.mxu0 %v7321_v15  ;;  %6707 = vmatprep.mubr.msk.bf16.mxu0 %vm7567_vm1, %v8180_v32  ;;  %v7345_v15 = vld [vmem:[%s9344_s6 + $0x360] sm:$0xff]   ;;  %v7347_v20 = vld [vmem:[%s9344_s6 + $0x368] sm:$0xff]   ;;  %v7349_v22 = vld [vmem:[%s9344_s6 + $0x370] sm:$0xff]  }
 0x24e   : > { %6693 = vmatprep.subr.bf16.mxu0 %v8180_v32  ;;  %v1191_v37 = vpop.f32.mrb[16].mxu1  ;;  %6646 = vmatmul.mubr.msk.f32.gmra.mrb[46].mxu1 %vm2160_vm7, %v2157_v18  ;;  %v7350_v27 = vld [vmem:[%s9344_s6 + $0x338] sm:$0xff]   ;;  %v7353_v18 = vld [vmem:[%s9344_s6 + $0x3c0] sm:$0xff]  }
 0x24f   : > { %v8360_v39 = vadd.f32 %v1191_v37, %v8259_v55  ;;  %6676 = vmatpush3.bf16.msra.mxu1 %v7324_v36  ;;  %v6493_v40 = vpop.f32.mrb[17].mxu1  ;;  %6648 = vmatprep.mubr.msk.f32.mxu1 %vm2160_vm7, %v2158_v38  ;;  %v2308_v55 = vand.u32 3, %v7728_v12  ;;  %v5659_v36 = vpack.c.bf16 %v8319_v28, %v8308_v23  ;;  %v7354_v37 = vld [vmem:[%s9344_s6 + $0x388] sm:$0xff]   ;;  %v7356_v28 = vld [vmem:[%s9344_s6 + $0x390] sm:$0xff]  }
 0x250   : > { %v1194_v46 = vpop.f32.mrb[18].mxu1  ;;  %6677 = vmatprep.subr.bf16.mxu1 %v8180_v32  ;;  %v7355_v23 = vld [vmem:[%s9344_s6 + $0x3c8] sm:$0xff]   ;;  %v7357_v40 = vld [vmem:[%s9344_s6 + $0x3d0] sm:$0xff]  }
 0x251   : > { %6694 = vmatpush3.bf16.msra.mxu0 %v7323_v35  ;;  %v6494_v47 = vpop.f32.mrb[19].mxu1  ;;  %vm2330_vm8 = vcmp.ge.s32.totalorder %v2308_v55, 1  ;;  %vm2552_vm11 = vcmp.le.s32.totalorder %v2308_v55, 2  ;;  %v7352_v35 = vld [vmem:[%s9344_s6 + $0x380] sm:$0xff]   ;;  %v7359_v46 = vld [vmem:[%s9344_s6 + $0x3d8] sm:$0xff]  }
 0x252   : > { %6695 = vmatprep.subr.bf16.mxu0 %v8180_v32  ;;  %6649 = vmatmul.mubr.msk.f32.gmra.mrb[48].mxu1 %vm2160_vm7, %v2159_v43  ;;  %vm8414_vm10 = vmpackc.low %vm2331_vm9, %vm2330_vm8  ;;  %v7360_v47 = vld [vmem:[%s9344_s6 + $0x3a0] sm:$0xff]   ;;  %v7367_v55 = vld [vmem:[%s9344_s6 + $0x3f8] sm:$0xff]  }
 0x253   : > { %6678 = vmatpush3.bf16.msra.mxu1 %v7326_v42  ;;  %6687 = vmatprep.mubr.msk.bf16.mxu1 %vm7567_vm1, %v8180_v32  ;;  %vm8430_vm13 = vmpackc.low %vm2553_vm12, %vm2552_vm11 }
 0x254   : > { %6679 = vmatprep.subr.bf16.mxu1 %v8180_v32 }
 0x255   : > { %6696 = vmatpush3.bf16.msra.mxu0 %v7325_v41  ;;  %v7358_v41 = vld [vmem:[%s9344_s6 + $0x398] sm:$0xff]  }
 0x256   : > { %6697 = vmatprep.subr.bf16.mxu0 %v8180_v32 }
 0x257   : > { %6680 = vmatpush3.bf16.msra.mxu1 %v7328_v49  ;;  %v7362_v49 = vld [vmem:[%s9344_s6 + $0x3a8] sm:$0xff]  }
 0x258   : > { %6681 = vmatprep.subr.bf16.mxu1 %v8180_v32 }
 0x259   : > { %6698 = vmatpush3.bf16.msra.mxu0 %v7327_v48  ;;  %v7361_v48 = vld [vmem:[%s9344_s6 + $0x3e0] sm:$0xff]  }
 0x25a   : > { %6699 = vmatprep.subr.bf16.mxu0 %v8180_v32 }
 0x25b   : > { %6682 = vmatpush3.bf16.msra.mxu1 %v7330_v52  ;;  %v7364_v52 = vld [vmem:[%s9344_s6 + $0x3b0] sm:$0xff]  }
 0x25c   : > { %6683 = vmatprep.subr.bf16.mxu1 %v8180_v32 }
 0x25d   : > { %6700 = vmatpush3.bf16.msra.mxu0 %v7329_v51  ;;  %v7363_v51 = vld [vmem:[%s9344_s6 + $0x3e8] sm:$0xff]  }
 0x25e   : > { %6701 = vmatprep.subr.bf16.mxu0 %v8180_v32 }
 0x25f   : > { %6684 = vmatpush3.bf16.msra.mxu1 %v7332_v54  ;;  %v7366_v54 = vld [vmem:[%s9344_s6 + $0x3b8] sm:$0xff]  }
 0x260   : > { %6685 = vmatprep.subr.bf16.mxu1 %v8180_v32 }
 0x261   : > { %6702 = vmatpush3.bf16.msra.mxu0 %v7331_v53  ;;  %v7365_v53 = vld [vmem:[%s9344_s6 + $0x3f0] sm:$0xff]  }
 0x262   : > { %6703 = vmatprep.subr.bf16.mxu0 %v8180_v32 }
 0x263   : > { %6686 = vmatpush3.bf16.msra.mxu1 %v7334_v58  ;;  %v7369_v58 = vld [vmem:[%s9344_s6 + $0x440] sm:$0xff]  }
 0x264   : > { %6711 = vmatprep.subr.bf16.mxu1 %v8180_v32 }
 0x265   : > { %6704 = vmatpush3.bf16.msra.mxu0 %v7333_v57  ;;  %v5710_v57 = vpack.c.bf16 %v8323_v17, %v8321_v29  ;;  %v7371_v29 = vld [vmem:[%s9344_s6 + $0x448] sm:$0xff]   ;;  %v7372_v17 = vld [vmem:[%s9344_s6 + $0x410] sm:$0xff]  }
 0x266   : > { %6705 = vmatprep.subr.bf16.mxu0 %v8180_v32  ;;  %6688 = vmatmul.mubr.msk.bf16.vlgmr.msra.gmra.mrb[52].mxu1 %vm8414_vm10, %v5605_v63 }
 0x267   : > { %6712 = vmatpush3.bf16.msra.mxu1 %v7336_v62  ;;  %6727 = vmatprep.mubr.msk.bf16.mxu1 %vm7567_vm1, %v8180_v32  ;;  %v7374_v62 = vld [vmem:[%s9344_s6 + $0x418] sm:$0xff]  }
 0x268   : > { %6713 = vmatprep.subr.bf16.mxu1 %v8180_v32 }
 0x269   : > { %6706 = vmatpush3.bf16.msra.mxu0 %v7335_v61  ;;  %v7370_v61 = vld [vmem:[%s9344_s6 + $0x408] sm:$0xff]  }
 0x26a   : > { %6731 = vmatprep.subr.bf16.mxu0 %v8180_v32 }
 0x26b   : > { %6714 = vmatpush3.bf16.msra.mxu1 %v7338_v2  ;;  %v7375_v2 = vld [vmem:[%s9344_s6 + $0x458] sm:$0xff]  }
 0x26c   : > { %6708 = vmatmul.mubr.msk.bf16.vlgmr.msra.gmra.mrb[12].mxu0 %vm8430_vm13, %v5632_v3  ;;  %6715 = vmatprep.subr.bf16.mxu1 %v8180_v32  ;;  %v7376_v3 = vld [vmem:[%s9344_s6 + $0x420] sm:$0xff]  }
 0x26d   : > { %6732 = vmatpush3.bf16.msra.mxu0 %v7337_v1  ;;  %6747 = vmatprep.mubr.msk.bf16.mxu0 %vm7567_vm1, %v8180_v32 }
 0x26e   : > { %6733 = vmatprep.subr.bf16.mxu0 %v8180_v32  ;;  %v1300_v6 = vpop.f32.mrb[20].mxu1 }
 0x26f   : > { %v1306_v7 = vadd.f32 %v1300_v6, %v8360_v39  ;;  %6716 = vmatpush3.bf16.msra.mxu1 %v7340_v5  ;;  %v6513_v8 = vpop.f32.mrb[21].mxu1  ;;  %v7378_v5 = vld [vmem:[%s9344_s6 + $0x428] sm:$0xff]  }
 0x270   : > { %v1303_v19 = vpop.f32.mrb[22].mxu1  ;;  %6717 = vmatprep.subr.bf16.mxu1 %v8180_v32  ;;  %v7379_v6 = vld [vmem:[%s9344_s6 + $0x468] sm:$0xff]   ;;  %v7381_v8 = vld [vmem:[%s9344_s6 + $0x470] sm:$0xff]  }
 0x271   : > { %6734 = vmatpush3.bf16.msra.mxu0 %v7339_v4  ;;  %v6514_v60 = vpop.f32.mrb[23].mxu1  ;;  %v7377_v4 = vld [vmem:[%s9344_s6 + $0x460] sm:$0xff]   ;;  %v7383_v19 = vld [vmem:[%s9344_s6 + $0x478] sm:$0xff]  }
 0x272   : > { %6735 = vmatprep.subr.bf16.mxu0 %v8180_v32  ;;  %v3117_v60 = vpack.c.bf16 %v8328_v31, %v8310_v24  ;;  %v7387_v24 = vld [vmem:[%s9356_s3 + $0x18] sm:$0xff]  }
 0x273   : > { %6718 = vmatpush3.bf16.msra.mxu1 %v7342_v10  ;;  %v7384_v10 = vld [vmem:[%s9356_s3] sm:$0xff]  }
 0x274   : > { %6719 = vmatprep.subr.bf16.mxu1 %v8180_v32 }
 0x275   : > { %6736 = vmatpush3.bf16.msra.mxu0 %v7341_v9  ;;  %v7382_v9 = vld [vmem:[%s9344_s6 + $0x438] sm:$0xff]  }
 0x276   : > { %6737 = vmatprep.subr.bf16.mxu0 %v8180_v32 }
 0x277   : > { %6720 = vmatpush3.bf16.msra.mxu1 %v7344_v14  ;;  %v7392_v14 = vld [vmem:[%s7831_s22] sm:$0xff]  }
 0x278   : > { %6721 = vmatprep.subr.bf16.mxu1 %v8180_v32 }
 0x279   : > { %6738 = vmatpush3.bf16.msra.mxu0 %v7343_v13  ;;  %v7385_v13 = vld [vmem:[%s9356_s3 + $0x8] sm:$0xff]  }
 0x27a   : > { %6739 = vmatprep.subr.bf16.mxu0 %v8180_v32 }
 0x27b   : > { %6722 = vmatpush3.bf16.msra.mxu1 %v7346_v16  ;;  %v7386_v16 = vld [vmem:[%s9356_s3 + $0x10] sm:$0xff]  }
 0x27c   : > { %6723 = vmatprep.subr.bf16.mxu1 %v8180_v32 }
 0x27d   : > { %6740 = vmatpush3.bf16.msra.mxu0 %v7345_v15  ;;  %v5788_v15 = vpack.c.bf16 %v8330_v33, %v8315_v26  ;;  %v7388_v33 = vld [vmem:[%s9356_s3 + $0x20] sm:$0xff]  }
 0x27e   : > { %6741 = vmatprep.subr.bf16.mxu0 %v8180_v32 }
 0x27f   : > { %6724 = vmatpush3.bf16.msra.mxu1 %v7348_v21 }
 0x280   : > { %6725 = vmatprep.subr.bf16.mxu1 %v8180_v32 }
 0x281   : > { %6742 = vmatpush3.bf16.msra.mxu0 %v7347_v20 }
 0x282   : > { %6743 = vmatprep.subr.bf16.mxu0 %v8180_v32 }
 0x283   : > { %6726 = vmatpush3.bf16.msra.mxu1 %v7350_v27  ;;  %v7390_v27 = vld [vmem:[%s9356_s3 + $0x30] sm:$0xff]  }
 0x284   : > { %6751 = vmatprep.subr.bf16.mxu1 %v8180_v32 }
 0x285   : > { %6744 = vmatpush3.bf16.msra.mxu0 %v7349_v22  ;;  %v7389_v22 = vld [vmem:[%s9356_s3 + $0x28] sm:$0xff]  }
 0x286   : > { %6745 = vmatprep.subr.bf16.mxu0 %v8180_v32  ;;  %6728 = vmatmul.mubr.msk.bf16.vlgmr.msra.gmra.mrb[56].mxu1 %vm8414_vm10, %v5659_v36  ;;  %v7394_v36 = vld [vmem:[%s7831_s22 + $0x10] sm:$0xff]  }
 0x287   : > { %6752 = vmatpush3.bf16.msra.mxu1 %v7352_v35  ;;  %6767 = vmatprep.mubr.msk.bf16.mxu1 %vm7567_vm1, %v8180_v32  ;;  %v7393_v35 = vld [vmem:[%s7831_s22 + $0x8] sm:$0xff]  }
 0x288   : > { %6753 = vmatprep.subr.bf16.mxu1 %v8180_v32 }
 0x289   : > { %6746 = vmatpush3.bf16.msra.mxu0 %v7351_v45  ;;  %v7391_v45 = vld [vmem:[%s9356_s3 + $0x38] sm:$0xff]  }
 0x28a   : > { %6771 = vmatprep.subr.bf16.mxu0 %v8180_v32 }
 0x28b   : > { %6754 = vmatpush3.bf16.msra.mxu1 %v7354_v37 }
 0x28c   : > { %6748 = vmatmul.mubr.bf16.vlgmr.msra.gmra.mrb[16].mxu0 %v8280_v11  ;;  %6755 = vmatprep.subr.bf16.mxu1 %v8180_v32 }
 0x28d   : > { %6772 = vmatpush3.bf16.msra.mxu0 %v7353_v18  ;;  %6787 = vmatprep.mubr.msk.bf16.mxu0 %vm7567_vm1, %v8180_v32  ;;  %v7395_v18 = vld [vmem:[%s7831_s22 + $0x18] sm:$0xff]   ;;  %s8695_s22 = scalar_lea.vmem [#allocation5], %s5249_s20 }
 0x28e   : > { %6773 = vmatprep.subr.bf16.mxu0 %v8180_v32  ;;  %v1408_v38 = vpop.f32.mrb[24].mxu1 }
 0x28f   : > { %v1414_v11 = vadd.f32 %v1408_v38, %v1306_v7  ;;  %6756 = vmatpush3.bf16.msra.mxu1 %v7356_v28  ;;  %v6533_v39 = vpop.f32.mrb[25].mxu1  ;;  %v7380_v7 = vld [vmem:[%s9344_s6 + $0x430] sm:$0xff]  }
 0x290   : > { %v1411_v42 = vpop.f32.mrb[26].mxu1  ;;  %6757 = vmatprep.subr.bf16.mxu1 %v8180_v32 }
 0x291   : > { %6774 = vmatpush3.bf16.msra.mxu0 %v7355_v23  ;;  %v6534_v43 = vpop.f32.mrb[27].mxu1 }
 0x292   : > { %6775 = vmatprep.subr.bf16.mxu0 %v8180_v32 }
 0x293   : > { %6758 = vmatpush3.bf16.msra.mxu1 %v7358_v41  ;;  %v5528_v41 = vld [vmem:[%s9321_s8 + $0x2] ss:$0 sm:$0xff] }
 0x294   : > { %6759 = vmatprep.subr.bf16.mxu1 %v8180_v32 }
 0x295   : > { %6776 = vmatpush3.bf16.msra.mxu0 %v7357_v40 }
 0x296   : > { %6777 = vmatprep.subr.bf16.mxu0 %v8180_v32 }
 0x297   : > { %6760 = vmatpush3.bf16.msra.mxu1 %v7360_v47 }
 0x298   : > { %6761 = vmatprep.subr.bf16.mxu1 %v8180_v32 }
 0x299   : > { %6778 = vmatpush3.bf16.msra.mxu0 %v7359_v46 }
 0x29a   : > { %6779 = vmatprep.subr.bf16.mxu0 %v8180_v32 }
 0x29b   : > { %6762 = vmatpush3.bf16.msra.mxu1 %v7362_v49 }
 0x29c   : > { %6763 = vmatprep.subr.bf16.mxu1 %v8180_v32 }
 0x29d   : > { %6780 = vmatpush3.bf16.msra.mxu0 %v7361_v48 }
 0x29e   : > { %6781 = vmatprep.subr.bf16.mxu0 %v8180_v32 }
 0x29f   : > { %6764 = vmatpush3.bf16.msra.mxu1 %v7364_v52 }
 0x2a0   : > { %6765 = vmatprep.subr.bf16.mxu1 %v8180_v32 }
 0x2a1   : > { %6782 = vmatpush3.bf16.msra.mxu0 %v7363_v51 }
 0x2a2   : > { %6783 = vmatprep.subr.bf16.mxu0 %v8180_v32 }
 0x2a3   : > { %6766 = vmatpush3.bf16.msra.mxu1 %v7366_v54 }
 0x2a4   : > { %6791 = vmatprep.subr.bf16.mxu1 %v8180_v32 }
 0x2a5   : > { %6784 = vmatpush3.bf16.msra.mxu0 %v7365_v53 }
 0x2a6   : > { %6785 = vmatprep.subr.bf16.mxu0 %v8180_v32  ;;  %6768 = vmatmul.mubr.msk.bf16.vlgmr.msra.gmra.mrb[60].mxu1 %vm8430_vm13, %v5710_v57 }
 0x2a7   : > { %6792 = vmatpush3.bf16.msra.mxu1 %v7368_v56  ;;  %6807 = vmatprep.mubr.msk.bf16.mxu1 %vm7567_vm1, %v8180_v32 }
 0x2a8   : > { %6793 = vmatprep.subr.bf16.mxu1 %v8180_v32 }
 0x2a9   : > { %6786 = vmatpush3.bf16.msra.mxu0 %v7367_v55 }
 0x2aa   : > { %6811 = vmatprep.subr.bf16.mxu0 %v8180_v32 }
 0x2ab   : > { %6794 = vmatpush3.bf16.msra.mxu1 %v7370_v61  ;;  %v7396_v61 = vld [vmem:[%s9344_s6 + $0x40] sm:$0xff]  }
 0x2ac   : > { %6788 = vmatmul.mubr.msk.bf16.vlgmr.msra.gmra.mrb[20].mxu0 %vm8414_vm10, %v5737_v34  ;;  %6795 = vmatprep.subr.bf16.mxu1 %v8180_v32 }
 0x2ad   : > { %6812 = vmatpush3.bf16.msra.mxu0 %v7369_v58  ;;  %6827 = vmatprep.mubr.msk.bf16.mxu0 %vm7567_vm1, %v8180_v32 }
 0x2ae   : > { %6813 = vmatprep.subr.bf16.mxu0 %v8180_v32  ;;  %v1516_v25 = vpop.f32.mrb[28].mxu1 }
 0x2af   : > { %v1522_v30 = vadd.f32 %v1516_v25, %v1414_v11  ;;  %6796 = vmatpush3.bf16.msra.mxu1 %v7372_v17  ;;  %v6553_v34 = vpop.f32.mrb[29].mxu1 }
 0x2b0   : > { %v1519_v63 = vpop.f32.mrb[30].mxu1  ;;  %6797 = vmatprep.subr.bf16.mxu1 %v8180_v32  ;;  %v7399_v34 = vld [vmem:[%s9344_s6 + $0x58] sm:$0xff]  }
 0x2b1   : > { %6814 = vmatpush3.bf16.msra.mxu0 %v7371_v29  ;;  %v6554_v1 = vpop.f32.mrb[31].mxu1  ;;  %v7397_v29 = vld [vmem:[%s9344_s6 + $0x48] sm:$0xff]  }
 0x2b2   : > { %6815 = vmatprep.subr.bf16.mxu0 %v8180_v32 }
 0x2b3   : > { %6798 = vmatpush3.bf16.msra.mxu1 %v7374_v62  ;;  %v7401_v62 = vld [vmem:[%s9344_s6 + $0x68] sm:$0xff]  }
 0x2b4   : > { %6799 = vmatprep.subr.bf16.mxu1 %v8180_v32 }
 0x2b5   : > { %6816 = vmatpush3.bf16.msra.mxu0 %v7373_v59  ;;  %v7400_v59 = vld [vmem:[%s9344_s6 + $0x60] sm:$0xff]  }
 0x2b6   : > { %6817 = vmatprep.subr.bf16.mxu0 %v8180_v32 }
 0x2b7   : > { %6800 = vmatpush3.bf16.msra.mxu1 %v7376_v3  ;;  %v7402_v3 = vld [vmem:[%s9344_s6 + $0x70] sm:$0xff]  }
 0x2b8   : > { %6801 = vmatprep.subr.bf16.mxu1 %v8180_v32 }
 0x2b9   : > { %6818 = vmatpush3.bf16.msra.mxu0 %v7375_v2 }
 0x2ba   : > { %6819 = vmatprep.subr.bf16.mxu0 %v8180_v32 }
 0x2bb   : > { %6802 = vmatpush3.bf16.msra.mxu1 %v7378_v5 }
 0x2bc   : > { %6803 = vmatprep.subr.bf16.mxu1 %v8180_v32 }
 0x2bd   : > { %6820 = vmatpush3.bf16.msra.mxu0 %v7377_v4 }
 0x2be   : > { %6821 = vmatprep.subr.bf16.mxu0 %v8180_v32 }
 0x2bf   : > { %6804 = vmatpush3.bf16.msra.mxu1 %v7380_v7 }
 0x2c0   : > { %6805 = vmatprep.subr.bf16.mxu1 %v8180_v32 }
 0x2c1   : > { %6822 = vmatpush3.bf16.msra.mxu0 %v7379_v6 }
 0x2c2   : > { %6823 = vmatprep.subr.bf16.mxu0 %v8180_v32 }
 0x2c3   : > { %6806 = vmatpush3.bf16.msra.mxu1 %v7382_v9 }
 0x2c4   : > { %6831 = vmatprep.subr.bf16.mxu1 %v7384_v10 }
 0x2c5   : > { %6824 = vmatpush3.bf16.msra.mxu0 %v7381_v8 }
 0x2c6   : > { %6825 = vmatprep.subr.bf16.mxu0 %v8180_v32  ;;  %6808 = vmatmul.mubr.bf16.vlgmr.msra.gmra.mrb[64].mxu1 %v3117_v60 }
 0x2c7   : > { %6832 = vmatpush3.bf16.msra.mxu1 %v7384_v10  ;;  %6847 = vmatprep.mubr.bf16.mxu1 %v7392_v14  ;;  %v7403_v10 = vld [vmem:[%s9344_s6 + $0x78] sm:$0xff]   ;;  %v8741_v14 = vld [vmem:[%s9344_s6] sm:$0xff]  }
 0x2c8   : > { %6833 = vmatprep.subr.bf16.mxu1 %v7385_v13 }
 0x2c9   : > { %6826 = vmatpush3.bf16.msra.mxu0 %v7383_v19 }
 0x2ca   : > { %6855 = vmatprep.subr.bf16.mxu0 %v7396_v61 }
 0x2cb   : > { %6834 = vmatpush3.bf16.msra.mxu1 %v7385_v13 }
 0x2cc   : > { %6828 = vmatmul.mubr.msk.bf16.vlgmr.msra.gmra.mrb[24].mxu0 %vm8430_vm13, %v5788_v15  ;;  %6835 = vmatprep.subr.bf16.mxu1 %v7386_v16 }
 0x2cd   : > { %6856 = vmatpush3.bf16.msra.mxu0 %v7396_v61 }
 0x2ce   : > { %v1625_v31 = vpop.f32.mrb[32].mxu1  ;;  %6857 = vmatprep.subr.bf16.mxu0 %v7397_v29 }
 0x2cf   : > { %v1631_v20 = vadd.f32 %v1625_v31, %v1522_v30  ;;  %6836 = vmatpush3.bf16.msra.mxu1 %v7386_v16  ;;  %v6573_v21 = vpop.f32.mrb[33].mxu1  ;;  %v7398_v30 = vld [vmem:[%s9344_s6 + $0x50] sm:$0xff]  }
 0x2d0   : > { %v1628_v26 = vpop.f32.mrb[34].mxu1  ;;  %6837 = vmatprep.subr.bf16.mxu1 %v7387_v24 }
 0x2d1   : > { %v6574_v0 = vpop.f32.mrb[35].mxu1  ;;  %6858 = vmatpush3.bf16.msra.mxu0 %v7397_v29 }
 0x2d2   : > { %6859 = vmatprep.subr.bf16.mxu0 %v7398_v30 }
 0x2d3   : > { %6838 = vmatpush3.bf16.msra.mxu1 %v7387_v24 }
 0x2d4   : > { %6839 = vmatprep.subr.bf16.mxu1 %v7388_v33 }
 0x2d5   : > { %6860 = vmatpush3.bf16.msra.mxu0 %v7398_v30 }
 0x2d6   : > { %6861 = vmatprep.subr.bf16.mxu0 %v7399_v34 }
 0x2d7   : > { %6840 = vmatpush3.bf16.msra.mxu1 %v7388_v33 }
 0x2d8   : > { %6841 = vmatprep.subr.bf16.mxu1 %v7389_v22 }
 0x2d9   : > { %6862 = vmatpush3.bf16.msra.mxu0 %v7399_v34 }
 0x2da   : > { %6863 = vmatprep.subr.bf16.mxu0 %v7400_v59 }
 0x2db   : > { %6842 = vmatpush3.bf16.msra.mxu1 %v7389_v22 }
 0x2dc   : > { %6843 = vmatprep.subr.bf16.mxu1 %v7390_v27 }
 0x2dd   : > { %6864 = vmatpush3.bf16.msra.mxu0 %v7400_v59 }
 0x2de   : > { %6865 = vmatprep.subr.bf16.mxu0 %v7401_v62 }
 0x2df   : > { %6844 = vmatpush3.bf16.msra.mxu1 %v7390_v27 }
 0x2e0   : > { %6845 = vmatprep.subr.bf16.mxu1 %v7391_v45 }
 0x2e1   : > { %6866 = vmatpush3.bf16.msra.mxu0 %v7401_v62 }
 0x2e2   : > { %6867 = vmatprep.subr.bf16.mxu0 %v7402_v3 }
 0x2e3   : > { %6846 = vmatpush3.bf16.msra.mxu1 %v7391_v45 }
 0x2e5   : > { %6868 = vmatpush3.bf16.msra.mxu0 %v7402_v3 }
 0x2e6   : > { %6848 = vmatmul.mubr.bf16.vlgmr.msra.gmra.mrb[68].mxu1 %v7393_v35  ;;  %6869 = vmatprep.subr.bf16.mxu0 %v7403_v10 }
 0x2e7   : > { %6851 = vmatprep.mubr.bf16.mxu1 %v7394_v36 }
 0x2e9   : > { %6870 = vmatpush3.bf16.msra.mxu0 %v7403_v10  ;;  %v3687_v10 = vld [vmem:[#allocation2 + $0x1] sm:$0xff] }
 0x2ea   : > { %6879 = vmatprep.subr.bf16.mxu0 %v8741_v14 }
 0x2ee   : > { %6852 = vmatmul.mubr.bf16.gmra.mrb[72].mxu1 %v7395_v18  ;;  %v1733_v37 = vpop.f32.mrb[36].mxu1 }
 0x2ef   : > { %v1739_v23 = vadd.f32 %v1733_v37, %v1631_v20  ;;  %v6593_v28 = vpop.f32.mrb[37].mxu1 }
 0x2f0   : > { %v1736_v38 = vpop.f32.mrb[38].mxu1 }
 0x2f1   : > { %v6594_v11 = vpop.f32.mrb[39].mxu1  ;;  %v1847_v39 = vadd.f32 %v8229_v44, %v1739_v23 }
 0x30e   : > { %v1950_v40 = vpop.f32.mrb[40].mxu1 }
 0x30f   : > { %v1956_v42 = vadd.f32 %v1950_v40, %v1847_v39  ;;  %v6633_v43 = vpop.f32.mrb[41].mxu1 }
 0x310   : > { %v1953_v46 = vpop.f32.mrb[42].mxu1 }
 0x311   : > { %v1962_v47 = vadd.f32 %v5528_v41, %v1956_v42  ;;  %v6634_v48 = vpop.f32.mrb[43].mxu1 }
 0x313   : > { %1963 = vst [vmem:[%s8695_s22] sm:$0xf] %v1962_v47 }
 0x319   : > { %v8698_v49 = vpop.f32.mrb[10].mxu1 }
 0x31a   : > { %v8700_v44 = vpop.f32.mrb[11].mxu1 }
 0x31d   : > { %v8702_v52 = vpop.f32.mrb[44].mxu1 }
 0x31e   : > { %v8704_v54 = vpop.f32.mrb[45].mxu1 }
 0x31f   : > { %v2454_v51 = vpop.f32.mrb[8].mxu0 }
 0x320   : > { %v6669_v53 = vpop.f32.mrb[9].mxu0 }
 0x321   : > { %v2457_v55 = vpop.f32.mrb[10].mxu0  ;;  %v8706_v57 = vpop.f32.mrb[46].mxu1 }
 0x322   : > { %v6670_v56 = vpop.f32.mrb[11].mxu0  ;;  %v8708_v58 = vpop.f32.mrb[47].mxu1 }
 0x323   : > { %v5790_v56 = vld [vmem:[%s9321_s8 + $0x1] ss:$0 sm:$0xff] }
 0x325   : > { %v8716_v17 = vpop.f32.mrb[48].mxu1 }
 0x326   : > { %v8718_v25 = vpop.f32.mrb[49].mxu1 }
 0x339   : > { %v2543_v63 = vpop.f32.mrb[52].mxu1 }
 0x33a   : > { %v2544_v1 = vadd.f32 %v2543_v63, %v2454_v51  ;;  %v6689_v2 = vpop.f32.mrb[53].mxu1 }
 0x33b   : > { %v2546_v4 = vpop.f32.mrb[54].mxu1 }
 0x33c   : > { %v2547_v5 = vadd.f32 %v2546_v4, %v2457_v55  ;;  %v6690_v6 = vpop.f32.mrb[55].mxu1 }
 0x33f   : > { %v2656_v7 = vpop.f32.mrb[12].mxu0 }
 0x340   : > { %v2663_v8 = vadd.f32 %v2656_v7, %v2544_v1  ;;  %v6709_v9 = vpop.f32.mrb[13].mxu0  ;;  %v5791_v1 = vld [vmem:[%s9320_s7] ss:$0 sm:$0xff] }
 0x341   : > { %v2659_v19 = vpop.f32.mrb[14].mxu0 }
 0x342   : > { %v2664_v60 = vadd.f32 %v2659_v19, %v2547_v5  ;;  %v6710_v13 = vpop.f32.mrb[15].mxu0 }
 0x359   : > { %v2769_v15 = vpop.f32.mrb[56].mxu1 }
 0x35a   : > { %v2776_v16 = vadd.f32 %v2769_v15, %v2663_v8  ;;  %v6729_v24 = vpop.f32.mrb[57].mxu1 }
 0x35b   : > { %v2772_v31 = vpop.f32.mrb[58].mxu1 }
 0x35c   : > { %v2777_v20 = vadd.f32 %v2772_v31, %v2664_v60  ;;  %v6730_v21 = vpop.f32.mrb[59].mxu1 }
 0x35d   : > { %v3551_v21 = vand.u32 7, %v7728_v12 }
 0x35f   : > { %v2880_v26 = vpop.f32.mrb[16].mxu0  ;;  %vm3651_vm14 = vcmp.ge.s32.totalorder %v3551_v21, 1  ;;  %vm3950_vm9 = vcmp.le.s32.totalorder %v3551_v21, 6  ;;  %v7416_v21 = vld [vmem:[%s9344_s6 + $0xa0] sm:$0xff]  }
 0x360   : > { %v2887_v33 = vadd.f32 %v2880_v26, %v2776_v16  ;;  %v6749_v0 = vpop.f32.mrb[17].mxu0  ;;  %v3558_v26 = vand.u32 7, %v8394_v50 }
 0x361   : > { %v2883_v22 = vpop.f32.mrb[18].mxu0 }
 0x362   : > { %v2888_v27 = vadd.f32 %v2883_v22, %v2777_v20  ;;  %v6750_v45 = vpop.f32.mrb[19].mxu0  ;;  %vm3652_vm15 = vcmp.ge.s32.totalorder %v3558_v26, 1  ;;  %vm3951_vm10 = vcmp.le.s32.totalorder %v3558_v26, 6  ;;  %v7417_v26 = vld [vmem:[%s9344_s6 + $0xa8] sm:$0xff]  }
 0x363   : > { %vm8825_vm0 = vmpackc.low %vm3652_vm15, %vm3651_vm14 }
 0x364   : > { %vm8946_vm12 = vmpackc.low %vm3951_vm10, %vm3950_vm9 }
 0x379   : > { %v2993_v35 = vpop.f32.mrb[60].mxu1 }
 0x37a   : > { %v3000_v36 = vadd.f32 %v2993_v35, %v2887_v33  ;;  %v6769_v18 = vpop.f32.mrb[61].mxu1 }
 0x37b   : > { %v2996_v37 = vpop.f32.mrb[62].mxu1  ;;  %v7406_v18 = vld [vmem:[%s9344_s6 + $0x10] sm:$0xff]  }
 0x37c   : > { %v3001_v23 = vadd.f32 %v2996_v37, %v2888_v27  ;;  %v6770_v28 = vpop.f32.mrb[63].mxu1 }
 0x37d   : > { %v7451_v28 = vld [vmem:[%s9344_s6 + $0x1b8] sm:$0xff]  }
 0x37f   : > { %v3106_v38 = vpop.f32.mrb[20].mxu0 }
 0x380   : > { %v3113_v11 = vadd.f32 %v3106_v38, %v3000_v36  ;;  %v6789_v39 = vpop.f32.mrb[21].mxu0  ;;  %v7407_v38 = vld [vmem:[%s9344_s6 + $0x18] sm:$0xff]  }
 0x381   : > { %v3109_v40 = vpop.f32.mrb[22].mxu0 }
 0x382   : > { %v3114_v41 = vadd.f32 %v3109_v40, %v3001_v23  ;;  %v6790_v42 = vpop.f32.mrb[23].mxu0 }
 0x383   : > { %v7408_v42 = vld [vmem:[%s9344_s6 + $0x20] sm:$0xff]  }
 0x399   : > { %v3217_v43 = vpop.f32.mrb[64].mxu1 }
 0x39a   : > { %v3224_v46 = vadd.f32 %v3217_v43, %v3113_v11  ;;  %v6809_v47 = vpop.f32.mrb[65].mxu1 }
 0x39b   : > { %v3220_v48 = vpop.f32.mrb[66].mxu1 }
 0x39c   : > { %v3225_v51 = vadd.f32 %v3220_v48, %v3114_v41  ;;  %v6810_v53 = vpop.f32.mrb[67].mxu1  ;;  %v7409_v48 = vld [vmem:[%s9344_s6 + $0x28] sm:$0xff]  }
 0x39f   : > { %v3330_v55 = vpop.f32.mrb[24].mxu0 }
 0x3a0   : > { %v3337_v61 = vadd.f32 %v3330_v55, %v3224_v46  ;;  %v6829_v29 = vpop.f32.mrb[25].mxu0  ;;  %v7410_v55 = vld [vmem:[%s9344_s6 + $0x30] sm:$0xff]  }
 0x3a1   : > { %v3333_v30 = vpop.f32.mrb[26].mxu0  ;;  %v8871_v29 = vadd.s32 32, %v7728_v12 }
 0x3a2   : > { %v3344_v34 = vadd.f32 %v5790_v56, %v3337_v61  ;;  %v3338_v59 = vadd.f32 %v3333_v30, %v3225_v51  ;;  %v6830_v62 = vpop.f32.mrb[27].mxu0  ;;  %v8868_v61 = vadd.s32 24, %v7728_v12  ;;  %v8874_v30 = vadd.s32 40, %v7728_v12 }
 0x3a4   : > { %3346 = vst [vmem:[%s8748_s16] sm:$0xff] %v3344_v34  ;;  %v3345_v63 = vadd.f32 %v5790_v56, %v3338_v59  ;;  %v8865_v56 = vadd.s32 16, %v7728_v12  ;;  %v7411_v34 = vld [vmem:[%s9344_s6 + $0x38] sm:$0xff]   ;;  %v3572_v62 = vand.u32 7, %v8868_v61 }
 0x3a6   : > { %3347 = vst [vmem:[%s8748_s16 + $0x8] sm:$0xff] %v3345_v63  ;;  %v3565_v59 = vand.u32 7, %v8865_v56  ;;  %v3579_v63 = vand.u32 7, %v8871_v29  ;;  %vm3654_vm2 = vcmp.ge.s32.totalorder %v3572_v62, 1  ;;  %vm3953_vm14 = vcmp.le.s32.totalorder %v3572_v62, 6  ;;  %v7421_v29 = vld [vmem:[%s9344_s6 + $0xc8] sm:$0xff]  }
 0x3a7   : > { %s7473_s16 = sshll.u32 %s7568_s1, 4  ;;  %s7474_s16 = int_to_ptr.vmem [resolvable:$false] %s7473_s16 }
 0x3a8   : > { %vm3653_vm1 = vcmp.ge.s32.totalorder %v3565_v59, 1  ;;  %vm3655_vm3 = vcmp.ge.s32.totalorder %v3579_v63, 1  ;;  %vm3952_vm13 = vcmp.le.s32.totalorder %v3565_v59, 6  ;;  %vm3954_vm15 = vcmp.le.s32.totalorder %v3579_v63, 6  ;;  %s7475_s2 = scalar_lea.vmem %s7474_s16, 512  ;;  %p7476_p0 = scmp.lt.s32.totalorder %s9230_s23, %s7474_s16 }
 0x3a9   : > { %vm8898_vm5 = vmpackc.low %vm3654_vm2, %vm3653_vm1  ;;  %p7477_p1 = scmp.lt.s32.totalorder %s7475_s2, %s7469_s15 }
 0x3aa   : > { %vm8974_vm2 = vmpackc.low %vm3953_vm14, %vm3952_vm13 }
 0x3ab   : > { %p7478_p2 = por %p7477_p1, %p7476_p0 }
 0x3ad   : > { %p7479_p3 = pnand %p7478_p2, %p7472_p13 }
 0x3b9   : > { %v6849_v2 = vpop.f32.mrb[68].mxu1 }
 0x3ba   : > { %v3492_v3 = vadd.f32 %v6849_v2, %v5791_v1  ;;  %v3483_v4 = vpop.f32.mrb[69].mxu1  ;;  %v7412_v2 = vld [vmem:[%s9344_s6 + $0x80] sm:$0xff]  }
 0x3bb   : > { %v3484_v5 = vadd.f32 %v5791_v1, %v3483_v4  ;;  %v6850_v6 = vpop.f32.mrb[70].mxu1  ;;  %v8890_v4 = vadd.s32 56, %v7728_v12 }
 0x3bc   : > { %v8756_v7 = vadd.f32 %v3492_v3, %v8704_v54  ;;  %v3495_v8 = vadd.f32 %v6850_v6, %v5791_v1  ;;  %v3486_v9 = vpop.f32.mrb[71].mxu1  ;;  %v8887_v3 = vadd.s32 48, %v7728_v12  ;;  %v7415_v12 = vld [vmem:[%s9344_s6 + $0x98] sm:$0xff]  }
 0x3bd   : > { %v8759_v19 = vadd.f32 %v3484_v5, %v8700_v44  ;;  %v3487_v60 = vadd.f32 %v5791_v1, %v3486_v9  ;;  %v7455_v9 = vld [vmem:[%s9344_s6 + $0x1d8] sm:$0xff]  }
 0x3be   : > { %3535 = vst [vmem:[#allocation2 + $0x19] sm:$0xff] %v8756_v7  ;;  %v8763_v13 = vadd.f32 %v8702_v52, %v3495_v8 }
 0x3bf   : > { %3533 = vst [vmem:[#allocation2 + $0x9] sm:$0xff] %v8759_v19  ;;  %v8767_v15 = vadd.f32 %v8698_v49, %v3487_v60  ;;  %v3695_v54 = vpack.c.bf16 %v8759_v19, %v3687_v10  ;;  %v7405_v49 = vld [vmem:[%s9344_s6 + $0x8] sm:$0xff]  }
 0x3c0   : > { %3536 = vst [vmem:[#allocation2 + $0x21] sm:$0xff] %v8763_v13  ;;  %v4275_v16 = vpack.c.bf16 %v8763_v13, %v8756_v7 }
 0x3c1   : > { %3534 = vst [vmem:[#allocation2 + $0x11] sm:$0xff] %v8767_v15  ;;  %v6853_v44 = vpop.f32.mrb[72].mxu1  ;;  %6871 = vmatprep.mubr.bf16.mxu0 %v3695_v54  ;;  %v8776_v52 = vpack.c.bf16 %v8756_v7, %v8767_v15  ;;  %v4274_v24 = vpack.c.bf16 %v8767_v15, %v8759_v19  ;;  %v7435_v19 = vld [vmem:[%s9344_s6 + $0x138] sm:$0xff]   ;;  %v7436_v15 = vld [vmem:[%s9344_s6 + $0x140] sm:$0xff]  }
 0x3c2   : > { %v3508_v31 = vadd.f32 %v6853_v44, %v5791_v1  ;;  %v3499_v20 = vpop.f32.mrb[73].mxu1  ;;  %v7413_v44 = vld [vmem:[%s9344_s6 + $0x88] sm:$0xff]   ;;  %v7440_v7 = vld [vmem:[%s9344_s6 + $0x160] sm:$0xff]  }
 0x3c3   : > { %v3500_v33 = vadd.f32 %v5791_v1, %v3499_v20  ;;  %v6854_v0 = vpop.f32.mrb[74].mxu1  ;;  %6872 = vmatmul.mubr.bf16.vlgmr.msra.gmra.mrb[28].mxu0 %v8776_v52  ;;  %v7456_v54 = vld [vmem:[%s9344_s6 + $0x1e0] sm:$0xff]  }
 0x3c4   : > { %v8787_v22 = vadd.f32 %v3508_v31, %v8718_v25  ;;  %v3511_v27 = vadd.f32 %v6854_v0, %v5791_v1  ;;  %v3502_v45 = vpop.f32.mrb[75].mxu1  ;;  %6880 = vmatpush3.bf16.msra.mxu0 %v8741_v14  ;;  %v3600_v31 = vand.u32 7, %v8890_v4  ;;  %v7425_v4 = vld [vmem:[%s9344_s6 + $0xe8] sm:$0xff]  }
 0x3c5   : > { %v8791_v35 = vadd.f32 %v3500_v33, %v8708_v58  ;;  %v3503_v36 = vadd.f32 %v5791_v1, %v3502_v45  ;;  %6881 = vmatprep.subr.bf16.mxu0 %v7405_v49  ;;  %v3586_v1 = vand.u32 7, %v8874_v30  ;;  %v7414_v33 = vld [vmem:[%s9344_s6 + $0x90] sm:$0xff]  }
 0x3c6   : > { %3539 = vst [vmem:[#allocation2 + $0x39] sm:$0xff] %v8787_v22  ;;  %v8798_v37 = vadd.f32 %v8716_v17, %v3511_v27  ;;  %v8812_v14 = vld [vmem:[#allocation2 + $0x8] sm:$0xff]  ;;  %vm3658_vm8 = vcmp.ge.s32.totalorder %v3600_v31, 1  ;;  %v7458_v45 = vld [vmem:[%s9344_s6 + $0x1f0] sm:$0xff]  }
 0x3c7   : > { %3537 = vst [vmem:[#allocation2 + $0x29] sm:$0xff] %v8791_v35  ;;  %v8806_v58 = vadd.f32 %v8706_v57, %v3503_v36  ;;  %v8810_v25 = vpack.c.bf16 %v8791_v35, %v8763_v13  ;;  %v5837_v39 = vpack.c.bf16 %v8812_v14, %v8180_v32  ;;  %v8846_v43 = vld [vmem:[#allocation2 + $0x1a] sm:$0xff]  ;;  %vm3656_vm4 = vcmp.ge.s32.totalorder %v3586_v1, 1  ;;  %v7441_v13 = vld [vmem:[%s9344_s6 + $0x168] sm:$0xff]  }
 0x3c8   : > { %3540 = vst [vmem:[#allocation2 + $0x41] sm:$0xff] %v8798_v37  ;;  %6882 = vmatpush3.bf16.msra.mxu0 %v7405_v49  ;;  %v8815_v17 = vld [vmem:[#allocation2 + $0xa] sm:$0xff]  ;;  %v4277_v23 = vpack.c.bf16 %v8798_v37, %v8787_v22  ;;  %v8832_v11 = vld [vmem:[#allocation2 + $0x12] sm:$0xff]  ;;  %v8906_v60 = vld [vmem:[#allocation2 + $0x20] sm:$0xff]  ;;  %v3593_v49 = vand.u32 7, %v8887_v3  ;;  %vm3955_vm1 = vcmp.le.s32.totalorder %v3586_v1, 6 }
 0x3c9   : > { %3538 = vst [vmem:[#allocation2 + $0x31] sm:$0xff] %v8806_v58  ;;  %6875 = vmatprep.mubr.bf16.mxu0 %v8810_v25  ;;  %6883 = vmatprep.subr.bf16.mxu0 %v7406_v18  ;;  %v8823_v57 = vpack.c.bf16 %v8787_v22, %v8806_v58  ;;  %v4276_v40 = vpack.c.bf16 %v8806_v58, %v8791_v35  ;;  %v8892_v5 = vld [vmem:[#allocation2 + $0x10] sm:$0xff]  ;;  %v8894_v6 = vld [vmem:[#allocation2 + $0x18] sm:$0xff]  ;;  %vm8908_vm6 = vmpackc.low %vm3656_vm4, %vm3655_vm3 }
 0x3ca   : > { %v5969_v41 = vpack.c.bf16 %v8832_v11, %v8815_v17  ;;  %v8904_v10 = vpack.c.bf16 %v8894_v6, %v8892_v5  ;;  %vm3657_vm7 = vcmp.ge.s32.totalorder %v3593_v49, 1  ;;  %v8980_v56 = vpack.c.bf16 %v8846_v43, %v8832_v11  ;;  %vm8982_vm3 = vmpackc.low %vm3955_vm1, %vm3954_vm15  ;;  %v7423_v1 = vld [vmem:[%s9344_s6 + $0xd8] sm:$0xff]   ;;  %v7424_v3 = vld [vmem:[%s9344_s6 + $0xe0] sm:$0xff]  }
 0x3cb   : > { %6876 = vmatmul.mubr.bf16.gmra.mrb[32].mxu0 %v8823_v57  ;;  %vm8938_vm11 = vmpackc.low %vm3658_vm8, %vm3657_vm7  ;;  %vm3956_vm4 = vcmp.le.s32.totalorder %v3593_v49, 6  ;;  %vm3957_vm7 = vcmp.le.s32.totalorder %v3600_v31, 6  ;;  %v5912_v49 = vpack.c.bf16 %v8906_v60, %v8894_v6  ;;  %v7429_v31 = vld [vmem:[%s9344_s6 + $0x108] sm:$0xff]   ;;  %v7430_v6 = vld [vmem:[%s9344_s6 + $0x110] sm:$0xff]  }
 0x3cc   : > { %6884 = vmatpush3.bf16.msra.mxu0 %v7406_v18  ;;  %6895 = vmatprep.mubr.msk.bf16.mxu0 %vm8825_vm0, %v5837_v39  ;;  %v3942_v18 = vld [vmem:[#allocation2 + $0x2] sm:$0xff]  ;;  %v7418_v39 = vld [vmem:[%s9344_s6 + $0xb0] sm:$0xff]   ;;  %vm9004_vm8 = vmpackc.low %vm3957_vm7, %vm3956_vm4 }
 0x3cd   : > { %6885 = vmatprep.subr.bf16.mxu0 %v7407_v38  ;;  %v5873_v50 = vpack.c.bf16 %v8815_v17, %v3942_v18  ;;  %v7443_v22 = vld [vmem:[%s9344_s6 + $0x178] sm:$0xff]   ;;  %v7444_v35 = vld [vmem:[%s9344_s6 + $0x180] sm:$0xff]   ;;  %v7445_v58 = vld [vmem:[%s9344_s6 + $0x188] sm:$0xff]  }
 0x3ce   : > { %v8848_v32 = vld [vmem:[#allocation2 + $0x22] sm:$0xff]  ;;  %v7446_v17 = vld [vmem:[%s9344_s6 + $0x190] sm:$0xff]  }
 0x3cf   : > { %v5972_v46 = vpack.c.bf16 %v8848_v32, %v8846_v43  ;;  %v8896_v8 = vld [vmem:[#allocation2 + $0x28] sm:$0xff]  ;;  %v9002_v59 = vld [vmem:[#allocation2 + $0x3a] sm:$0xff] }
 0x3d0   : > { %6886 = vmatpush3.bf16.msra.mxu0 %v7407_v38  ;;  %v8852_v47 = vld [vmem:[#allocation2 + $0x2a] sm:$0xff]  ;;  %v8857_v51 = vld [vmem:[#allocation2 + $0x32] sm:$0xff]  ;;  %v8919_v20 = vpack.c.bf16 %v8896_v8, %v8906_v60  ;;  %v9051_v60 = vld [vmem:[#allocation2 + $0x40] sm:$0xff] }
 0x3d1   : > { %6887 = vmatprep.subr.bf16.mxu0 %v7408_v42  ;;  %v5975_v53 = vpack.c.bf16 %v8857_v51, %v8852_v47  ;;  %v8930_v0 = vld [vmem:[#allocation2 + $0x30] sm:$0xff]  ;;  %v8932_v27 = vld [vmem:[#allocation2 + $0x38] sm:$0xff]  ;;  %v8991_v30 = vpack.c.bf16 %v8852_v47, %v8848_v32  ;;  %v9010_v63 = vpack.c.bf16 %v9002_v59, %v8857_v51  ;;  %v7449_v43 = vld [vmem:[%s9344_s6 + $0x1a8] sm:$0xff]  }
 0x3d2   : > { %v8944_v36 = vpack.c.bf16 %v8932_v27, %v8930_v0  ;;  %v5918_v18 = vpack.c.bf16 %v9051_v60, %v8932_v27  ;;  %v7433_v27 = vld [vmem:[%s9344_s6 + $0x128] sm:$0xff]   ;;  %v7450_v32 = vld [vmem:[%s9344_s6 + $0x1b0] sm:$0xff]   ;;  %v7467_v38 = vld [vmem:[%s9344_s6 + $0x238] sm:$0xff]  }
 0x3d3   : > { %v7453_v47 = vld [vmem:[%s9344_s6 + $0x1c8] sm:$0xff]   ;;  %v7454_v51 = vld [vmem:[%s9344_s6 + $0x1d0] sm:$0xff]  }
 0x3d4   : > { %6888 = vmatpush3.bf16.msra.mxu0 %v7408_v42  ;;  %v7419_v42 = vld [vmem:[%s9344_s6 + $0xb8] sm:$0xff]  }
 0x3d5   : > { %6889 = vmatprep.subr.bf16.mxu0 %v7409_v48 }
 0x3d8   : > { %6890 = vmatpush3.bf16.msra.mxu0 %v7409_v48  ;;  %v7420_v48 = vld [vmem:[%s9344_s6 + $0xc0] sm:$0xff]  }
 0x3d9   : > { %6891 = vmatprep.subr.bf16.mxu0 %v7410_v55 }
 0x3dc   : > { %6892 = vmatpush3.bf16.msra.mxu0 %v7410_v55 }
 0x3dd   : > { %6893 = vmatprep.subr.bf16.mxu0 %v7411_v34 }
 0x3e0   : > { %6894 = vmatpush3.bf16.msra.mxu0 %v7411_v34  ;;  %v7422_v34 = vld [vmem:[%s9344_s6 + $0xd0] sm:$0xff]  }
 0x3e1   : > { %6903 = vmatprep.subr.bf16.mxu0 %v7412_v2 }
 0x3e3   : > { %6896 = vmatmul.mubr.msk.bf16.vlgmr.msra.gmra.mrb[28].mxu0 %vm8898_vm5, %v8904_v10 }
 0x3e4   : > { %6899 = vmatprep.mubr.msk.bf16.mxu0 %vm8908_vm6, %v8919_v20  ;;  %6904 = vmatpush3.bf16.msra.mxu0 %v7412_v2  ;;  %v5909_v2 = vpack.c.bf16 %v8892_v5, %v8812_v14  ;;  %v7426_v14 = vld [vmem:[%s9344_s6 + $0xf0] sm:$0xff]   ;;  %v7427_v5 = vld [vmem:[%s9344_s6 + $0xf8] sm:$0xff]  }
 0x3e5   : > { %6905 = vmatprep.subr.bf16.mxu0 %v7413_v44 }
 0x3e8   : > { %6906 = vmatpush3.bf16.msra.mxu0 %v7413_v44  ;;  %v7428_v44 = vld [vmem:[%s9344_s6 + $0x100] sm:$0xff]  }
 0x3e9   : > { %6907 = vmatprep.subr.bf16.mxu0 %v7414_v33 }
 0x3eb   : > { %6900 = vmatmul.mubr.msk.bf16.gmra.mrb[32].mxu0 %vm8938_vm11, %v8944_v36 }
 0x3ec   : > { %6908 = vmatpush3.bf16.msra.mxu0 %v7414_v33  ;;  %6919 = vmatprep.mubr.msk.bf16.mxu0 %vm8946_vm12, %v5873_v50  ;;  %v5915_v33 = vpack.c.bf16 %v8930_v0, %v8896_v8  ;;  %v7431_v8 = vld [vmem:[%s9344_s6 + $0x118] sm:$0xff]   ;;  %v7432_v0 = vld [vmem:[%s9344_s6 + $0x120] sm:$0xff]   ;;  %v7438_v50 = vld [vmem:[%s9344_s6 + $0x150] sm:$0xff]  }
 0x3ed   : > { %6909 = vmatprep.subr.bf16.mxu0 %v7415_v12 }
 0x3f0   : > { %6910 = vmatpush3.bf16.msra.mxu0 %v7415_v12  ;;  %v7434_v12 = vld [vmem:[%s9344_s6 + $0x130] sm:$0xff]  }
 0x3f1   : > { %6911 = vmatprep.subr.bf16.mxu0 %v7416_v21 }
 0x3f4   : > { %6912 = vmatpush3.bf16.msra.mxu0 %v7416_v21  ;;  %v7439_v21 = vld [vmem:[%s9344_s6 + $0x158] sm:$0xff]  }
 0x3f5   : > { %6913 = vmatprep.subr.bf16.mxu0 %v7417_v26 }
 0x3f8   : > { %6914 = vmatpush3.bf16.msra.mxu0 %v7417_v26  ;;  %v7461_v26 = vld [vmem:[%s9344_s6 + $0x208] sm:$0xff]  }
 0x3f9   : > { %6915 = vmatprep.subr.bf16.mxu0 %v7418_v39 }
 0x3fc   : > { %6916 = vmatpush3.bf16.msra.mxu0 %v7418_v39  ;;  %v7462_v39 = vld [vmem:[%s9344_s6 + $0x210] sm:$0xff]  }
 0x3fd   : > { %6917 = vmatprep.subr.bf16.mxu0 %v7419_v42 }
 0x400   : > { %6918 = vmatpush3.bf16.msra.mxu0 %v7419_v42  ;;  %v4739_v42 = vld [vmem:[#allocation2 + $0x49] sm:$0xff] }
 0x401   : > { %6927 = vmatprep.subr.bf16.mxu0 %v7420_v48 }
 0x403   : > { %6920 = vmatmul.mubr.msk.bf16.vlgmr.msra.gmra.mrb[28].mxu0 %vm8974_vm2, %v8980_v56 }
 0x404   : > { %6923 = vmatprep.mubr.msk.bf16.mxu0 %vm8982_vm3, %v8991_v30  ;;  %6928 = vmatpush3.bf16.msra.mxu0 %v7420_v48  ;;  %v4743_v48 = vpack.c.bf16 %v4739_v42, %v8798_v37  ;;  %v7465_v37 = vld [vmem:[%s9344_s6 + $0x228] sm:$0xff]  }
 0x405   : > { %6929 = vmatprep.subr.bf16.mxu0 %v7421_v29 }
 0x408   : > { %6930 = vmatpush3.bf16.msra.mxu0 %v7421_v29  ;;  %v7463_v29 = vld [vmem:[%s9344_s6 + $0x218] sm:$0xff]  }
 0x409   : > { %6931 = vmatprep.subr.bf16.mxu0 %v7422_v34 }
 0x40b   : > { %6924 = vmatmul.mubr.msk.bf16.gmra.mrb[32].mxu0 %vm9004_vm8, %v9010_v63 }
 0x40c   : > { %6932 = vmatpush3.bf16.msra.mxu0 %v7422_v34  ;;  %6943 = vmatprep.mubr.msk.bf16.mxu0 %vm8825_vm0, %v5909_v2 }
 0x40d   : > { %6933 = vmatprep.subr.bf16.mxu0 %v7423_v1 }
 0x410   : > { %6934 = vmatpush3.bf16.msra.mxu0 %v7423_v1 }
 0x411   : > { %6935 = vmatprep.subr.bf16.mxu0 %v7424_v3 }
 0x414   : > { %6936 = vmatpush3.bf16.msra.mxu0 %v7424_v3 }
 0x415   : > { %6937 = vmatprep.subr.bf16.mxu0 %v7425_v4 }
 0x418   : > { %6938 = vmatpush3.bf16.msra.mxu0 %v7425_v4 }
 0x419   : > { %6939 = vmatprep.subr.bf16.mxu0 %v7426_v14 }
 0x41c   : > { %6940 = vmatpush3.bf16.msra.mxu0 %v7426_v14 }
 0x41d   : > { %6941 = vmatprep.subr.bf16.mxu0 %v7427_v5 }
 0x420   : > { %6942 = vmatpush3.bf16.msra.mxu0 %v7427_v5 }
 0x421   : > { %6951 = vmatprep.subr.bf16.mxu0 %v7428_v44 }
 0x423   : > { %6944 = vmatmul.mubr.msk.bf16.vlgmr.msra.gmra.mrb[28].mxu0 %vm8898_vm5, %v5912_v49 }
 0x424   : > { %6947 = vmatprep.mubr.msk.bf16.mxu0 %vm8908_vm6, %v5915_v33  ;;  %6952 = vmatpush3.bf16.msra.mxu0 %v7428_v44 }
 0x425   : > { %6953 = vmatprep.subr.bf16.mxu0 %v7429_v31 }
 0x428   : > { %6954 = vmatpush3.bf16.msra.mxu0 %v7429_v31 }
 0x429   : > { %6955 = vmatprep.subr.bf16.mxu0 %v7430_v6 }
 0x42b   : > { %6948 = vmatmul.mubr.msk.bf16.gmra.mrb[32].mxu0 %vm8938_vm11, %v5918_v18 }
 0x42c   : > { %6956 = vmatpush3.bf16.msra.mxu0 %v7430_v6  ;;  %6967 = vmatprep.mubr.bf16.mxu0 %v4274_v24  ;;  %v7437_v24 = vld [vmem:[%s9344_s6 + $0x148] sm:$0xff]  }
 0x42d   : > { %6957 = vmatprep.subr.bf16.mxu0 %v7431_v8 }
 0x430   : > { %6958 = vmatpush3.bf16.msra.mxu0 %v7431_v8 }
 0x431   : > { %6959 = vmatprep.subr.bf16.mxu0 %v7432_v0 }
 0x434   : > { %6960 = vmatpush3.bf16.msra.mxu0 %v7432_v0 }
 0x435   : > { %6961 = vmatprep.subr.bf16.mxu0 %v7433_v27 }
 0x438   : > { %6962 = vmatpush3.bf16.msra.mxu0 %v7433_v27 }
 0x439   : > { %6963 = vmatprep.subr.bf16.mxu0 %v7434_v12 }
 0x43c   : > { %6964 = vmatpush3.bf16.msra.mxu0 %v7434_v12 }
 0x43d   : > { %6965 = vmatprep.subr.bf16.mxu0 %v7435_v19 }
 0x440   : > { %6966 = vmatpush3.bf16.msra.mxu0 %v7435_v19 }
 0x441   : > { %6975 = vmatprep.subr.bf16.mxu0 %v7436_v15 }
 0x443   : > { %6968 = vmatmul.mubr.bf16.vlgmr.msra.gmra.mrb[28].mxu0 %v4275_v16  ;;  %v7442_v16 = vld [vmem:[%s9344_s6 + $0x170] sm:$0xff]  }
 0x444   : > { %6971 = vmatprep.mubr.bf16.mxu0 %v4276_v40  ;;  %6976 = vmatpush3.bf16.msra.mxu0 %v7436_v15  ;;  %v7447_v40 = vld [vmem:[%s9344_s6 + $0x198] sm:$0xff]  }
 0x445   : > { %6977 = vmatprep.subr.bf16.mxu0 %v7437_v24 }
 0x448   : > { %6978 = vmatpush3.bf16.msra.mxu0 %v7437_v24 }
 0x449   : > { %6979 = vmatprep.subr.bf16.mxu0 %v7438_v50 }
 0x44b   : > { %6972 = vmatmul.mubr.bf16.gmra.mrb[32].mxu0 %v4277_v23  ;;  %v9132_v23 = vld [vmem:[#allocation2 + $0x42] sm:$0xff] }
 0x44c   : > { %6980 = vmatpush3.bf16.msra.mxu0 %v7438_v50  ;;  %6991 = vmatprep.mubr.msk.bf16.mxu0 %vm8946_vm12, %v5969_v41  ;;  %v5978_v11 = vpack.c.bf16 %v9132_v23, %v9002_v59  ;;  %v7448_v41 = vld [vmem:[%s9344_s6 + $0x1a0] sm:$0xff]  }
 0x44d   : > { %6981 = vmatprep.subr.bf16.mxu0 %v7439_v21 }
 0x450   : > { %6982 = vmatpush3.bf16.msra.mxu0 %v7439_v21 }
 0x451   : > { %6983 = vmatprep.subr.bf16.mxu0 %v7440_v7 }
 0x454   : > { %6984 = vmatpush3.bf16.msra.mxu0 %v7440_v7 }
 0x455   : > { %6985 = vmatprep.subr.bf16.mxu0 %v7441_v13 }
 0x458   : > { %6986 = vmatpush3.bf16.msra.mxu0 %v7441_v13 }
 0x459   : > { %6987 = vmatprep.subr.bf16.mxu0 %v7442_v16 }
 0x45c   : > { %6988 = vmatpush3.bf16.msra.mxu0 %v7442_v16 }
 0x45d   : > { %6989 = vmatprep.subr.bf16.mxu0 %v7443_v22 }
 0x460   : > { %6990 = vmatpush3.bf16.msra.mxu0 %v7443_v22 }
 0x461   : > { %6999 = vmatprep.subr.bf16.mxu0 %v7444_v35 }
 0x463   : > { %6992 = vmatmul.mubr.msk.bf16.vlgmr.msra.gmra.mrb[28].mxu0 %vm8974_vm2, %v5972_v46  ;;  %v7452_v46 = vld [vmem:[%s9344_s6 + $0x1c0] sm:$0xff]  }
 0x464   : > { %6995 = vmatprep.mubr.msk.bf16.mxu0 %vm8982_vm3, %v5975_v53  ;;  %7000 = vmatpush3.bf16.msra.mxu0 %v7444_v35  ;;  %v4581_v53 = vld [vmem:[#allocation2 + $0x48] sm:$0xff] }
 0x465   : > { %7001 = vmatprep.subr.bf16.mxu0 %v7445_v58 }
 0x468   : > { %7002 = vmatpush3.bf16.msra.mxu0 %v7445_v58 }
 0x469   : > { %7003 = vmatprep.subr.bf16.mxu0 %v7446_v17 }
 0x46b   : > { %6996 = vmatmul.mubr.msk.bf16.gmra.mrb[32].mxu0 %vm9004_vm8, %v5978_v11 }
 0x46c   : > { %7004 = vmatpush3.bf16.msra.mxu0 %v7446_v17  ;;  %7015 = vmatprep.mubr.msk.bf16.mxu0 %vm8825_vm0, %v8904_v10  ;;  %v6014_v10 = vpack.c.bf16 %v4581_v53, %v9051_v60 }
 0x46d   : > { %7005 = vmatprep.subr.bf16.mxu0 %v7447_v40 }
 0x470   : > { %7006 = vmatpush3.bf16.msra.mxu0 %v7447_v40 }
 0x471   : > { %7007 = vmatprep.subr.bf16.mxu0 %v7448_v41 }
 0x474   : > { %7008 = vmatpush3.bf16.msra.mxu0 %v7448_v41 }
 0x475   : > { %7009 = vmatprep.subr.bf16.mxu0 %v7449_v43 }
 0x478   : > { %7010 = vmatpush3.bf16.msra.mxu0 %v7449_v43 }
 0x479   : > { %7011 = vmatprep.subr.bf16.mxu0 %v7450_v32 }
 0x47c   : > { %7012 = vmatpush3.bf16.msra.mxu0 %v7450_v32 }
 0x47d   : > { %7013 = vmatprep.subr.bf16.mxu0 %v7451_v28 }
 0x480   : > { %7014 = vmatpush3.bf16.msra.mxu0 %v7451_v28 }
 0x481   : > { %7023 = vmatprep.subr.bf16.mxu0 %v7452_v46 }
 0x483   : > { %7016 = vmatmul.mubr.msk.bf16.vlgmr.msra.gmra.mrb[28].mxu0 %vm8898_vm5, %v8919_v20  ;;  %v7457_v20 = vld [vmem:[%s9344_s6 + $0x1e8] sm:$0xff]  }
 0x484   : > { %7019 = vmatprep.mubr.msk.bf16.mxu0 %vm8908_vm6, %v8944_v36  ;;  %7024 = vmatpush3.bf16.msra.mxu0 %v7452_v46  ;;  %v7460_v36 = vld [vmem:[%s9344_s6 + $0x200] sm:$0xff]  }
 0x485   : > { %7025 = vmatprep.subr.bf16.mxu0 %v7453_v47 }
 0x488   : > { %7026 = vmatpush3.bf16.msra.mxu0 %v7453_v47 }
 0x489   : > { %7027 = vmatprep.subr.bf16.mxu0 %v7454_v51 }
 0x48b   : > { %7020 = vmatmul.mubr.msk.bf16.gmra.mrb[32].mxu0 %vm8938_vm11, %v6014_v10 }
 0x48c   : > { %7028 = vmatpush3.bf16.msra.mxu0 %v7454_v51  ;;  %7039 = vmatprep.mubr.bf16.mxu0 %v8776_v52  ;;  %v7459_v52 = vld [vmem:[%s9344_s6 + $0x1f8] sm:$0xff]  }
 0x48d   : > { %7029 = vmatprep.subr.bf16.mxu0 %v7455_v9 }
 0x490   : > { %7030 = vmatpush3.bf16.msra.mxu0 %v7455_v9 }
 0x491   : > { %7031 = vmatprep.subr.bf16.mxu0 %v7456_v54 }
 0x494   : > { %7032 = vmatpush3.bf16.msra.mxu0 %v7456_v54 }
 0x495   : > { %7033 = vmatprep.subr.bf16.mxu0 %v7457_v20 }
 0x498   : > { %7034 = vmatpush3.bf16.msra.mxu0 %v7457_v20 }
 0x499   : > { %7035 = vmatprep.subr.bf16.mxu0 %v7458_v45 }
 0x49c   : > { %7036 = vmatpush3.bf16.msra.mxu0 %v7458_v45 }
 0x49d   : > { %7037 = vmatprep.subr.bf16.mxu0 %v7459_v52 }
 0x4a0   : > { %7038 = vmatpush3.bf16.msra.mxu0 %v7459_v52 }
 0x4a1   : > { %7047 = vmatprep.subr.bf16.mxu0 %v7460_v36 }
 0x4a3   : > { %7040 = vmatmul.mubr.bf16.vlgmr.msra.gmra.mrb[28].mxu0 %v8810_v25  ;;  %v7464_v25 = vld [vmem:[%s9344_s6 + $0x220] sm:$0xff]  }
 0x4a4   : > { %7043 = vmatprep.mubr.bf16.mxu0 %v8823_v57  ;;  %7048 = vmatpush3.bf16.msra.mxu0 %v7460_v36  ;;  %v7466_v57 = vld [vmem:[%s9344_s6 + $0x230] sm:$0xff]  }
 0x4a5   : > { %7049 = vmatprep.subr.bf16.mxu0 %v7461_v26 }
 0x4a8   : > { %7050 = vmatpush3.bf16.msra.mxu0 %v7461_v26 }
 0x4a9   : > { %7051 = vmatprep.subr.bf16.mxu0 %v7462_v39 }
 0x4ab   : > { %7044 = vmatmul.mubr.bf16.gmra.mrb[32].mxu0 %v4743_v48 }
 0x4ac   : > { %7052 = vmatpush3.bf16.msra.mxu0 %v7462_v39  ;;  %7063 = vmatprep.mubr.msk.bf16.mxu0 %vm8946_vm12, %v8980_v56  ;;  %v4889_v56 = vld [vmem:[#allocation2 + $0x4a] sm:$0xff] }
 0x4ad   : > { %7053 = vmatprep.subr.bf16.mxu0 %v7463_v29  ;;  %v6074_v34 = vpack.c.bf16 %v4889_v56, %v9132_v23 }
 0x4b0   : > { %7054 = vmatpush3.bf16.msra.mxu0 %v7463_v29 }
 0x4b1   : > { %7055 = vmatprep.subr.bf16.mxu0 %v7464_v25 }
 0x4b4   : > { %7056 = vmatpush3.bf16.msra.mxu0 %v7464_v25 }
 0x4b5   : > { %7057 = vmatprep.subr.bf16.mxu0 %v7465_v37 }
 0x4b8   : > { %7058 = vmatpush3.bf16.msra.mxu0 %v7465_v37 }
 0x4b9   : > { %7059 = vmatprep.subr.bf16.mxu0 %v7466_v57 }
 0x4bc   : > { %7060 = vmatpush3.bf16.msra.mxu0 %v7466_v57 }
 0x4bd   : > { %7061 = vmatprep.subr.bf16.mxu0 %v7467_v38 }
 0x4c0   : > { %7062 = vmatpush3.bf16.msra.mxu0 %v7467_v38 }
 0x4c3   : > { %7064 = vmatmul.mubr.msk.bf16.vlgmr.msra.gmra.mrb[28].mxu0 %vm8974_vm2, %v8991_v30 }
 0x4c4   : > { %7067 = vmatprep.mubr.msk.bf16.mxu0 %vm8982_vm3, %v9010_v63 }
 0x4cb   : > { %7068 = vmatmul.mubr.msk.bf16.gmra.mrb[32].mxu0 %vm9004_vm8, %v6074_v34 }
 0x4cc   : > { %7482 = shalt.err (!%p7479_p3)
}
 0x4cd   : > { %s7483_s17 = scalar_lea.hbm %s9237_s0, 256  ;;  %s7487_s1 = scalar_lea.hbm %s9325_s12, 512 }
 0x4ce   : > { %p7484_p4 = scmp.ne.s32.totalorder %s9237_s0, %s7483_s17  ;;  %p7488_p9 = scmp.lt.u32.totalorder %s9237_s0, %s9325_s12 }
 0x4cf   : > { %p7489_p10 = scmp.lt.u32.totalorder %s7487_s1, %s7483_s17  ;;  %p7491_p12 = scmp.lt.u32.totalorder %s7483_s17, %s9237_s0 }
 0x4d0   : > { %p7485_p7 = pnand %p7484_p4, %p7680_p5 }
 0x4d1   : > { %p7490_p11 = por %p7489_p10, %p7488_p9 }
 0x4d2   : > { %p7486_p8 = pneg %p7485_p7 }
 0x4d3   : > { %p7492_p13 = por %p7491_p12, %p7490_p11 }
 0x4d5   : > { %p7493_p0 = pnand %p7492_p13, %p7486_p8 }
 0x4d7   : > { %7496 = shalt.err (!%p7493_p0)
}
 0x4d8   : > { %s7569_s2 = smov 128   ;;  %s7570_s15 = smov 8  }
 0x4d9   : > { %7139 = dma.vmem_to_hbm [thread:$0]  (%p7680_p5), %s9230_s23, 256, %s9237_s0, %s5067_s21, %s7569_s2, %s7569_s2, %s7570_s15  }
 0x4da   : > { %s9373_s20 = sshll.u32 %s7663_s29, 6  ;;  %s5104_s1 = sshll.u32 %s8695_s22, 4  ;;  %s5105_s1 = int_to_ptr.vmem [resolvable:$true] %s5104_s1 }
 0x4db   : > { %s9268_s17 = scalar_lea.hbm %s9326_s13, %s9373_s20  ;;  %s5072_s16 = scalar_lea.sflag [#allocation6], %s8689_s14 }
 0x4dc   : > { %s7497_s3 = scalar_lea.vmem %s5105_s1, 64  ;;  %s7571_s4 = smov [#allocation5]  }
 0x4dd   : > { %p7498_p1 = scmp.ne.s32.totalorder %s5105_s1, %s7497_s3  ;;  %s7501_s5 = sshll.u32 %s7571_s4, 4  ;;  %s7502_s5 = int_to_ptr.vmem [resolvable:$false] %s7501_s5 }
 0x4de   : > { %s7503_s6 = scalar_lea.vmem %s7502_s5, 128  ;;  %p7504_p4 = scmp.lt.s32.totalorder %s5105_s1, %s7502_s5 }
 0x4df   : > { %p7499_p2 = pnand %p7498_p1, %p7680_p5  ;;  %p7505_p7 = scmp.lt.s32.totalorder %s7503_s6, %s7497_s3 }
 0x4e1   : > { %p7500_p3 = pneg %p7499_p2  ;;  %p7506_p8 = por %p7505_p7, %p7504_p4 }
 0x4e3   : > { %p7507_p9 = pnand %p7506_p8, %p7500_p3 }
 0x4e5   : > { %7510 = shalt.err (!%p7507_p9)
}
 0x4e6   : > { %s7511_s29 = scalar_lea.hbm %s9268_s17, 64  ;;  %s7515_s4 = scalar_lea.hbm %s9326_s13, 128 }
 0x4e7   : > { %p7512_p10 = scmp.ne.s32.totalorder %s9268_s17, %s7511_s29  ;;  %p7516_p13 = scmp.lt.u32.totalorder %s9268_s17, %s9326_s13 }
 0x4e8   : > { %p7517_p0 = scmp.lt.u32.totalorder %s7515_s4, %s7511_s29  ;;  %p7519_p2 = scmp.lt.u32.totalorder %s7511_s29, %s9268_s17 }
 0x4e9   : > { %p7513_p11 = pnand %p7512_p10, %p7680_p5 }
 0x4ea   : > { %p7518_p1 = por %p7517_p0, %p7516_p13 }
 0x4eb   : > { %p7514_p12 = pneg %p7513_p11 }
 0x4ec   : > { %p7520_p3 = por %p7519_p2, %p7518_p1 }
 0x4ee   : > { %p7521_p4 = pnand %p7520_p3, %p7514_p12 }
 0x4f0   : > { %7524 = shalt.err (!%p7521_p4)
}
 0x4f1   : > { %7140 = dma.vmem_to_hbm [thread:$0]  (%p7680_p5), %s5105_s1, 64, %s9268_s17, %s5072_s16   ;;  %v6076_v55 = vld [vmem:[%s9321_s8] ss:$0 sm:$0xff] }
 0x4f2   : > { %s6087_s3 = sshll.u32 %s7713_s30, 6 }
 0x4f3   : > { %s501_s15 = scalar_lea.vmem %s9324_s11, %s6087_s3 }
 0x596   : > { %v7065_v61 = vpop.f32.mrb[28].mxu0 }
 0x597   : > { %v5047_v30 = vadd.f32 %v7065_v61, %v6076_v55  ;;  %v5001_v59 = vpop.f32.mrb[29].mxu0 }
 0x598   : > { %v5045_v62 = vadd.f32 %v6076_v55, %v5001_v59  ;;  %v7066_v63 = vpop.f32.mrb[30].mxu0 }
 0x599   : > { %5055 = vst [vmem:[%s501_s15 + $0x10] sm:$0xff] %v5047_v30  ;;  %v5048_v1 = vadd.f32 %v7066_v63, %v6076_v55  ;;  %v5004_v2 = vpop.f32.mrb[31].mxu0 }
 0x59a   : > { %5053 = vst [vmem:[%s501_s15] sm:$0xff] %v5045_v62  ;;  %v5046_v3 = vadd.f32 %v6076_v55, %v5004_v2 }
 0x59b   : > { %5056 = vst [vmem:[%s501_s15 + $0x18] sm:$0xff] %v5048_v1 }
 0x59c   : > { %5054 = vst [vmem:[%s501_s15 + $0x8] sm:$0xff] %v5046_v3 }
 0x59e   : > { %v7069_v4 = vpop.f32.mrb[32].mxu0 }
 0x59f   : > { %v5051_v14 = vadd.f32 %v7069_v4, %v6076_v55  ;;  %v5017_v5 = vpop.f32.mrb[33].mxu0 }
 0x5a0   : > { %v5049_v44 = vadd.f32 %v6076_v55, %v5017_v5  ;;  %v7070_v49 = vpop.f32.mrb[34].mxu0 }
 0x5a1   : > { %5059 = vst [vmem:[%s501_s15 + $0x30] sm:$0xff] %v5051_v14  ;;  %v5052_v31 = vadd.f32 %v7070_v49, %v6076_v55  ;;  %v5020_v33 = vpop.f32.mrb[35].mxu0 }
 0x5a2   : > { %5057 = vst [vmem:[%s501_s15 + $0x20] sm:$0xff] %v5049_v44  ;;  %v5050_v6 = vadd.f32 %v6076_v55, %v5020_v33 }
 0x5a3   : > { %5060 = vst [vmem:[%s501_s15 + $0x38] sm:$0xff] %v5052_v31 }
 0x5a4   : > { %5058 = vst [vmem:[%s501_s15 + $0x28] sm:$0xff] %v5050_v6 }
 0x5a5 PF: > { %p7150_p5 = scmp.ge.s32.totalorder %s7563_s28, 2  ;;  %s5124_s18 = sand.u32 1, %s7551_s25  }
 0x5a6   : > { %s5125_s30 = scalar_lea.sflag [#allocation4], %s5124_s18 }
 0x5a7   : > { %p7144_p7 = pnand %p7150_p5, %p7684_p6 }
 0x5a9   : > { %7542 = dma.done.wait (!%p7144_p7), %s5125_s30, 256  }
 0x5aa   : > { %7544 = vsyncadd (!%p7144_p7), %s5125_s30, 4294967040  ;;  %s5134_s20 = scalar_lea.sflag [#allocation6], %s5124_s18 }
 0x5ab   : > { %7546 = dma.done.wait (!%p7144_p7), %s5134_s20, 64  }
 0x5ac   : > { %7548 = vsyncadd (!%p7144_p7), %s5134_s20, 4294967232  ;;  %s9374_s28 = sld [smem:[#allocation10_spill]]  ;;  %s9375_s27 = sld [smem:[#allocation9_spill]] }
 0x5ad   : > { %s9376_s24 = sld [smem:[#allocation11_spill]]  ;;  %s9377_s25 = smov %s7555_s26 }
 0x5b2   : > { %p27_p8 = scmp.ge.s32.totalorder %s9374_s28, 4   ;;  %s9378_s26 = smov %s9375_s27 }
 0x5b3   : > { %s9379_s27 = smov %s9376_s24 }
 0x5b4   :  { %29 = sbr.rel (!%p27_p8) target bundleno = 13 (0xd), region = 160 }
 0x5bb   :  { %5139 = vsyncpa [#allocation4], 1 }
 0x5bc   :  { %5141 = vsyncpa [#allocation4 + $0x1], 1 }
 0x5bd   :  { %5142 = vsyncpa [#allocation6], 1 }
 0x5be   :  { %5144 = vsyncpa [#allocation6 + $0x1], 1 }

</bundles_post_ra>
